<compile_context>
chip_gen: v5e
topology: v5e:2x2
jax: 0.10.0
libtpu: 0.0.40
codegen_flags: <defaults>
</compile_context>

<pallas_src>
import math
import numpy as np
import jax
import jax.numpy as jnp
from jax.experimental import pallas as pl
from jax.experimental.pallas import tpu as pltpu

HPARAMS = dict(
    hidden_size=32,
    residual_layers=4,
    residual_channels=32,
    dilation_cycle_length=2,
    keep_bins=16,
    mel_vmin=-6.0,
    mel_vmax=1.5,
)


def cosine_beta_schedule(timesteps, s=0.008):
    steps = timesteps + 1
    x = np.linspace(0, steps, steps)
    alphas_cumprod = np.cos((x / steps + s) / (1 + s) * np.pi * 0.5) ** 2
    alphas_cumprod = alphas_cumprod / alphas_cumprod[0]
    betas = 1 - alphas_cumprod[1:] / alphas_cumprod[:-1]
    return np.clip(betas, a_min=0, a_max=0.999)


# ---------------------------------------------------------------------------
# Fused sampler kernel: grid=(n_steps,), everything VMEM-resident across steps.
#   step i:
#     noise_pred = DiffNet(x, t_i)
#     (i == 0)  -> second DiffNet at t_prev on x_pred (PLMS stage 0)
#     nprime    = c0*noise_pred + cp*npp + c1*h1 + c2*h2 + c3*h3
#     x         = (1 + k1)*x - k2*nprime           (get_x_pred)
#     (last)    -> out = x * d + m                 (spec denorm, x2.30259 folded)
# ---------------------------------------------------------------------------
def make_sampler_call(M, T, C, H, L, dil_cycle, n_steps):
    dilations = sorted({2 ** (l % dil_cycle) for l in range(L)})
    assert T > max(dilations), "frame axis must exceed the max dilation"
    assert n_steps >= 1
    inv_sqrt2 = 1.0 / 1.41421356
    inv_sqrt_l = 1.0 / math.sqrt(float(L))

    # TODO(synk): for long utterances add a frame-axis grid (tile >=256 on v6e/v7x,
    # 128 on v5e, "parallel" semantics for v7x's 2nd TensorCore) with a
    # +/- max(dilations) halo; here the full frame axis is one VMEM-resident block.
    def kernel(coef_ref, x0_ref, cond_ref, ds_ref, dsprev_ref,
               w_cond_ref, b_cond_ref,
               w_in_ref, b_in_ref,
               w_dil_ref, b_dil_ref,
               w_out_ref, b_out_ref,
               w_skip_ref, b_skip_ref,
               w_proj_ref, b_proj_ref,
               d_ref, m_ref,
               out_ref,
               condp_s, x_s, h1_s, h2_s, h3_s, npp_s):
        i = pl.program_id(0)
        n = pl.num_programs(0)

        # ---- one-time init (step 0): PLMS state + conditioner projection ----
        @pl.when(i == 0)
        def _init():
            x_s[...] = x0_ref[...]
            zeros = jnp.zeros((M, T), jnp.float32)
            h1_s[...] = zeros
            h2_s[...] = zeros
            h3_s[...] = zeros
            npp_s[...] = zeros
            c = cond_ref[...].astype(jnp.bfloat16)
            for l in range(L):
                condp_s[l] = (jnp.dot(w_cond_ref[l], c,
                                      preferred_element_type=jnp.float32)
                              + b_cond_ref[l])

        # boundary masks for the dilated conv taps, hoisted over the layer loop
        col = jax.lax.broadcasted_iota(jnp.int32, (1, T), 1)
        masks = {d: (col >= d, col < T - d) for d in dilations}

        def diffnet(x_in, ds_of_l):
            x = jnp.dot(w_in_ref[...], x_in.astype(jnp.bfloat16),
                        preferred_element_type=jnp.float32) + b_in_ref[...]
            x = jnp.maximum(x, 0.0)                               # (C, T)
            skip = jnp.zeros((C, T), jnp.float32)
            for l in range(L):                                    # static unroll, L small
                d = 2 ** (l % dil_cycle)
                m_lo, m_hi = masks[d]
                y = x + ds_of_l(l)                                # (C, T) + (C, 1)
                # dilated 3-tap conv (padding = dilation): XLU roll + boundary zero mask
                y_m = jnp.where(m_lo, pltpu.roll(y, shift=d, axis=1), 0.0)      # y[t-d]
                y_p = jnp.where(m_hi, pltpu.roll(y, shift=T - d, axis=1), 0.0)  # y[t+d]
                ys = jnp.concatenate([y_m, y, y_p], axis=0).astype(jnp.bfloat16)  # (3C, T)
                y2 = (jnp.dot(w_dil_ref[l], ys, preferred_element_type=jnp.float32)
                      + b_dil_ref[l] + condp_s[l])                # (2C, T)
                y3 = jax.nn.sigmoid(y2[:C, :]) * jnp.tanh(y2[C:, :])
                yo = jnp.dot(w_out_ref[l], y3.astype(jnp.bfloat16),
                             preferred_element_type=jnp.float32) + b_out_ref[l]
                x = (x + yo[:C, :]) * inv_sqrt2
                skip = skip + yo[C:, :]
            s = jnp.dot(w_skip_ref[...], (skip * inv_sqrt_l).astype(jnp.bfloat16),
                        preferred_element_type=jnp.float32) + b_skip_ref[...]
            s = jnp.maximum(s, 0.0)
            return jnp.dot(w_proj_ref[...], s.astype(jnp.bfloat16),
                           preferred_element_type=jnp.float32) + b_proj_ref[...]

        # per-step scalars (SMEM): [k1, k2, c0, cp, c1, c2, c3, _]
        k1 = coef_ref[i, 0]
        k2 = coef_ref[i, 1]
        c0 = coef_ref[i, 2]
        cp = coef_ref[i, 3]
        c1 = coef_ref[i, 4]
        c2 = coef_ref[i, 5]
        c3 = coef_ref[i, 6]

        x_cur = x_s[...]
        noise_pred = diffnet(x_cur, lambda l: ds_ref[0, l])

        # PLMS stage 0 needs a second denoiser evaluation at t_prev on x_pred
        @pl.when(i == 0)
        def _stage0():
            x_pred = (1.0 + k1) * x_cur - k2 * noise_pred
            npp_s[...] = diffnet(x_pred, lambda l: dsprev_ref[l])

        nprime = (c0 * noise_pred + cp * npp_s[...]
                  + c1 * h1_s[...] + c2 * h2_s[...] + c3 * h3_s[...])

        # shift the noise history (after it has been consumed)
        h3_s[...] = h2_s[...]
        h2_s[...] = h1_s[...]
        h1_s[...] = noise_pred

        x_new = (1.0 + k1) * x_cur - k2 * nprime
        x_s[...] = x_new

        @pl.when(i == n - 1)
        def _final():
            out_ref[...] = x_new * d_ref[...] + m_ref[...]

    def const_spec(shape):
        nd = len(shape)
        return pl.BlockSpec(shape, lambda i: (0,) * nd)   # same block every step -> resident

    in_specs = [
        pl.BlockSpec(memory_space=pltpu.MemorySpace.SMEM),     # coef (n_steps, 8)
        const_spec((M, T)),                                    # x0 (initial noise)
        const_spec((H, T)),                                    # cond
        pl.BlockSpec((1, L, C, 1), lambda i: (i, 0, 0, 0)),    # ds per step
        const_spec((L, C, 1)),                                 # ds_prev (step 0)
        const_spec((L, 2 * C, H)),                             # w_cond
        const_spec((L, 2 * C, 1)),                             # b_cond
        const_spec((C, M)),                                    # w_in
        const_spec((C, 1)),                                    # b_in
        const_spec((L, 2 * C, 3 * C)),                         # w_dil (taps fused)
        const_spec((L, 2 * C, 1)),                             # b_dil
        const_spec((L, 2 * C, C)),                             # w_out
        const_spec((L, 2 * C, 1)),                             # b_out
        const_spec((C, C)),                                    # w_skip
        const_spec((C, 1)),                                    # b_skip
        const_spec((M, C)),                                    # w_proj
        const_spec((M, 1)),                                    # b_proj
        const_spec((M, 1)),                                    # denorm scale d
        const_spec((M, 1)),                                    # denorm shift m
    ]

    return pl.pallas_call(
        kernel,
        out_shape=jax.ShapeDtypeStruct((M, T), jnp.float32),
        grid=(n_steps,),
        in_specs=in_specs,
        out_specs=pl.BlockSpec((M, T), lambda i: (0, 0)),
        scratch_shapes=[
            pltpu.VMEM((L, 2 * C, T), jnp.float32),   # conditioner projection
            pltpu.VMEM((M, T), jnp.float32),          # x (PLMS state)
            pltpu.VMEM((M, T), jnp.float32),          # noise history (newest)
            pltpu.VMEM((M, T), jnp.float32),          # noise history
            pltpu.VMEM((M, T), jnp.float32),          # noise history (oldest)
            pltpu.VMEM((M, T), jnp.float32),          # stage-0 noise_pred_prev
        ],
        compiler_params=pltpu.CompilerParams(
            dimension_semantics=("arbitrary",),       # sequential: state carried in scratch
            vmem_limit_bytes=32 * 1024 * 1024),
    )


class GaussianDiffusionPallas:
    """Inference path of GaussianDiffusion.forward (PNDM/PLMS sampling + DiffNet)."""

    _STAGE_COEFS = {
        0: (0.5, 0.5, 0.0, 0.0, 0.0),                       # c0, cp, c1, c2, c3
        1: (1.5, 0.0, -0.5, 0.0, 0.0),
        2: (23.0 / 12, 0.0, -16.0 / 12, 5.0 / 12, 0.0),
        3: (55.0 / 24, 0.0, -59.0 / 24, 37.0 / 24, -9.0 / 24),
    }

    def __init__(self, out_dims, n_frames, timesteps=20, K_step=20, seed=0,
                 test_nonzero_out_proj=False):
        hp = HPARAMS
        self.M = out_dims
        self.T = n_frames
        self.C = hp['residual_channels']
        self.H = hp['hidden_size']
        self.L = hp['residual_layers']
        self.dil_cycle = hp['dilation_cycle_length']
        self.K_step = K_step

        # 'schedule_type' not in hparams -> cosine schedule (as in the module)
        betas = cosine_beta_schedule(timesteps)
        alphas = 1.0 - betas
        self.alphas_cumprod = np.cumprod(alphas, axis=0)

        # spec min/max buffers (synthetic, deterministic); fold the 2.30259 scale in
        spec_min = np.linspace(-6.0, -5.0, self.M).astype(np.float32)
        spec_max = np.linspace(0.0, 1.0, self.M).astype(np.float32)
        self.d_eff = jnp.asarray(((spec_max - spec_min) / 2.0).reshape(self.M, 1)
                                 * 2.30259, jnp.float32)
        self.m_eff = jnp.asarray(((spec_max + spec_min) / 2.0).reshape(self.M, 1)
                                 * 2.30259, jnp.float32)

        # ---- DiffNet parameters (deterministic synthetic init) ----
        key = jax.random.PRNGKey(seed)
        ks = list(jax.random.split(key, 20))

        def nrm(k, shape, scale=0.1):
            return (scale * jax.random.normal(k, shape)).astype(jnp.float32)

        C, M, H, L = self.C, self.M, self.H, self.L
        self.w_in = nrm(ks[0], (C, M)).astype(jnp.bfloat16)
        self.b_in = nrm(ks[1], (C, 1), 0.01)

        # SinusoidalPosEmb + Mish-MLP + per-layer diffusion projections: tiny vectors,
        # evaluated host-side once per step and fed as an (n_steps, L, C, 1) table.
        half = C // 2
        self.pos_emb_np = np.exp(np.arange(half, dtype=np.float64)
                                 * (-9.21034037 / (half - 1)))[None, :]
        self.mlp_w1_np = np.asarray(nrm(ks[2], (4 * C, C)), np.float64)
        self.mlp_b1_np = np.asarray(nrm(ks[3], (4 * C,), 0.01), np.float64)
        self.mlp_w2_np = np.asarray(nrm(ks[4], (C, 4 * C)), np.float64)
        self.mlp_b2_np = np.asarray(nrm(ks[5], (C,), 0.01), np.float64)
        self.w_diff_flat_np = np.asarray(nrm(ks[6], (L, C, C)),
                                         np.float64).reshape(L * C, C)
        self.b_diff_np = np.asarray(nrm(ks[7], (L, C, 1), 0.01), np.float64)

        # residual layers (stacked over L); 3 conv taps fused along contraction dim:
        # columns [0:C] -> tap t-d, [C:2C] -> tap t, [2C:3C] -> tap t+d
        w_dil = nrm(ks[8], (L, 3, 2 * C, C))
        self.w_dil_f = jnp.concatenate([w_dil[:, 0], w_dil[:, 1], w_dil[:, 2]],
                                       axis=-1).astype(jnp.bfloat16)   # (L, 2C, 3C)
        self.b_dil = nrm(ks[9], (L, 2 * C, 1), 0.01)
        self.w_cond = nrm(ks[10], (L, 2 * C, H)).astype(jnp.bfloat16)
        self.b_cond = nrm(ks[11], (L, 2 * C, 1), 0.01)
        self.w_out = nrm(ks[12], (L, 2 * C, C)).astype(jnp.bfloat16)
        self.b_out = nrm(ks[13], (L, 2 * C, 1), 0.01)
        self.w_skip = nrm(ks[14], (C, C)).astype(jnp.bfloat16)
        self.b_skip = nrm(ks[15], (C, 1), 0.01)
        # DiffNet.output_projection weight is zero-initialized in the module
        # (default); a non-zero option exists so the self-test exercises the stack.
        if test_nonzero_out_proj:
            self.w_proj = nrm(ks[16], (M, C)).astype(jnp.bfloat16)
        else:
            self.w_proj = jnp.zeros((M, C), jnp.bfloat16)
        self.b_proj = nrm(ks[17], (M, 1), 0.01)

        self._samplers = {}   # pallas_call cache, keyed by n_steps

    # ---- SinusoidalPosEmb -> Mish MLP -> per-layer diffusion projection (host) ----
    def _step_embed(self, t):
        emb = self.pos_emb_np * float(t)
        emb = np.concatenate([np.sin(emb), np.cos(emb)], axis=-1)        # (1, C)
        h = emb @ self.mlp_w1_np.T + self.mlp_b1_np
        h = h * np.tanh(np.logaddexp(0.0, h))                            # Mish
        demb = (h @ self.mlp_w2_np.T + self.mlp_b2_np).reshape(self.C, 1)
        ds = (self.w_diff_flat_np @ demb).reshape(self.L, self.C, 1) + self.b_diff_np
        return ds.astype(np.float32)                                     # (L, C, 1)

    # ---- GaussianDiffusion.get_x_pred scalar coefficients (host) ----
    def _xpred_coefs(self, t_1, t_prev):
        a_t = float(self.alphas_cumprod[t_1])
        a_prev = float(self.alphas_cumprod[t_prev])
        a_t_sq, a_prev_sq = math.sqrt(a_t), math.sqrt(a_prev)
        k1 = (a_prev - a_t) / (a_t_sq * (a_t_sq + a_prev_sq))
        k2 = (a_prev - a_t) / (a_t_sq * (math.sqrt((1.0 - a_prev) * a_t)
                                         + math.sqrt((1.0 - a_t) * a_prev)))
        return k1, k2

    def _build_step_tables(self, pndms):
        step_range = np.arange(0, self.K_step, pndms)[::-1]
        n_steps = len(step_range)
        coef = np.zeros((n_steps, 8), np.float32)
        ds = np.zeros((n_steps, self.L, self.C, 1), np.float32)
        for idx, t in enumerate(step_range):
            t_1 = int(t)
            t_prev = t_1 - pndms
            t_prev = t_prev if t_prev > 0 else 0
            k1, k2 = self._xpred_coefs(t_1, t_prev)
            c0, cp, c1, c2, c3 = self._STAGE_COEFS[min(idx, 3)]
            coef[idx, :7] = (k1, k2, c0, cp, c1, c2, c3)
            ds[idx] = self._step_embed(t_1)
        t0_prev = int(step_range[0]) - pndms
        t0_prev = t0_prev if t0_prev > 0 else 0
        ds_prev0 = self._step_embed(t0_prev)
        return n_steps, jnp.asarray(coef), jnp.asarray(ds), jnp.asarray(ds_prev0)

    def _get_sampler(self, n_steps):
        if n_steps not in self._samplers:
            self._samplers[n_steps] = jax.jit(make_sampler_call(
                self.M, self.T, self.C, self.H, self.L, self.dil_cycle, n_steps))
        return self._samplers[n_steps]

    # ---- GaussianDiffusion.forward (inference path) ----
    def forward(self, cond, f0_denorm, initial_noise, speedup):
        # TODO(synk): SvcEncoder (self.fs2) is not provided in the reference; `cond`
        # (decoder_inp.transpose(1,2)) and `f0_denorm` are taken directly as inputs.
        pndms = int(np.asarray(speedup)[0])
        n_steps, coef, ds, ds_prev0 = self._build_step_tables(pndms)
        sampler = self._get_sampler(n_steps)
        mel = sampler(coef, initial_noise[0, 0], cond[0], ds, ds_prev0,
                      self.w_cond, self.b_cond,
                      self.w_in, self.b_in,
                      self.w_dil_f, self.b_dil,
                      self.w_out, self.b_out,
                      self.w_skip, self.b_skip,
                      self.w_proj, self.b_proj,
                      self.d_eff, self.m_eff)                    # (M, T)
        return mel[None, :, :], f0_denorm                        # (1, M, T), f0


# ---------------------------------------------------------------------------
# Pure-numpy reference of the sampling loop (emulates the kernel's bf16 MXU
# input rounding so the comparison isolates structural bugs from dtype drift).
# ---------------------------------------------------------------------------
def numpy_reference(model, x0, cond, pndms):
    C, T, L = model.C, model.T, model.L

    def f32(a):
        return np.asarray(a).astype(np.float32)

    def rbf16(v):
        return v.astype(jnp.bfloat16).astype(np.float32)

    w_in, b_in = f32(model.w_in), f32(model.b_in)
    w_dil, b_dil = f32(model.w_dil_f), f32(model.b_dil)
    w_cond, b_cond = f32(model.w_cond), f32(model.b_cond)
    w_out, b_out = f32(model.w_out), f32(model.b_out)
    w_skip, b_skip = f32(model.w_skip), f32(model.b_skip)
    w_proj, b_proj = f32(model.w_proj), f32(model.b_proj)
    c_bf = rbf16(cond.astype(np.float32))
    condp = [w_cond[l] @ c_bf + b_cond[l] for l in range(L)]

    def sigmoid(v):
        return 1.0 / (1.0 + np.exp(-v))

    def diffnet(x_in, ds):
        x = np.maximum(w_in @ rbf16(x_in) + b_in, 0.0)
        skip = np.zeros((C, T), np.float32)
        for l in range(L):
            d = 2 ** (l % model.dil_cycle)
            y = x + ds[l]
            y_m = np.zeros_like(y); y_m[:, d:] = y[:, :-d]
            y_p = np.zeros_like(y); y_p[:, :-d] = y[:, d:]
            ys = rbf16(np.concatenate([y_m, y, y_p], axis=0))
            y2 = w_dil[l] @ ys + b_dil[l] + condp[l]
            y3 = sigmoid(y2[:C]) * np.tanh(y2[C:])
            yo = w_out[l] @ rbf16(y3) + b_out[l]
            x = (x + yo[:C]) * np.float32(1.0 / 1.41421356)
            skip = skip + yo[C:]
        s = np.maximum(w_skip @ rbf16(skip * np.float32(1.0 / math.sqrt(L))) + b_skip, 0.0)
        return w_proj @ rbf16(s) + b_proj

    step_range = np.arange(0, model.K_step, pndms)[::-1]
    x = x0.astype(np.float32)
    noise_list, stage = [], 0
    for t in step_range:
        t_1 = int(t)
        t_prev = t_1 - pndms
        t_prev = t_prev if t_prev > 0 else 0
        k1, k2 = model._xpred_coefs(t_1, t_prev)
        k1, k2 = np.float32(k1), np.float32(k2)
        np_t = diffnet(x, model._step_embed(t_1))
        if stage == 0:
            x_pred = (1.0 + k1) * x - k2 * np_t
            npp = diffnet(x_pred, model._step_embed(t_prev))
            prime = 0.5 * (np_t + npp)
        elif stage == 1:
            prime = (3.0 * np_t - noise_list[-1]) / 2.0
        elif stage == 2:
            prime = (23.0 * np_t - 16.0 * noise_list[-1] + 5.0 * noise_list[-2]) / 12.0
        else:
            prime = (55.0 * np_t - 59.0 * noise_list[-1] + 37.0 * noise_list[-2]
                     - 9.0 * noise_list[-3]) / 24.0
        if stage < 3:
            noise_list.append(np_t)
            stage += 1
        else:
            noise_list = noise_list[-2:] + [np_t]
        x = (1.0 + k1) * x - k2 * prime
    return x * np.asarray(model.d_eff) + np.asarray(model.m_eff)


if __name__ == "__main__":
    M, T, H = 16, 128, HPARAMS['hidden_size']
    key = jax.random.PRNGKey(0)
    kc, kf, kn = jax.random.split(key, 3)
    cond = jax.random.normal(kc, (1, H, T), jnp.float32)          # (1, hidden, n_frames)
    f0_denorm = jax.random.normal(kf, (1, T), jnp.float32)
    initial_noise = jax.random.normal(kn, (1, 1, M, T), jnp.float32)
    speedup = jnp.array([5], jnp.int32)                           # pndms

    # non-zero output projection only for this self-test so the residual stack,
    # roll-based dilated conv and PLMS history are actually exercised numerically
    # (the reference module zero-initializes it, which is the default here).
    model = GaussianDiffusionPallas(out_dims=M, n_frames=T, timesteps=20, K_step=20,
                                    test_nonzero_out_proj=True)
    mel_out, f0 = model.forward(cond, f0_denorm, initial_noise, speedup)
    jax.block_until_ready(mel_out)
    assert mel_out.shape == (1, M, T) and mel_out.dtype == jnp.float32

    ref = numpy_reference(model, np.asarray(initial_noise[0, 0]),
                          np.asarray(cond[0]), pndms=5)
    out_np = np.asarray(mel_out[0])
    diff = float(np.max(np.abs(out_np - ref)))
    tol = 5e-3 * (1.0 + float(np.max(np.abs(ref))))
    assert np.isfinite(diff) and diff <= tol, f"mismatch: max|diff|={diff} > tol={tol}"
    print("KERNEL_OK")
</pallas_src>

<mosaic_0001>
module attributes {stable_mosaic.version = 11 : i64} {
  func.func @kernel(%arg0: i32, %arg1: memref<4x8xf32, #tpu.memory_space<smem>>, %arg2: memref<16x128xf32, #tpu.memory_space<vmem>>, %arg3: memref<32x128xf32, #tpu.memory_space<vmem>>, %arg4: memref<1x4x32x1xf32, #tpu.memory_space<vmem>>, %arg5: memref<4x32x1xf32, #tpu.memory_space<vmem>>, %arg6: memref<4x64x32xbf16, #tpu.memory_space<vmem>>, %arg7: memref<4x64x1xf32, #tpu.memory_space<vmem>>, %arg8: memref<32x16xbf16, #tpu.memory_space<vmem>>, %arg9: memref<32x1xf32, #tpu.memory_space<vmem>>, %arg10: memref<4x64x96xbf16, #tpu.memory_space<vmem>>, %arg11: memref<4x64x1xf32, #tpu.memory_space<vmem>>, %arg12: memref<4x64x32xbf16, #tpu.memory_space<vmem>>, %arg13: memref<4x64x1xf32, #tpu.memory_space<vmem>>, %arg14: memref<32x32xbf16, #tpu.memory_space<vmem>>, %arg15: memref<32x1xf32, #tpu.memory_space<vmem>>, %arg16: memref<16x32xbf16, #tpu.memory_space<vmem>>, %arg17: memref<16x1xf32, #tpu.memory_space<vmem>>, %arg18: memref<16x1xf32, #tpu.memory_space<vmem>>, %arg19: memref<16x1xf32, #tpu.memory_space<vmem>>, %arg20: memref<16x128xf32, #tpu.memory_space<vmem>>, %arg21: memref<4x64x128xf32, #tpu.memory_space<vmem>>, %arg22: memref<16x128xf32, #tpu.memory_space<vmem>>, %arg23: memref<16x128xf32, #tpu.memory_space<vmem>>, %arg24: memref<16x128xf32, #tpu.memory_space<vmem>>, %arg25: memref<16x128xf32, #tpu.memory_space<vmem>>, %arg26: memref<16x128xf32, #tpu.memory_space<vmem>>) attributes {dimension_semantics = [#tpu.dimension_semantics<arbitrary>], iteration_bounds = array<i64: 4>, scalar_prefetch = 0 : i64, scratch_operands = 6 : i64, tpu.core_type = #tpu.core_type<tc>, window_params = [{transform_indices = @transform_0, window_bounds = array<i64: 4, 8>}, {pipeline_mode = #tpu.pipeline_mode<synchronous>, transform_indices = @transform_1, window_bounds = array<i64: 16, 128>}, {pipeline_mode = #tpu.pipeline_mode<synchronous>, transform_indices = @transform_2, window_bounds = array<i64: 32, 128>}, {transform_indices = @transform_3, window_bounds = array<i64: 1, 4, 32, 1>}, {pipeline_mode = #tpu.pipeline_mode<synchronous>, transform_indices = @transform_4, window_bounds = array<i64: 4, 32, 1>}, {pipeline_mode = #tpu.pipeline_mode<synchronous>, transform_indices = @transform_5, window_bounds = array<i64: 4, 64, 32>}, {pipeline_mode = #tpu.pipeline_mode<synchronous>, transform_indices = @transform_6, window_bounds = array<i64: 4, 64, 1>}, {pipeline_mode = #tpu.pipeline_mode<synchronous>, transform_indices = @transform_7, window_bounds = array<i64: 32, 16>}, {pipeline_mode = #tpu.pipeline_mode<synchronous>, transform_indices = @transform_8, window_bounds = array<i64: 32, 1>}, {pipeline_mode = #tpu.pipeline_mode<synchronous>, transform_indices = @transform_9, window_bounds = array<i64: 4, 64, 96>}, {pipeline_mode = #tpu.pipeline_mode<synchronous>, transform_indices = @transform_10, window_bounds = array<i64: 4, 64, 1>}, {pipeline_mode = #tpu.pipeline_mode<synchronous>, transform_indices = @transform_11, window_bounds = array<i64: 4, 64, 32>}, {pipeline_mode = #tpu.pipeline_mode<synchronous>, transform_indices = @transform_12, window_bounds = array<i64: 4, 64, 1>}, {pipeline_mode = #tpu.pipeline_mode<synchronous>, transform_indices = @transform_13, window_bounds = array<i64: 32, 32>}, {pipeline_mode = #tpu.pipeline_mode<synchronous>, transform_indices = @transform_14, window_bounds = array<i64: 32, 1>}, {pipeline_mode = #tpu.pipeline_mode<synchronous>, transform_indices = @transform_15, window_bounds = array<i64: 16, 32>}, {pipeline_mode = #tpu.pipeline_mode<synchronous>, transform_indices = @transform_16, window_bounds = array<i64: 16, 1>}, {pipeline_mode = #tpu.pipeline_mode<synchronous>, transform_indices = @transform_17, window_bounds = array<i64: 16, 1>}, {pipeline_mode = #tpu.pipeline_mode<synchronous>, transform_indices = @transform_18, window_bounds = array<i64: 16, 1>}, {pipeline_mode = #tpu.pipeline_mode<synchronous>, transform_indices = @transform_19, window_bounds = array<i64: 16, 128>}]} {
    %c0_i32 = arith.constant 0 : i32
    %0 = arith.cmpi eq, %arg0, %c0_i32 : i32
    %1 = arith.extui %0 : i1 to i32
    %c0_i32_0 = arith.constant 0 : i32
    %2 = arith.cmpi ne, %1, %c0_i32_0 : i32
    scf.if %2 {
      %c0_152 = arith.constant 0 : index
      %c0_153 = arith.constant 0 : index
      %280 = vector.load %arg2[%c0_152, %c0_153] : memref<16x128xf32, #tpu.memory_space<vmem>>, vector<16x128xf32>
      %c0_154 = arith.constant 0 : index
      %c0_155 = arith.constant 0 : index
      %281 = vector.load %arg22[%c0_154, %c0_155] : memref<16x128xf32, #tpu.memory_space<vmem>>, vector<16x128xf32>
      tpu.vector_store %arg22[%c0_154, %c0_155], %280 {strides = array<i32>} : memref<16x128xf32, #tpu.memory_space<vmem>>, vector<16x128xf32>,
      %cst_156 = arith.constant 0.000000e+00 : f32
      %282 = vector.broadcast %cst_156 : f32 to vector<16x128xf32>
      %c0_157 = arith.constant 0 : index
      %c0_158 = arith.constant 0 : index
      %283 = vector.load %arg23[%c0_157, %c0_158] : memref<16x128xf32, #tpu.memory_space<vmem>>, vector<16x128xf32>
      tpu.vector_store %arg23[%c0_157, %c0_158], %282 {strides = array<i32>} : memref<16x128xf32, #tpu.memory_space<vmem>>, vector<16x128xf32>,
      %c0_159 = arith.constant 0 : index
      %c0_160 = arith.constant 0 : index
      %284 = vector.load %arg24[%c0_159, %c0_160] : memref<16x128xf32, #tpu.memory_space<vmem>>, vector<16x128xf32>
      tpu.vector_store %arg24[%c0_159, %c0_160], %282 {strides = array<i32>} : memref<16x128xf32, #tpu.memory_space<vmem>>, vector<16x128xf32>,
      %c0_161 = arith.constant 0 : index
      %c0_162 = arith.constant 0 : index
      %285 = vector.load %arg25[%c0_161, %c0_162] : memref<16x128xf32, #tpu.memory_space<vmem>>, vector<16x128xf32>
      tpu.vector_store %arg25[%c0_161, %c0_162], %282 {strides = array<i32>} : memref<16x128xf32, #tpu.memory_space<vmem>>, vector<16x128xf32>,
      %c0_163 = arith.constant 0 : index
      %c0_164 = arith.constant 0 : index
      %286 = vector.load %arg26[%c0_163, %c0_164] : memref<16x128xf32, #tpu.memory_space<vmem>>, vector<16x128xf32>
      tpu.vector_store %arg26[%c0_163, %c0_164], %282 {strides = array<i32>} : memref<16x128xf32, #tpu.memory_space<vmem>>, vector<16x128xf32>,
      %c0_165 = arith.constant 0 : index
      %c0_166 = arith.constant 0 : index
      %287 = vector.load %arg3[%c0_165, %c0_166] : memref<32x128xf32, #tpu.memory_space<vmem>>, vector<32x128xf32>
      %288 = arith.truncf %287 : vector<32x128xf32> to vector<32x128xbf16>
      %c0_167 = arith.constant 0 : index
      %c0_168 = arith.constant 0 : index
      %c0_169 = arith.constant 0 : index
      %289 = vector.load %arg6[%c0_167, %c0_168, %c0_169] : memref<4x64x32xbf16, #tpu.memory_space<vmem>>, vector<1x64x32xbf16>
      %290 = vector.shape_cast %289 : vector<1x64x32xbf16> to vector<64x32xbf16>
      %cst_170 = arith.constant dense<0.000000e+00> : vector<64x128xf32>
      %291 = tpu.matmul %290, %288, %cst_170 {dimension_numbers = #tpu.dot_dimension_numbers<[1], [0], [0], [1], [0, 0, 1, 1], [], []>} : vector<64x32xbf16>, vector<32x128xbf16>, vector<64x128xf32> -> vector<64x128xf32>
      %c0_171 = arith.constant 0 : index
      %c0_172 = arith.constant 0 : index
      %c0_173 = arith.constant 0 : index
      %292 = vector.load %arg7[%c0_171, %c0_172, %c0_173] : memref<4x64x1xf32, #tpu.memory_space<vmem>>, vector<1x64x1xf32>
      %293 = vector.shape_cast %292 : vector<1x64x1xf32> to vector<64x1xf32>
      %294 = vector.broadcast %293 : vector<64x1xf32> to vector<64x128xf32>
      %295 = arith.addf %291, %294 : vector<64x128xf32>
      %c0_174 = arith.constant 0 : index
      %c0_175 = arith.constant 0 : index
      %c0_176 = arith.constant 0 : index
      %296 = vector.load %arg21[%c0_174, %c0_175, %c0_176] : memref<4x64x128xf32, #tpu.memory_space<vmem>>, vector<1x64x128xf32>
      %297 = vector.shape_cast %296 : vector<1x64x128xf32> to vector<64x128xf32>
      %298 = vector.shape_cast %295 : vector<64x128xf32> to vector<1x64x128xf32>
      tpu.vector_store %arg21[%c0_174, %c0_175, %c0_176], %298 {strides = array<i32>} : memref<4x64x128xf32, #tpu.memory_space<vmem>>, vector<1x64x128xf32>,
      %c1_177 = arith.constant 1 : index
      %c0_178 = arith.constant 0 : index
      %c0_179 = arith.constant 0 : index
      %299 = vector.load %arg6[%c1_177, %c0_178, %c0_179] : memref<4x64x32xbf16, #tpu.memory_space<vmem>>, vector<1x64x32xbf16>
      %300 = vector.shape_cast %299 : vector<1x64x32xbf16> to vector<64x32xbf16>
      %cst_180 = arith.constant dense<0.000000e+00> : vector<64x128xf32>
      %301 = tpu.matmul %300, %288, %cst_180 {dimension_numbers = #tpu.dot_dimension_numbers<[1], [0], [0], [1], [0, 0, 1, 1], [], []>} : vector<64x32xbf16>, vector<32x128xbf16>, vector<64x128xf32> -> vector<64x128xf32>
      %c1_181 = arith.constant 1 : index
      %c0_182 = arith.constant 0 : index
      %c0_183 = arith.constant 0 : index
      %302 = vector.load %arg7[%c1_181, %c0_182, %c0_183] : memref<4x64x1xf32, #tpu.memory_space<vmem>>, vector<1x64x1xf32>
      %303 = vector.shape_cast %302 : vector<1x64x1xf32> to vector<64x1xf32>
      %304 = vector.broadcast %303 : vector<64x1xf32> to vector<64x128xf32>
      %305 = arith.addf %301, %304 : vector<64x128xf32>
      %c1_184 = arith.constant 1 : index
      %c0_185 = arith.constant 0 : index
      %c0_186 = arith.constant 0 : index
      %306 = vector.load %arg21[%c1_184, %c0_185, %c0_186] : memref<4x64x128xf32, #tpu.memory_space<vmem>>, vector<1x64x128xf32>
      %307 = vector.shape_cast %306 : vector<1x64x128xf32> to vector<64x128xf32>
      %308 = vector.shape_cast %305 : vector<64x128xf32> to vector<1x64x128xf32>
      tpu.vector_store %arg21[%c1_184, %c0_185, %c0_186], %308 {strides = array<i32>} : memref<4x64x128xf32, #tpu.memory_space<vmem>>, vector<1x64x128xf32>,
      %c2_187 = arith.constant 2 : index
      %c0_188 = arith.constant 0 : index
      %c0_189 = arith.constant 0 : index
      %309 = vector.load %arg6[%c2_187, %c0_188, %c0_189] : memref<4x64x32xbf16, #tpu.memory_space<vmem>>, vector<1x64x32xbf16>
      %310 = vector.shape_cast %309 : vector<1x64x32xbf16> to vector<64x32xbf16>
      %cst_190 = arith.constant dense<0.000000e+00> : vector<64x128xf32>
      %311 = tpu.matmul %310, %288, %cst_190 {dimension_numbers = #tpu.dot_dimension_numbers<[1], [0], [0], [1], [0, 0, 1, 1], [], []>} : vector<64x32xbf16>, vector<32x128xbf16>, vector<64x128xf32> -> vector<64x128xf32>
      %c2_191 = arith.constant 2 : index
      %c0_192 = arith.constant 0 : index
      %c0_193 = arith.constant 0 : index
      %312 = vector.load %arg7[%c2_191, %c0_192, %c0_193] : memref<4x64x1xf32, #tpu.memory_space<vmem>>, vector<1x64x1xf32>
      %313 = vector.shape_cast %312 : vector<1x64x1xf32> to vector<64x1xf32>
      %314 = vector.broadcast %313 : vector<64x1xf32> to vector<64x128xf32>
      %315 = arith.addf %311, %314 : vector<64x128xf32>
      %c2_194 = arith.constant 2 : index
      %c0_195 = arith.constant 0 : index
      %c0_196 = arith.constant 0 : index
      %316 = vector.load %arg21[%c2_194, %c0_195, %c0_196] : memref<4x64x128xf32, #tpu.memory_space<vmem>>, vector<1x64x128xf32>
      %317 = vector.shape_cast %316 : vector<1x64x128xf32> to vector<64x128xf32>
      %318 = vector.shape_cast %315 : vector<64x128xf32> to vector<1x64x128xf32>
      tpu.vector_store %arg21[%c2_194, %c0_195, %c0_196], %318 {strides = array<i32>} : memref<4x64x128xf32, #tpu.memory_space<vmem>>, vector<1x64x128xf32>,
      %c3_197 = arith.constant 3 : index
      %c0_198 = arith.constant 0 : index
      %c0_199 = arith.constant 0 : index
      %319 = vector.load %arg6[%c3_197, %c0_198, %c0_199] : memref<4x64x32xbf16, #tpu.memory_space<vmem>>, vector<1x64x32xbf16>
      %320 = vector.shape_cast %319 : vector<1x64x32xbf16> to vector<64x32xbf16>
      %cst_200 = arith.constant dense<0.000000e+00> : vector<64x128xf32>
      %321 = tpu.matmul %320, %288, %cst_200 {dimension_numbers = #tpu.dot_dimension_numbers<[1], [0], [0], [1], [0, 0, 1, 1], [], []>} : vector<64x32xbf16>, vector<32x128xbf16>, vector<64x128xf32> -> vector<64x128xf32>
      %c3_201 = arith.constant 3 : index
      %c0_202 = arith.constant 0 : index
      %c0_203 = arith.constant 0 : index
      %322 = vector.load %arg7[%c3_201, %c0_202, %c0_203] : memref<4x64x1xf32, #tpu.memory_space<vmem>>, vector<1x64x1xf32>
      %323 = vector.shape_cast %322 : vector<1x64x1xf32> to vector<64x1xf32>
      %324 = vector.broadcast %323 : vector<64x1xf32> to vector<64x128xf32>
      %325 = arith.addf %321, %324 : vector<64x128xf32>
      %c3_204 = arith.constant 3 : index
      %c0_205 = arith.constant 0 : index
      %c0_206 = arith.constant 0 : index
      %326 = vector.load %arg21[%c3_204, %c0_205, %c0_206] : memref<4x64x128xf32, #tpu.memory_space<vmem>>, vector<1x64x128xf32>
      %327 = vector.shape_cast %326 : vector<1x64x128xf32> to vector<64x128xf32>
      %328 = vector.shape_cast %325 : vector<64x128xf32> to vector<1x64x128xf32>
      tpu.vector_store %arg21[%c3_204, %c0_205, %c0_206], %328 {strides = array<i32>} : memref<4x64x128xf32, #tpu.memory_space<vmem>>, vector<1x64x128xf32>,
    } else {
    }
    %3 = tpu.iota {dimensions = array<i32: 1>} : vector<1x128xi32>
    %c1_i32 = arith.constant 1 : i32
    %4 = vector.broadcast %c1_i32 : i32 to vector<1x128xi32>
    %5 = arith.cmpi sge, %3, %4 : vector<1x128xi32>
    %c127_i32 = arith.constant 127 : i32
    %6 = vector.broadcast %c127_i32 : i32 to vector<1x128xi32>
    %7 = arith.cmpi slt, %3, %6 : vector<1x128xi32>
    %c2_i32 = arith.constant 2 : i32
    %8 = vector.broadcast %c2_i32 : i32 to vector<1x128xi32>
    %9 = arith.cmpi sge, %3, %8 : vector<1x128xi32>
    %c126_i32 = arith.constant 126 : i32
    %10 = vector.broadcast %c126_i32 : i32 to vector<1x128xi32>
    %11 = arith.cmpi slt, %3, %10 : vector<1x128xi32>
    %12 = arith.index_cast %arg0 : i32 to index
    %c0 = arith.constant 0 : index
    %13 = memref.load %arg1[%12, %c0] : memref<4x8xf32, #tpu.memory_space<smem>>
    %14 = arith.index_cast %arg0 : i32 to index
    %c1 = arith.constant 1 : index
    %15 = memref.load %arg1[%14, %c1] : memref<4x8xf32, #tpu.memory_space<smem>>
    %16 = arith.index_cast %arg0 : i32 to index
    %c2 = arith.constant 2 : index
    %17 = memref.load %arg1[%16, %c2] : memref<4x8xf32, #tpu.memory_space<smem>>
    %18 = arith.index_cast %arg0 : i32 to index
    %c3 = arith.constant 3 : index
    %19 = memref.load %arg1[%18, %c3] : memref<4x8xf32, #tpu.memory_space<smem>>
    %20 = arith.index_cast %arg0 : i32 to index
    %c4 = arith.constant 4 : index
    %21 = memref.load %arg1[%20, %c4] : memref<4x8xf32, #tpu.memory_space<smem>>
    %22 = arith.index_cast %arg0 : i32 to index
    %c5 = arith.constant 5 : index
    %23 = memref.load %arg1[%22, %c5] : memref<4x8xf32, #tpu.memory_space<smem>>
    %24 = arith.index_cast %arg0 : i32 to index
    %c6 = arith.constant 6 : index
    %25 = memref.load %arg1[%24, %c6] : memref<4x8xf32, #tpu.memory_space<smem>>
    %c0_1 = arith.constant 0 : index
    %c0_2 = arith.constant 0 : index
    %26 = vector.load %arg22[%c0_1, %c0_2] : memref<16x128xf32, #tpu.memory_space<vmem>>, vector<16x128xf32>
    %c0_3 = arith.constant 0 : index
    %c0_4 = arith.constant 0 : index
    %27 = vector.load %arg8[%c0_3, %c0_4] : memref<32x16xbf16, #tpu.memory_space<vmem>>, vector<32x16xbf16>
    %28 = arith.truncf %26 : vector<16x128xf32> to vector<16x128xbf16>
    %cst = arith.constant dense<0.000000e+00> : vector<32x128xf32>
    %29 = tpu.matmul %27, %28, %cst {dimension_numbers = #tpu.dot_dimension_numbers<[1], [0], [0], [1], [0, 0, 1, 1], [], []>} : vector<32x16xbf16>, vector<16x128xbf16>, vector<32x128xf32> -> vector<32x128xf32>
    %c0_5 = arith.constant 0 : index
    %c0_6 = arith.constant 0 : index
    %30 = vector.load %arg9[%c0_5, %c0_6] : memref<32x1xf32, #tpu.memory_space<vmem>>, vector<32x1xf32>
    %31 = vector.broadcast %30 : vector<32x1xf32> to vector<32x128xf32>
    %32 = arith.addf %29, %31 : vector<32x128xf32>
    %cst_7 = arith.constant 0.000000e+00 : f32
    %33 = vector.broadcast %cst_7 : f32 to vector<32x128xf32>
    %34 = arith.maximumf %32, %33 : vector<32x128xf32>
    %cst_8 = arith.constant 0.000000e+00 : f32
    %35 = vector.broadcast %cst_8 : f32 to vector<32x128xf32>
    %c0_9 = arith.constant 0 : index
    %c0_10 = arith.constant 0 : index
    %c0_11 = arith.constant 0 : index
    %c0_12 = arith.constant 0 : index
    %36 = vector.load %arg4[%c0_9, %c0_10, %c0_11, %c0_12] : memref<1x4x32x1xf32, #tpu.memory_space<vmem>>, vector<1x1x32x1xf32>
    %37 = vector.shape_cast %36 : vector<1x1x32x1xf32> to vector<32x1xf32>
    %38 = vector.broadcast %37 : vector<32x1xf32> to vector<32x128xf32>
    %39 = arith.addf %34, %38 : vector<32x128xf32>
    %c1_i32_13 = arith.constant 1 : i32
    %40 = tpu.dynamic_rotate %39 by %c1_i32_13 dim 1 : vector<32x128xf32>, i32 -> vector<32x128xf32>
    %cst_14 = arith.constant 0.000000e+00 : f32
    %41 = vector.shape_cast %5 : vector<1x128xi1> to vector<1x128xi1>
    %42 = vector.broadcast %41 : vector<1x128xi1> to vector<32x128xi1>
    %43 = vector.broadcast %cst_14 : f32 to vector<32x128xf32>
    %44 = arith.select %42, %40, %43 : vector<32x128xi1>, vector<32x128xf32>
    %c127_i32_15 = arith.constant 127 : i32
    %45 = tpu.dynamic_rotate %39 by %c127_i32_15 dim 1 : vector<32x128xf32>, i32 -> vector<32x128xf32>
    %cst_16 = arith.constant 0.000000e+00 : f32
    %46 = vector.shape_cast %7 : vector<1x128xi1> to vector<1x128xi1>
    %47 = vector.broadcast %46 : vector<1x128xi1> to vector<32x128xi1>
    %48 = vector.broadcast %cst_16 : f32 to vector<32x128xf32>
    %49 = arith.select %47, %45, %48 : vector<32x128xi1>, vector<32x128xf32>
    %50 = tpu.concatenate %44, %39, %49 in 0 : vector<32x128xf32>, vector<32x128xf32>, vector<32x128xf32> -> vector<96x128xf32>
    %51 = arith.truncf %50 : vector<96x128xf32> to vector<96x128xbf16>
    %c0_17 = arith.constant 0 : index
    %c0_18 = arith.constant 0 : index
    %c0_19 = arith.constant 0 : index
    %52 = vector.load %arg10[%c0_17, %c0_18, %c0_19] : memref<4x64x96xbf16, #tpu.memory_space<vmem>>, vector<1x64x96xbf16>
    %53 = vector.shape_cast %52 : vector<1x64x96xbf16> to vector<64x96xbf16>
    %cst_20 = arith.constant dense<0.000000e+00> : vector<64x128xf32>
    %54 = tpu.matmul %53, %51, %cst_20 {dimension_numbers = #tpu.dot_dimension_numbers<[1], [0], [0], [1], [0, 0, 1, 1], [], []>} : vector<64x96xbf16>, vector<96x128xbf16>, vector<64x128xf32> -> vector<64x128xf32>
    %c0_21 = arith.constant 0 : index
    %c0_22 = arith.constant 0 : index
    %c0_23 = arith.constant 0 : index
    %55 = vector.load %arg11[%c0_21, %c0_22, %c0_23] : memref<4x64x1xf32, #tpu.memory_space<vmem>>, vector<1x64x1xf32>
    %56 = vector.shape_cast %55 : vector<1x64x1xf32> to vector<64x1xf32>
    %57 = vector.broadcast %56 : vector<64x1xf32> to vector<64x128xf32>
    %58 = arith.addf %54, %57 : vector<64x128xf32>
    %c0_24 = arith.constant 0 : index
    %c0_25 = arith.constant 0 : index
    %c0_26 = arith.constant 0 : index
    %59 = vector.load %arg21[%c0_24, %c0_25, %c0_26] : memref<4x64x128xf32, #tpu.memory_space<vmem>>, vector<1x64x128xf32>
    %60 = vector.shape_cast %59 : vector<1x64x128xf32> to vector<64x128xf32>
    %61 = arith.addf %58, %60 : vector<64x128xf32>
    %62 = vector.extract_strided_slice %61 {offsets = [0, 0], sizes = [32, 128], strides = [1, 1]} : vector<64x128xf32> to vector<32x128xf32>
    %63 = arith.negf %62 : vector<32x128xf32>
    %64 = math.exp %63 : vector<32x128xf32>
    %cst_27 = arith.constant 1.000000e+00 : f32
    %65 = vector.broadcast %cst_27 : f32 to vector<32x128xf32>
    %66 = arith.addf %65, %64 : vector<32x128xf32>
    %67 = arith.divf %65, %66 : vector<32x128xf32>
    %68 = vector.extract_strided_slice %61 {offsets = [32, 0], sizes = [32, 128], strides = [1, 1]} : vector<64x128xf32> to vector<32x128xf32>
    %69 = math.tanh %68 : vector<32x128xf32>
    %70 = arith.mulf %67, %69 : vector<32x128xf32>
    %c0_28 = arith.constant 0 : index
    %c0_29 = arith.constant 0 : index
    %c0_30 = arith.constant 0 : index
    %71 = vector.load %arg12[%c0_28, %c0_29, %c0_30] : memref<4x64x32xbf16, #tpu.memory_space<vmem>>, vector<1x64x32xbf16>
    %72 = vector.shape_cast %71 : vector<1x64x32xbf16> to vector<64x32xbf16>
    %73 = arith.truncf %70 : vector<32x128xf32> to vector<32x128xbf16>
    %cst_31 = arith.constant dense<0.000000e+00> : vector<64x128xf32>
    %74 = tpu.matmul %72, %73, %cst_31 {dimension_numbers = #tpu.dot_dimension_numbers<[1], [0], [0], [1], [0, 0, 1, 1], [], []>} : vector<64x32xbf16>, vector<32x128xbf16>, vector<64x128xf32> -> vector<64x128xf32>
    %c0_32 = arith.constant 0 : index
    %c0_33 = arith.constant 0 : index
    %c0_34 = arith.constant 0 : index
    %75 = vector.load %arg13[%c0_32, %c0_33, %c0_34] : memref<4x64x1xf32, #tpu.memory_space<vmem>>, vector<1x64x1xf32>
    %76 = vector.shape_cast %75 : vector<1x64x1xf32> to vector<64x1xf32>
    %77 = vector.broadcast %76 : vector<64x1xf32> to vector<64x128xf32>
    %78 = arith.addf %74, %77 : vector<64x128xf32>
    %79 = vector.extract_strided_slice %78 {offsets = [0, 0], sizes = [32, 128], strides = [1, 1]} : vector<64x128xf32> to vector<32x128xf32>
    %80 = arith.addf %34, %79 : vector<32x128xf32>
    %cst_35 = arith.constant 0.707106769 : f32
    %81 = vector.broadcast %cst_35 : f32 to vector<32x128xf32>
    %82 = arith.mulf %80, %81 : vector<32x128xf32>
    %83 = vector.extract_strided_slice %78 {offsets = [32, 0], sizes = [32, 128], strides = [1, 1]} : vector<64x128xf32> to vector<32x128xf32>
    %84 = arith.addf %35, %83 : vector<32x128xf32>
    %c0_36 = arith.constant 0 : index
    %c1_37 = arith.constant 1 : index
    %c0_38 = arith.constant 0 : index
    %c0_39 = arith.constant 0 : index
    %85 = vector.load %arg4[%c0_36, %c1_37, %c0_38, %c0_39] : memref<1x4x32x1xf32, #tpu.memory_space<vmem>>, vector<1x1x32x1xf32>
    %86 = vector.shape_cast %85 : vector<1x1x32x1xf32> to vector<32x1xf32>
    %87 = vector.broadcast %86 : vector<32x1xf32> to vector<32x128xf32>
    %88 = arith.addf %82, %87 : vector<32x128xf32>
    %c2_i32_40 = arith.constant 2 : i32
    %89 = tpu.dynamic_rotate %88 by %c2_i32_40 dim 1 : vector<32x128xf32>, i32 -> vector<32x128xf32>
    %cst_41 = arith.constant 0.000000e+00 : f32
    %90 = vector.shape_cast %9 : vector<1x128xi1> to vector<1x128xi1>
    %91 = vector.broadcast %90 : vector<1x128xi1> to vector<32x128xi1>
    %92 = vector.broadcast %cst_41 : f32 to vector<32x128xf32>
    %93 = arith.select %91, %89, %92 : vector<32x128xi1>, vector<32x128xf32>
    %c126_i32_42 = arith.constant 126 : i32
    %94 = tpu.dynamic_rotate %88 by %c126_i32_42 dim 1 : vector<32x128xf32>, i32 -> vector<32x128xf32>
    %cst_43 = arith.constant 0.000000e+00 : f32
    %95 = vector.shape_cast %11 : vector<1x128xi1> to vector<1x128xi1>
    %96 = vector.broadcast %95 : vector<1x128xi1> to vector<32x128xi1>
    %97 = vector.broadcast %cst_43 : f32 to vector<32x128xf32>
    %98 = arith.select %96, %94, %97 : vector<32x128xi1>, vector<32x128xf32>
    %99 = tpu.concatenate %93, %88, %98 in 0 : vector<32x128xf32>, vector<32x128xf32>, vector<32x128xf32> -> vector<96x128xf32>
    %100 = arith.truncf %99 : vector<96x128xf32> to vector<96x128xbf16>
    %c1_44 = arith.constant 1 : index
    %c0_45 = arith.constant 0 : index
    %c0_46 = arith.constant 0 : index
    %101 = vector.load %arg10[%c1_44, %c0_45, %c0_46] : memref<4x64x96xbf16, #tpu.memory_space<vmem>>, vector<1x64x96xbf16>
    %102 = vector.shape_cast %101 : vector<1x64x96xbf16> to vector<64x96xbf16>
    %cst_47 = arith.constant dense<0.000000e+00> : vector<64x128xf32>
    %103 = tpu.matmul %102, %100, %cst_47 {dimension_numbers = #tpu.dot_dimension_numbers<[1], [0], [0], [1], [0, 0, 1, 1], [], []>} : vector<64x96xbf16>, vector<96x128xbf16>, vector<64x128xf32> -> vector<64x128xf32>
    %c1_48 = arith.constant 1 : index
    %c0_49 = arith.constant 0 : index
    %c0_50 = arith.constant 0 : index
    %104 = vector.load %arg11[%c1_48, %c0_49, %c0_50] : memref<4x64x1xf32, #tpu.memory_space<vmem>>, vector<1x64x1xf32>
    %105 = vector.shape_cast %104 : vector<1x64x1xf32> to vector<64x1xf32>
    %106 = vector.broadcast %105 : vector<64x1xf32> to vector<64x128xf32>
    %107 = arith.addf %103, %106 : vector<64x128xf32>
    %c1_51 = arith.constant 1 : index
    %c0_52 = arith.constant 0 : index
    %c0_53 = arith.constant 0 : index
    %108 = vector.load %arg21[%c1_51, %c0_52, %c0_53] : memref<4x64x128xf32, #tpu.memory_space<vmem>>, vector<1x64x128xf32>
    %109 = vector.shape_cast %108 : vector<1x64x128xf32> to vector<64x128xf32>
    %110 = arith.addf %107, %109 : vector<64x128xf32>
    %111 = vector.extract_strided_slice %110 {offsets = [0, 0], sizes = [32, 128], strides = [1, 1]} : vector<64x128xf32> to vector<32x128xf32>
    %112 = arith.negf %111 : vector<32x128xf32>
    %113 = math.exp %112 : vector<32x128xf32>
    %cst_54 = arith.constant 1.000000e+00 : f32
    %114 = vector.broadcast %cst_54 : f32 to vector<32x128xf32>
    %115 = arith.addf %114, %113 : vector<32x128xf32>
    %116 = arith.divf %114, %115 : vector<32x128xf32>
    %117 = vector.extract_strided_slice %110 {offsets = [32, 0], sizes = [32, 128], strides = [1, 1]} : vector<64x128xf32> to vector<32x128xf32>
    %118 = math.tanh %117 : vector<32x128xf32>
    %119 = arith.mulf %116, %118 : vector<32x128xf32>
    %c1_55 = arith.constant 1 : index
    %c0_56 = arith.constant 0 : index
    %c0_57 = arith.constant 0 : index
    %120 = vector.load %arg12[%c1_55, %c0_56, %c0_57] : memref<4x64x32xbf16, #tpu.memory_space<vmem>>, vector<1x64x32xbf16>
    %121 = vector.shape_cast %120 : vector<1x64x32xbf16> to vector<64x32xbf16>
    %122 = arith.truncf %119 : vector<32x128xf32> to vector<32x128xbf16>
    %cst_58 = arith.constant dense<0.000000e+00> : vector<64x128xf32>
    %123 = tpu.matmul %121, %122, %cst_58 {dimension_numbers = #tpu.dot_dimension_numbers<[1], [0], [0], [1], [0, 0, 1, 1], [], []>} : vector<64x32xbf16>, vector<32x128xbf16>, vector<64x128xf32> -> vector<64x128xf32>
    %c1_59 = arith.constant 1 : index
    %c0_60 = arith.constant 0 : index
    %c0_61 = arith.constant 0 : index
    %124 = vector.load %arg13[%c1_59, %c0_60, %c0_61] : memref<4x64x1xf32, #tpu.memory_space<vmem>>, vector<1x64x1xf32>
    %125 = vector.shape_cast %124 : vector<1x64x1xf32> to vector<64x1xf32>
    %126 = vector.broadcast %125 : vector<64x1xf32> to vector<64x128xf32>
    %127 = arith.addf %123, %126 : vector<64x128xf32>
    %128 = vector.extract_strided_slice %127 {offsets = [0, 0], sizes = [32, 128], strides = [1, 1]} : vector<64x128xf32> to vector<32x128xf32>
    %129 = arith.addf %82, %128 : vector<32x128xf32>
    %cst_62 = arith.constant 0.707106769 : f32
    %130 = vector.broadcast %cst_62 : f32 to vector<32x128xf32>
    %131 = arith.mulf %129, %130 : vector<32x128xf32>
    %132 = vector.extract_strided_slice %127 {offsets = [32, 0], sizes = [32, 128], strides = [1, 1]} : vector<64x128xf32> to vector<32x128xf32>
    %133 = arith.addf %84, %132 : vector<32x128xf32>
    %c0_63 = arith.constant 0 : index
    %c2_64 = arith.constant 2 : index
    %c0_65 = arith.constant 0 : index
    %c0_66 = arith.constant 0 : index
    %134 = vector.load %arg4[%c0_63, %c2_64, %c0_65, %c0_66] : memref<1x4x32x1xf32, #tpu.memory_space<vmem>>, vector<1x1x32x1xf32>
    %135 = vector.shape_cast %134 : vector<1x1x32x1xf32> to vector<32x1xf32>
    %136 = vector.broadcast %135 : vector<32x1xf32> to vector<32x128xf32>
    %137 = arith.addf %131, %136 : vector<32x128xf32>
    %c1_i32_67 = arith.constant 1 : i32
    %138 = tpu.dynamic_rotate %137 by %c1_i32_67 dim 1 : vector<32x128xf32>, i32 -> vector<32x128xf32>
    %cst_68 = arith.constant 0.000000e+00 : f32
    %139 = vector.shape_cast %5 : vector<1x128xi1> to vector<1x128xi1>
    %140 = vector.broadcast %139 : vector<1x128xi1> to vector<32x128xi1>
    %141 = vector.broadcast %cst_68 : f32 to vector<32x128xf32>
    %142 = arith.select %140, %138, %141 : vector<32x128xi1>, vector<32x128xf32>
    %c127_i32_69 = arith.constant 127 : i32
    %143 = tpu.dynamic_rotate %137 by %c127_i32_69 dim 1 : vector<32x128xf32>, i32 -> vector<32x128xf32>
    %cst_70 = arith.constant 0.000000e+00 : f32
    %144 = vector.shape_cast %7 : vector<1x128xi1> to vector<1x128xi1>
    %145 = vector.broadcast %144 : vector<1x128xi1> to vector<32x128xi1>
    %146 = vector.broadcast %cst_70 : f32 to vector<32x128xf32>
    %147 = arith.select %145, %143, %146 : vector<32x128xi1>, vector<32x128xf32>
    %148 = tpu.concatenate %142, %137, %147 in 0 : vector<32x128xf32>, vector<32x128xf32>, vector<32x128xf32> -> vector<96x128xf32>
    %149 = arith.truncf %148 : vector<96x128xf32> to vector<96x128xbf16>
    %c2_71 = arith.constant 2 : index
    %c0_72 = arith.constant 0 : index
    %c0_73 = arith.constant 0 : index
    %150 = vector.load %arg10[%c2_71, %c0_72, %c0_73] : memref<4x64x96xbf16, #tpu.memory_space<vmem>>, vector<1x64x96xbf16>
    %151 = vector.shape_cast %150 : vector<1x64x96xbf16> to vector<64x96xbf16>
    %cst_74 = arith.constant dense<0.000000e+00> : vector<64x128xf32>
    %152 = tpu.matmul %151, %149, %cst_74 {dimension_numbers = #tpu.dot_dimension_numbers<[1], [0], [0], [1], [0, 0, 1, 1], [], []>} : vector<64x96xbf16>, vector<96x128xbf16>, vector<64x128xf32> -> vector<64x128xf32>
    %c2_75 = arith.constant 2 : index
    %c0_76 = arith.constant 0 : index
    %c0_77 = arith.constant 0 : index
    %153 = vector.load %arg11[%c2_75, %c0_76, %c0_77] : memref<4x64x1xf32, #tpu.memory_space<vmem>>, vector<1x64x1xf32>
    %154 = vector.shape_cast %153 : vector<1x64x1xf32> to vector<64x1xf32>
    %155 = vector.broadcast %154 : vector<64x1xf32> to vector<64x128xf32>
    %156 = arith.addf %152, %155 : vector<64x128xf32>
    %c2_78 = arith.constant 2 : index
    %c0_79 = arith.constant 0 : index
    %c0_80 = arith.constant 0 : index
    %157 = vector.load %arg21[%c2_78, %c0_79, %c0_80] : memref<4x64x128xf32, #tpu.memory_space<vmem>>, vector<1x64x128xf32>
    %158 = vector.shape_cast %157 : vector<1x64x128xf32> to vector<64x128xf32>
    %159 = arith.addf %156, %158 : vector<64x128xf32>
    %160 = vector.extract_strided_slice %159 {offsets = [0, 0], sizes = [32, 128], strides = [1, 1]} : vector<64x128xf32> to vector<32x128xf32>
    %161 = arith.negf %160 : vector<32x128xf32>
    %162 = math.exp %161 : vector<32x128xf32>
    %cst_81 = arith.constant 1.000000e+00 : f32
    %163 = vector.broadcast %cst_81 : f32 to vector<32x128xf32>
    %164 = arith.addf %163, %162 : vector<32x128xf32>
    %165 = arith.divf %163, %164 : vector<32x128xf32>
    %166 = vector.extract_strided_slice %159 {offsets = [32, 0], sizes = [32, 128], strides = [1, 1]} : vector<64x128xf32> to vector<32x128xf32>
    %167 = math.tanh %166 : vector<32x128xf32>
    %168 = arith.mulf %165, %167 : vector<32x128xf32>
    %c2_82 = arith.constant 2 : index
    %c0_83 = arith.constant 0 : index
    %c0_84 = arith.constant 0 : index
    %169 = vector.load %arg12[%c2_82, %c0_83, %c0_84] : memref<4x64x32xbf16, #tpu.memory_space<vmem>>, vector<1x64x32xbf16>
    %170 = vector.shape_cast %169 : vector<1x64x32xbf16> to vector<64x32xbf16>
    %171 = arith.truncf %168 : vector<32x128xf32> to vector<32x128xbf16>
    %cst_85 = arith.constant dense<0.000000e+00> : vector<64x128xf32>
    %172 = tpu.matmul %170, %171, %cst_85 {dimension_numbers = #tpu.dot_dimension_numbers<[1], [0], [0], [1], [0, 0, 1, 1], [], []>} : vector<64x32xbf16>, vector<32x128xbf16>, vector<64x128xf32> -> vector<64x128xf32>
    %c2_86 = arith.constant 2 : index
    %c0_87 = arith.constant 0 : index
    %c0_88 = arith.constant 0 : index
    %173 = vector.load %arg13[%c2_86, %c0_87, %c0_88] : memref<4x64x1xf32, #tpu.memory_space<vmem>>, vector<1x64x1xf32>
    %174 = vector.shape_cast %173 : vector<1x64x1xf32> to vector<64x1xf32>
    %175 = vector.broadcast %174 : vector<64x1xf32> to vector<64x128xf32>
    %176 = arith.addf %172, %175 : vector<64x128xf32>
    %177 = vector.extract_strided_slice %176 {offsets = [0, 0], sizes = [32, 128], strides = [1, 1]} : vector<64x128xf32> to vector<32x128xf32>
    %178 = arith.addf %131, %177 : vector<32x128xf32>
    %cst_89 = arith.constant 0.707106769 : f32
    %179 = vector.broadcast %cst_89 : f32 to vector<32x128xf32>
    %180 = arith.mulf %178, %179 : vector<32x128xf32>
    %181 = vector.extract_strided_slice %176 {offsets = [32, 0], sizes = [32, 128], strides = [1, 1]} : vector<64x128xf32> to vector<32x128xf32>
    %182 = arith.addf %133, %181 : vector<32x128xf32>
    %c0_90 = arith.constant 0 : index
    %c3_91 = arith.constant 3 : index
    %c0_92 = arith.constant 0 : index
    %c0_93 = arith.constant 0 : index
    %183 = vector.load %arg4[%c0_90, %c3_91, %c0_92, %c0_93] : memref<1x4x32x1xf32, #tpu.memory_space<vmem>>, vector<1x1x32x1xf32>
    %184 = vector.shape_cast %183 : vector<1x1x32x1xf32> to vector<32x1xf32>
    %185 = vector.broadcast %184 : vector<32x1xf32> to vector<32x128xf32>
    %186 = arith.addf %180, %185 : vector<32x128xf32>
    %c2_i32_94 = arith.constant 2 : i32
    %187 = tpu.dynamic_rotate %186 by %c2_i32_94 dim 1 : vector<32x128xf32>, i32 -> vector<32x128xf32>
    %cst_95 = arith.constant 0.000000e+00 : f32
    %188 = vector.shape_cast %9 : vector<1x128xi1> to vector<1x128xi1>
    %189 = vector.broadcast %188 : vector<1x128xi1> to vector<32x128xi1>
    %190 = vector.broadcast %cst_95 : f32 to vector<32x128xf32>
    %191 = arith.select %189, %187, %190 : vector<32x128xi1>, vector<32x128xf32>
    %c126_i32_96 = arith.constant 126 : i32
    %192 = tpu.dynamic_rotate %186 by %c126_i32_96 dim 1 : vector<32x128xf32>, i32 -> vector<32x128xf32>
    %cst_97 = arith.constant 0.000000e+00 : f32
    %193 = vector.shape_cast %11 : vector<1x128xi1> to vector<1x128xi1>
    %194 = vector.broadcast %193 : vector<1x128xi1> to vector<32x128xi1>
    %195 = vector.broadcast %cst_97 : f32 to vector<32x128xf32>
    %196 = arith.select %194, %192, %195 : vector<32x128xi1>, vector<32x128xf32>
    %197 = tpu.concatenate %191, %186, %196 in 0 : vector<32x128xf32>, vector<32x128xf32>, vector<32x128xf32> -> vector<96x128xf32>
    %198 = arith.truncf %197 : vector<96x128xf32> to vector<96x128xbf16>
    %c3_98 = arith.constant 3 : index
    %c0_99 = arith.constant 0 : index
    %c0_100 = arith.constant 0 : index
    %199 = vector.load %arg10[%c3_98, %c0_99, %c0_100] : memref<4x64x96xbf16, #tpu.memory_space<vmem>>, vector<1x64x96xbf16>
    %200 = vector.shape_cast %199 : vector<1x64x96xbf16> to vector<64x96xbf16>
    %cst_101 = arith.constant dense<0.000000e+00> : vector<64x128xf32>
    %201 = tpu.matmul %200, %198, %cst_101 {dimension_numbers = #tpu.dot_dimension_numbers<[1], [0], [0], [1], [0, 0, 1, 1], [], []>} : vector<64x96xbf16>, vector<96x128xbf16>, vector<64x128xf32> -> vector<64x128xf32>
    %c3_102 = arith.constant 3 : index
    %c0_103 = arith.constant 0 : index
    %c0_104 = arith.constant 0 : index
    %202 = vector.load %arg11[%c3_102, %c0_103, %c0_104] : memref<4x64x1xf32, #tpu.memory_space<vmem>>, vector<1x64x1xf32>
    %203 = vector.shape_cast %202 : vector<1x64x1xf32> to vector<64x1xf32>
    %204 = vector.broadcast %203 : vector<64x1xf32> to vector<64x128xf32>
    %205 = arith.addf %201, %204 : vector<64x128xf32>
    %c3_105 = arith.constant 3 : index
    %c0_106 = arith.constant 0 : index
    %c0_107 = arith.constant 0 : index
    %206 = vector.load %arg21[%c3_105, %c0_106, %c0_107] : memref<4x64x128xf32, #tpu.memory_space<vmem>>, vector<1x64x128xf32>
    %207 = vector.shape_cast %206 : vector<1x64x128xf32> to vector<64x128xf32>
    %208 = arith.addf %205, %207 : vector<64x128xf32>
    %209 = vector.extract_strided_slice %208 {offsets = [0, 0], sizes = [32, 128], strides = [1, 1]} : vector<64x128xf32> to vector<32x128xf32>
    %210 = arith.negf %209 : vector<32x128xf32>
    %211 = math.exp %210 : vector<32x128xf32>
    %cst_108 = arith.constant 1.000000e+00 : f32
    %212 = vector.broadcast %cst_108 : f32 to vector<32x128xf32>
    %213 = arith.addf %212, %211 : vector<32x128xf32>
    %214 = arith.divf %212, %213 : vector<32x128xf32>
    %215 = vector.extract_strided_slice %208 {offsets = [32, 0], sizes = [32, 128], strides = [1, 1]} : vector<64x128xf32> to vector<32x128xf32>
    %216 = math.tanh %215 : vector<32x128xf32>
    %217 = arith.mulf %214, %216 : vector<32x128xf32>
    %c3_109 = arith.constant 3 : index
    %c0_110 = arith.constant 0 : index
    %c0_111 = arith.constant 0 : index
    %218 = vector.load %arg12[%c3_109, %c0_110, %c0_111] : memref<4x64x32xbf16, #tpu.memory_space<vmem>>, vector<1x64x32xbf16>
    %219 = vector.shape_cast %218 : vector<1x64x32xbf16> to vector<64x32xbf16>
    %220 = arith.truncf %217 : vector<32x128xf32> to vector<32x128xbf16>
    %cst_112 = arith.constant dense<0.000000e+00> : vector<64x128xf32>
    %221 = tpu.matmul %219, %220, %cst_112 {dimension_numbers = #tpu.dot_dimension_numbers<[1], [0], [0], [1], [0, 0, 1, 1], [], []>} : vector<64x32xbf16>, vector<32x128xbf16>, vector<64x128xf32> -> vector<64x128xf32>
    %c3_113 = arith.constant 3 : index
    %c0_114 = arith.constant 0 : index
    %c0_115 = arith.constant 0 : index
    %222 = vector.load %arg13[%c3_113, %c0_114, %c0_115] : memref<4x64x1xf32, #tpu.memory_space<vmem>>, vector<1x64x1xf32>
    %223 = vector.shape_cast %222 : vector<1x64x1xf32> to vector<64x1xf32>
    %224 = vector.broadcast %223 : vector<64x1xf32> to vector<64x128xf32>
    %225 = arith.addf %221, %224 : vector<64x128xf32>
    %226 = vector.extract_strided_slice %225 {offsets = [32, 0], sizes = [32, 128], strides = [1, 1]} : vector<64x128xf32> to vector<32x128xf32>
    %227 = arith.addf %182, %226 : vector<32x128xf32>
    %c0_116 = arith.constant 0 : index
    %c0_117 = arith.constant 0 : index
    %228 = vector.load %arg14[%c0_116, %c0_117] : memref<32x32xbf16, #tpu.memory_space<vmem>>, vector<32x32xbf16>
    %cst_118 = arith.constant 5.000000e-01 : f32
    %229 = vector.broadcast %cst_118 : f32 to vector<32x128xf32>
    %230 = arith.mulf %227, %229 : vector<32x128xf32>
    %231 = arith.truncf %230 : vector<32x128xf32> to vector<32x128xbf16>
    %cst_119 = arith.constant dense<0.000000e+00> : vector<32x128xf32>
    %232 = tpu.matmul %228, %231, %cst_119 {dimension_numbers = #tpu.dot_dimension_numbers<[1], [0], [0], [1], [0, 0, 1, 1], [], []>} : vector<32x32xbf16>, vector<32x128xbf16>, vector<32x128xf32> -> vector<32x128xf32>
    %c0_120 = arith.constant 0 : index
    %c0_121 = arith.constant 0 : index
    %233 = vector.load %arg15[%c0_120, %c0_121] : memref<32x1xf32, #tpu.memory_space<vmem>>, vector<32x1xf32>
    %234 = vector.broadcast %233 : vector<32x1xf32> to vector<32x128xf32>
    %235 = arith.addf %232, %234 : vector<32x128xf32>
    %cst_122 = arith.constant 0.000000e+00 : f32
    %236 = vector.broadcast %cst_122 : f32 to vector<32x128xf32>
    %237 = arith.maximumf %235, %236 : vector<32x128xf32>
    %c0_123 = arith.constant 0 : index
    %c0_124 = arith.constant 0 : index
    %238 = vector.load %arg16[%c0_123, %c0_124] : memref<16x32xbf16, #tpu.memory_space<vmem>>, vector<16x32xbf16>
    %239 = arith.truncf %237 : vector<32x128xf32> to vector<32x128xbf16>
    %cst_125 = arith.constant dense<0.000000e+00> : vector<16x128xf32>
    %240 = tpu.matmul %238, %239, %cst_125 {dimension_numbers = #tpu.dot_dimension_numbers<[1], [0], [0], [1], [0, 0, 1, 1], [], []>} : vector<16x32xbf16>, vector<32x128xbf16>, vector<16x128xf32> -> vector<16x128xf32>
    %c0_126 = arith.constant 0 : index
    %c0_127 = arith.constant 0 : index
    %241 = vector.load %arg17[%c0_126, %c0_127] : memref<16x1xf32, #tpu.memory_space<vmem>>, vector<16x1xf32>
    %242 = vector.broadcast %241 : vector<16x1xf32> to vector<16x128xf32>
    %243 = arith.addf %240, %242 : vector<16x128xf32>
    %c0_i32_128 = arith.constant 0 : i32
    %244 = arith.cmpi eq, %arg0, %c0_i32_128 : i32
    %245 = arith.extui %244 : i1 to i32
    %c0_i32_129 = arith.constant 0 : i32
    %246 = arith.cmpi ne, %245, %c0_i32_129 : i32
    scf.if %246 {
      %cst_152 = arith.constant 1.000000e+00 : f32
      %280 = arith.addf %cst_152, %13 : f32
      %281 = vector.broadcast %280 : f32 to vector<16x128xf32>
      %282 = arith.mulf %281, %26 : vector<16x128xf32>
      %283 = vector.broadcast %15 : f32 to vector<16x128xf32>
      %284 = arith.mulf %283, %243 : vector<16x128xf32>
      %285 = arith.subf %282, %284 : vector<16x128xf32>
      %c0_153 = arith.constant 0 : index
      %c0_154 = arith.constant 0 : index
      %286 = vector.load %arg8[%c0_153, %c0_154] : memref<32x16xbf16, #tpu.memory_space<vmem>>, vector<32x16xbf16>
      %287 = arith.truncf %285 : vector<16x128xf32> to vector<16x128xbf16>
      %cst_155 = arith.constant dense<0.000000e+00> : vector<32x128xf32>
      %288 = tpu.matmul %286, %287, %cst_155 {dimension_numbers = #tpu.dot_dimension_numbers<[1], [0], [0], [1], [0, 0, 1, 1], [], []>} : vector<32x16xbf16>, vector<16x128xbf16>, vector<32x128xf32> -> vector<32x128xf32>
      %c0_156 = arith.constant 0 : index
      %c0_157 = arith.constant 0 : index
      %289 = vector.load %arg9[%c0_156, %c0_157] : memref<32x1xf32, #tpu.memory_space<vmem>>, vector<32x1xf32>
      %290 = vector.broadcast %289 : vector<32x1xf32> to vector<32x128xf32>
      %291 = arith.addf %288, %290 : vector<32x128xf32>
      %cst_158 = arith.constant 0.000000e+00 : f32
      %292 = vector.broadcast %cst_158 : f32 to vector<32x128xf32>
      %293 = arith.maximumf %291, %292 : vector<32x128xf32>
      %cst_159 = arith.constant 0.000000e+00 : f32
      %294 = vector.broadcast %cst_159 : f32 to vector<32x128xf32>
      %c0_160 = arith.constant 0 : index
      %c0_161 = arith.constant 0 : index
      %c0_162 = arith.constant 0 : index
      %295 = vector.load %arg5[%c0_160, %c0_161, %c0_162] : memref<4x32x1xf32, #tpu.memory_space<vmem>>, vector<1x32x1xf32>
      %296 = vector.shape_cast %295 : vector<1x32x1xf32> to vector<32x1xf32>
      %297 = vector.broadcast %296 : vector<32x1xf32> to vector<32x128xf32>
      %298 = arith.addf %293, %297 : vector<32x128xf32>
      %c1_i32_163 = arith.constant 1 : i32
      %299 = tpu.dynamic_rotate %298 by %c1_i32_163 dim 1 : vector<32x128xf32>, i32 -> vector<32x128xf32>
      %cst_164 = arith.constant 0.000000e+00 : f32
      %300 = vector.shape_cast %5 : vector<1x128xi1> to vector<1x128xi1>
      %301 = vector.broadcast %300 : vector<1x128xi1> to vector<32x128xi1>
      %302 = vector.broadcast %cst_164 : f32 to vector<32x128xf32>
      %303 = arith.select %301, %299, %302 : vector<32x128xi1>, vector<32x128xf32>
      %c127_i32_165 = arith.constant 127 : i32
      %304 = tpu.dynamic_rotate %298 by %c127_i32_165 dim 1 : vector<32x128xf32>, i32 -> vector<32x128xf32>
      %cst_166 = arith.constant 0.000000e+00 : f32
      %305 = vector.shape_cast %7 : vector<1x128xi1> to vector<1x128xi1>
      %306 = vector.broadcast %305 : vector<1x128xi1> to vector<32x128xi1>
      %307 = vector.broadcast %cst_166 : f32 to vector<32x128xf32>
      %308 = arith.select %306, %304, %307 : vector<32x128xi1>, vector<32x128xf32>
      %309 = tpu.concatenate %303, %298, %308 in 0 : vector<32x128xf32>, vector<32x128xf32>, vector<32x128xf32> -> vector<96x128xf32>
      %310 = arith.truncf %309 : vector<96x128xf32> to vector<96x128xbf16>
      %c0_167 = arith.constant 0 : index
      %c0_168 = arith.constant 0 : index
      %c0_169 = arith.constant 0 : index
      %311 = vector.load %arg10[%c0_167, %c0_168, %c0_169] : memref<4x64x96xbf16, #tpu.memory_space<vmem>>, vector<1x64x96xbf16>
      %312 = vector.shape_cast %311 : vector<1x64x96xbf16> to vector<64x96xbf16>
      %cst_170 = arith.constant dense<0.000000e+00> : vector<64x128xf32>
      %313 = tpu.matmul %312, %310, %cst_170 {dimension_numbers = #tpu.dot_dimension_numbers<[1], [0], [0], [1], [0, 0, 1, 1], [], []>} : vector<64x96xbf16>, vector<96x128xbf16>, vector<64x128xf32> -> vector<64x128xf32>
      %c0_171 = arith.constant 0 : index
      %c0_172 = arith.constant 0 : index
      %c0_173 = arith.constant 0 : index
      %314 = vector.load %arg11[%c0_171, %c0_172, %c0_173] : memref<4x64x1xf32, #tpu.memory_space<vmem>>, vector<1x64x1xf32>
      %315 = vector.shape_cast %314 : vector<1x64x1xf32> to vector<64x1xf32>
      %316 = vector.broadcast %315 : vector<64x1xf32> to vector<64x128xf32>
      %317 = arith.addf %313, %316 : vector<64x128xf32>
      %c0_174 = arith.constant 0 : index
      %c0_175 = arith.constant 0 : index
      %c0_176 = arith.constant 0 : index
      %318 = vector.load %arg21[%c0_174, %c0_175, %c0_176] : memref<4x64x128xf32, #tpu.memory_space<vmem>>, vector<1x64x128xf32>
      %319 = vector.shape_cast %318 : vector<1x64x128xf32> to vector<64x128xf32>
      %320 = arith.addf %317, %319 : vector<64x128xf32>
      %321 = vector.extract_strided_slice %320 {offsets = [0, 0], sizes = [32, 128], strides = [1, 1]} : vector<64x128xf32> to vector<32x128xf32>
      %322 = arith.negf %321 : vector<32x128xf32>
      %323 = math.exp %322 : vector<32x128xf32>
      %cst_177 = arith.constant 1.000000e+00 : f32
      %324 = vector.broadcast %cst_177 : f32 to vector<32x128xf32>
      %325 = arith.addf %324, %323 : vector<32x128xf32>
      %326 = arith.divf %324, %325 : vector<32x128xf32>
      %327 = vector.extract_strided_slice %320 {offsets = [32, 0], sizes = [32, 128], strides = [1, 1]} : vector<64x128xf32> to vector<32x128xf32>
      %328 = math.tanh %327 : vector<32x128xf32>
      %329 = arith.mulf %326, %328 : vector<32x128xf32>
      %c0_178 = arith.constant 0 : index
      %c0_179 = arith.constant 0 : index
      %c0_180 = arith.constant 0 : index
      %330 = vector.load %arg12[%c0_178, %c0_179, %c0_180] : memref<4x64x32xbf16, #tpu.memory_space<vmem>>, vector<1x64x32xbf16>
      %331 = vector.shape_cast %330 : vector<1x64x32xbf16> to vector<64x32xbf16>
      %332 = arith.truncf %329 : vector<32x128xf32> to vector<32x128xbf16>
      %cst_181 = arith.constant dense<0.000000e+00> : vector<64x128xf32>
      %333 = tpu.matmul %331, %332, %cst_181 {dimension_numbers = #tpu.dot_dimension_numbers<[1], [0], [0], [1], [0, 0, 1, 1], [], []>} : vector<64x32xbf16>, vector<32x128xbf16>, vector<64x128xf32> -> vector<64x128xf32>
      %c0_182 = arith.constant 0 : index
      %c0_183 = arith.constant 0 : index
      %c0_184 = arith.constant 0 : index
      %334 = vector.load %arg13[%c0_182, %c0_183, %c0_184] : memref<4x64x1xf32, #tpu.memory_space<vmem>>, vector<1x64x1xf32>
      %335 = vector.shape_cast %334 : vector<1x64x1xf32> to vector<64x1xf32>
      %336 = vector.broadcast %335 : vector<64x1xf32> to vector<64x128xf32>
      %337 = arith.addf %333, %336 : vector<64x128xf32>
      %338 = vector.extract_strided_slice %337 {offsets = [0, 0], sizes = [32, 128], strides = [1, 1]} : vector<64x128xf32> to vector<32x128xf32>
      %339 = arith.addf %293, %338 : vector<32x128xf32>
      %cst_185 = arith.constant 0.707106769 : f32
      %340 = vector.broadcast %cst_185 : f32 to vector<32x128xf32>
      %341 = arith.mulf %339, %340 : vector<32x128xf32>
      %342 = vector.extract_strided_slice %337 {offsets = [32, 0], sizes = [32, 128], strides = [1, 1]} : vector<64x128xf32> to vector<32x128xf32>
      %343 = arith.addf %294, %342 : vector<32x128xf32>
      %c1_186 = arith.constant 1 : index
      %c0_187 = arith.constant 0 : index
      %c0_188 = arith.constant 0 : index
      %344 = vector.load %arg5[%c1_186, %c0_187, %c0_188] : memref<4x32x1xf32, #tpu.memory_space<vmem>>, vector<1x32x1xf32>
      %345 = vector.shape_cast %344 : vector<1x32x1xf32> to vector<32x1xf32>
      %346 = vector.broadcast %345 : vector<32x1xf32> to vector<32x128xf32>
      %347 = arith.addf %341, %346 : vector<32x128xf32>
      %c2_i32_189 = arith.constant 2 : i32
      %348 = tpu.dynamic_rotate %347 by %c2_i32_189 dim 1 : vector<32x128xf32>, i32 -> vector<32x128xf32>
      %cst_190 = arith.constant 0.000000e+00 : f32
      %349 = vector.shape_cast %9 : vector<1x128xi1> to vector<1x128xi1>
      %350 = vector.broadcast %349 : vector<1x128xi1> to vector<32x128xi1>
      %351 = vector.broadcast %cst_190 : f32 to vector<32x128xf32>
      %352 = arith.select %350, %348, %351 : vector<32x128xi1>, vector<32x128xf32>
      %c126_i32_191 = arith.constant 126 : i32
      %353 = tpu.dynamic_rotate %347 by %c126_i32_191 dim 1 : vector<32x128xf32>, i32 -> vector<32x128xf32>
      %cst_192 = arith.constant 0.000000e+00 : f32
      %354 = vector.shape_cast %11 : vector<1x128xi1> to vector<1x128xi1>
      %355 = vector.broadcast %354 : vector<1x128xi1> to vector<32x128xi1>
      %356 = vector.broadcast %cst_192 : f32 to vector<32x128xf32>
      %357 = arith.select %355, %353, %356 : vector<32x128xi1>, vector<32x128xf32>
      %358 = tpu.concatenate %352, %347, %357 in 0 : vector<32x128xf32>, vector<32x128xf32>, vector<32x128xf32> -> vector<96x128xf32>
      %359 = arith.truncf %358 : vector<96x128xf32> to vector<96x128xbf16>
      %c1_193 = arith.constant 1 : index
      %c0_194 = arith.constant 0 : index
      %c0_195 = arith.constant 0 : index
      %360 = vector.load %arg10[%c1_193, %c0_194, %c0_195] : memref<4x64x96xbf16, #tpu.memory_space<vmem>>, vector<1x64x96xbf16>
      %361 = vector.shape_cast %360 : vector<1x64x96xbf16> to vector<64x96xbf16>
      %cst_196 = arith.constant dense<0.000000e+00> : vector<64x128xf32>
      %362 = tpu.matmul %361, %359, %cst_196 {dimension_numbers = #tpu.dot_dimension_numbers<[1], [0], [0], [1], [0, 0, 1, 1], [], []>} : vector<64x96xbf16>, vector<96x128xbf16>, vector<64x128xf32> -> vector<64x128xf32>
      %c1_197 = arith.constant 1 : index
      %c0_198 = arith.constant 0 : index
      %c0_199 = arith.constant 0 : index
      %363 = vector.load %arg11[%c1_197, %c0_198, %c0_199] : memref<4x64x1xf32, #tpu.memory_space<vmem>>, vector<1x64x1xf32>
      %364 = vector.shape_cast %363 : vector<1x64x1xf32> to vector<64x1xf32>
      %365 = vector.broadcast %364 : vector<64x1xf32> to vector<64x128xf32>
      %366 = arith.addf %362, %365 : vector<64x128xf32>
      %c1_200 = arith.constant 1 : index
      %c0_201 = arith.constant 0 : index
      %c0_202 = arith.constant 0 : index
      %367 = vector.load %arg21[%c1_200, %c0_201, %c0_202] : memref<4x64x128xf32, #tpu.memory_space<vmem>>, vector<1x64x128xf32>
      %368 = vector.shape_cast %367 : vector<1x64x128xf32> to vector<64x128xf32>
      %369 = arith.addf %366, %368 : vector<64x128xf32>
      %370 = vector.extract_strided_slice %369 {offsets = [0, 0], sizes = [32, 128], strides = [1, 1]} : vector<64x128xf32> to vector<32x128xf32>
      %371 = arith.negf %370 : vector<32x128xf32>
      %372 = math.exp %371 : vector<32x128xf32>
      %cst_203 = arith.constant 1.000000e+00 : f32
      %373 = vector.broadcast %cst_203 : f32 to vector<32x128xf32>
      %374 = arith.addf %373, %372 : vector<32x128xf32>
      %375 = arith.divf %373, %374 : vector<32x128xf32>
      %376 = vector.extract_strided_slice %369 {offsets = [32, 0], sizes = [32, 128], strides = [1, 1]} : vector<64x128xf32> to vector<32x128xf32>
      %377 = math.tanh %376 : vector<32x128xf32>
      %378 = arith.mulf %375, %377 : vector<32x128xf32>
      %c1_204 = arith.constant 1 : index
      %c0_205 = arith.constant 0 : index
      %c0_206 = arith.constant 0 : index
      %379 = vector.load %arg12[%c1_204, %c0_205, %c0_206] : memref<4x64x32xbf16, #tpu.memory_space<vmem>>, vector<1x64x32xbf16>
      %380 = vector.shape_cast %379 : vector<1x64x32xbf16> to vector<64x32xbf16>
      %381 = arith.truncf %378 : vector<32x128xf32> to vector<32x128xbf16>
      %cst_207 = arith.constant dense<0.000000e+00> : vector<64x128xf32>
      %382 = tpu.matmul %380, %381, %cst_207 {dimension_numbers = #tpu.dot_dimension_numbers<[1], [0], [0], [1], [0, 0, 1, 1], [], []>} : vector<64x32xbf16>, vector<32x128xbf16>, vector<64x128xf32> -> vector<64x128xf32>
      %c1_208 = arith.constant 1 : index
      %c0_209 = arith.constant 0 : index
      %c0_210 = arith.constant 0 : index
      %383 = vector.load %arg13[%c1_208, %c0_209, %c0_210] : memref<4x64x1xf32, #tpu.memory_space<vmem>>, vector<1x64x1xf32>
      %384 = vector.shape_cast %383 : vector<1x64x1xf32> to vector<64x1xf32>
      %385 = vector.broadcast %384 : vector<64x1xf32> to vector<64x128xf32>
      %386 = arith.addf %382, %385 : vector<64x128xf32>
      %387 = vector.extract_strided_slice %386 {offsets = [0, 0], sizes = [32, 128], strides = [1, 1]} : vector<64x128xf32> to vector<32x128xf32>
      %388 = arith.addf %341, %387 : vector<32x128xf32>
      %cst_211 = arith.constant 0.707106769 : f32
      %389 = vector.broadcast %cst_211 : f32 to vector<32x128xf32>
      %390 = arith.mulf %388, %389 : vector<32x128xf32>
      %391 = vector.extract_strided_slice %386 {offsets = [32, 0], sizes = [32, 128], strides = [1, 1]} : vector<64x128xf32> to vector<32x128xf32>
      %392 = arith.addf %343, %391 : vector<32x128xf32>
      %c2_212 = arith.constant 2 : index
      %c0_213 = arith.constant 0 : index
      %c0_214 = arith.constant 0 : index
      %393 = vector.load %arg5[%c2_212, %c0_213, %c0_214] : memref<4x32x1xf32, #tpu.memory_space<vmem>>, vector<1x32x1xf32>
      %394 = vector.shape_cast %393 : vector<1x32x1xf32> to vector<32x1xf32>
      %395 = vector.broadcast %394 : vector<32x1xf32> to vector<32x128xf32>
      %396 = arith.addf %390, %395 : vector<32x128xf32>
      %c1_i32_215 = arith.constant 1 : i32
      %397 = tpu.dynamic_rotate %396 by %c1_i32_215 dim 1 : vector<32x128xf32>, i32 -> vector<32x128xf32>
      %cst_216 = arith.constant 0.000000e+00 : f32
      %398 = vector.shape_cast %5 : vector<1x128xi1> to vector<1x128xi1>
      %399 = vector.broadcast %398 : vector<1x128xi1> to vector<32x128xi1>
      %400 = vector.broadcast %cst_216 : f32 to vector<32x128xf32>
      %401 = arith.select %399, %397, %400 : vector<32x128xi1>, vector<32x128xf32>
      %c127_i32_217 = arith.constant 127 : i32
      %402 = tpu.dynamic_rotate %396 by %c127_i32_217 dim 1 : vector<32x128xf32>, i32 -> vector<32x128xf32>
      %cst_218 = arith.constant 0.000000e+00 : f32
      %403 = vector.shape_cast %7 : vector<1x128xi1> to vector<1x128xi1>
      %404 = vector.broadcast %403 : vector<1x128xi1> to vector<32x128xi1>
      %405 = vector.broadcast %cst_218 : f32 to vector<32x128xf32>
      %406 = arith.select %404, %402, %405 : vector<32x128xi1>, vector<32x128xf32>
      %407 = tpu.concatenate %401, %396, %406 in 0 : vector<32x128xf32>, vector<32x128xf32>, vector<32x128xf32> -> vector<96x128xf32>
      %408 = arith.truncf %407 : vector<96x128xf32> to vector<96x128xbf16>
      %c2_219 = arith.constant 2 : index
      %c0_220 = arith.constant 0 : index
      %c0_221 = arith.constant 0 : index
      %409 = vector.load %arg10[%c2_219, %c0_220, %c0_221] : memref<4x64x96xbf16, #tpu.memory_space<vmem>>, vector<1x64x96xbf16>
      %410 = vector.shape_cast %409 : vector<1x64x96xbf16> to vector<64x96xbf16>
      %cst_222 = arith.constant dense<0.000000e+00> : vector<64x128xf32>
      %411 = tpu.matmul %410, %408, %cst_222 {dimension_numbers = #tpu.dot_dimension_numbers<[1], [0], [0], [1], [0, 0, 1, 1], [], []>} : vector<64x96xbf16>, vector<96x128xbf16>, vector<64x128xf32> -> vector<64x128xf32>
      %c2_223 = arith.constant 2 : index
      %c0_224 = arith.constant 0 : index
      %c0_225 = arith.constant 0 : index
      %412 = vector.load %arg11[%c2_223, %c0_224, %c0_225] : memref<4x64x1xf32, #tpu.memory_space<vmem>>, vector<1x64x1xf32>
      %413 = vector.shape_cast %412 : vector<1x64x1xf32> to vector<64x1xf32>
      %414 = vector.broadcast %413 : vector<64x1xf32> to vector<64x128xf32>
      %415 = arith.addf %411, %414 : vector<64x128xf32>
      %c2_226 = arith.constant 2 : index
      %c0_227 = arith.constant 0 : index
      %c0_228 = arith.constant 0 : index
      %416 = vector.load %arg21[%c2_226, %c0_227, %c0_228] : memref<4x64x128xf32, #tpu.memory_space<vmem>>, vector<1x64x128xf32>
      %417 = vector.shape_cast %416 : vector<1x64x128xf32> to vector<64x128xf32>
      %418 = arith.addf %415, %417 : vector<64x128xf32>
      %419 = vector.extract_strided_slice %418 {offsets = [0, 0], sizes = [32, 128], strides = [1, 1]} : vector<64x128xf32> to vector<32x128xf32>
      %420 = arith.negf %419 : vector<32x128xf32>
      %421 = math.exp %420 : vector<32x128xf32>
      %cst_229 = arith.constant 1.000000e+00 : f32
      %422 = vector.broadcast %cst_229 : f32 to vector<32x128xf32>
      %423 = arith.addf %422, %421 : vector<32x128xf32>
      %424 = arith.divf %422, %423 : vector<32x128xf32>
      %425 = vector.extract_strided_slice %418 {offsets = [32, 0], sizes = [32, 128], strides = [1, 1]} : vector<64x128xf32> to vector<32x128xf32>
      %426 = math.tanh %425 : vector<32x128xf32>
      %427 = arith.mulf %424, %426 : vector<32x128xf32>
      %c2_230 = arith.constant 2 : index
      %c0_231 = arith.constant 0 : index
      %c0_232 = arith.constant 0 : index
      %428 = vector.load %arg12[%c2_230, %c0_231, %c0_232] : memref<4x64x32xbf16, #tpu.memory_space<vmem>>, vector<1x64x32xbf16>
      %429 = vector.shape_cast %428 : vector<1x64x32xbf16> to vector<64x32xbf16>
      %430 = arith.truncf %427 : vector<32x128xf32> to vector<32x128xbf16>
      %cst_233 = arith.constant dense<0.000000e+00> : vector<64x128xf32>
      %431 = tpu.matmul %429, %430, %cst_233 {dimension_numbers = #tpu.dot_dimension_numbers<[1], [0], [0], [1], [0, 0, 1, 1], [], []>} : vector<64x32xbf16>, vector<32x128xbf16>, vector<64x128xf32> -> vector<64x128xf32>
      %c2_234 = arith.constant 2 : index
      %c0_235 = arith.constant 0 : index
      %c0_236 = arith.constant 0 : index
      %432 = vector.load %arg13[%c2_234, %c0_235, %c0_236] : memref<4x64x1xf32, #tpu.memory_space<vmem>>, vector<1x64x1xf32>
      %433 = vector.shape_cast %432 : vector<1x64x1xf32> to vector<64x1xf32>
      %434 = vector.broadcast %433 : vector<64x1xf32> to vector<64x128xf32>
      %435 = arith.addf %431, %434 : vector<64x128xf32>
      %436 = vector.extract_strided_slice %435 {offsets = [0, 0], sizes = [32, 128], strides = [1, 1]} : vector<64x128xf32> to vector<32x128xf32>
      %437 = arith.addf %390, %436 : vector<32x128xf32>
      %cst_237 = arith.constant 0.707106769 : f32
      %438 = vector.broadcast %cst_237 : f32 to vector<32x128xf32>
      %439 = arith.mulf %437, %438 : vector<32x128xf32>
      %440 = vector.extract_strided_slice %435 {offsets = [32, 0], sizes = [32, 128], strides = [1, 1]} : vector<64x128xf32> to vector<32x128xf32>
      %441 = arith.addf %392, %440 : vector<32x128xf32>
      %c3_238 = arith.constant 3 : index
      %c0_239 = arith.constant 0 : index
      %c0_240 = arith.constant 0 : index
      %442 = vector.load %arg5[%c3_238, %c0_239, %c0_240] : memref<4x32x1xf32, #tpu.memory_space<vmem>>, vector<1x32x1xf32>
      %443 = vector.shape_cast %442 : vector<1x32x1xf32> to vector<32x1xf32>
      %444 = vector.broadcast %443 : vector<32x1xf32> to vector<32x128xf32>
      %445 = arith.addf %439, %444 : vector<32x128xf32>
      %c2_i32_241 = arith.constant 2 : i32
      %446 = tpu.dynamic_rotate %445 by %c2_i32_241 dim 1 : vector<32x128xf32>, i32 -> vector<32x128xf32>
      %cst_242 = arith.constant 0.000000e+00 : f32
      %447 = vector.shape_cast %9 : vector<1x128xi1> to vector<1x128xi1>
      %448 = vector.broadcast %447 : vector<1x128xi1> to vector<32x128xi1>
      %449 = vector.broadcast %cst_242 : f32 to vector<32x128xf32>
      %450 = arith.select %448, %446, %449 : vector<32x128xi1>, vector<32x128xf32>
      %c126_i32_243 = arith.constant 126 : i32
      %451 = tpu.dynamic_rotate %445 by %c126_i32_243 dim 1 : vector<32x128xf32>, i32 -> vector<32x128xf32>
      %cst_244 = arith.constant 0.000000e+00 : f32
      %452 = vector.shape_cast %11 : vector<1x128xi1> to vector<1x128xi1>
      %453 = vector.broadcast %452 : vector<1x128xi1> to vector<32x128xi1>
      %454 = vector.broadcast %cst_244 : f32 to vector<32x128xf32>
      %455 = arith.select %453, %451, %454 : vector<32x128xi1>, vector<32x128xf32>
      %456 = tpu.concatenate %450, %445, %455 in 0 : vector<32x128xf32>, vector<32x128xf32>, vector<32x128xf32> -> vector<96x128xf32>
      %457 = arith.truncf %456 : vector<96x128xf32> to vector<96x128xbf16>
      %c3_245 = arith.constant 3 : index
      %c0_246 = arith.constant 0 : index
      %c0_247 = arith.constant 0 : index
      %458 = vector.load %arg10[%c3_245, %c0_246, %c0_247] : memref<4x64x96xbf16, #tpu.memory_space<vmem>>, vector<1x64x96xbf16>
      %459 = vector.shape_cast %458 : vector<1x64x96xbf16> to vector<64x96xbf16>
      %cst_248 = arith.constant dense<0.000000e+00> : vector<64x128xf32>
      %460 = tpu.matmul %459, %457, %cst_248 {dimension_numbers = #tpu.dot_dimension_numbers<[1], [0], [0], [1], [0, 0, 1, 1], [], []>} : vector<64x96xbf16>, vector<96x128xbf16>, vector<64x128xf32> -> vector<64x128xf32>
      %c3_249 = arith.constant 3 : index
      %c0_250 = arith.constant 0 : index
      %c0_251 = arith.constant 0 : index
      %461 = vector.load %arg11[%c3_249, %c0_250, %c0_251] : memref<4x64x1xf32, #tpu.memory_space<vmem>>, vector<1x64x1xf32>
      %462 = vector.shape_cast %461 : vector<1x64x1xf32> to vector<64x1xf32>
      %463 = vector.broadcast %462 : vector<64x1xf32> to vector<64x128xf32>
      %464 = arith.addf %460, %463 : vector<64x128xf32>
      %c3_252 = arith.constant 3 : index
      %c0_253 = arith.constant 0 : index
      %c0_254 = arith.constant 0 : index
      %465 = vector.load %arg21[%c3_252, %c0_253, %c0_254] : memref<4x64x128xf32, #tpu.memory_space<vmem>>, vector<1x64x128xf32>
      %466 = vector.shape_cast %465 : vector<1x64x128xf32> to vector<64x128xf32>
      %467 = arith.addf %464, %466 : vector<64x128xf32>
      %468 = vector.extract_strided_slice %467 {offsets = [0, 0], sizes = [32, 128], strides = [1, 1]} : vector<64x128xf32> to vector<32x128xf32>
      %469 = arith.negf %468 : vector<32x128xf32>
      %470 = math.exp %469 : vector<32x128xf32>
      %cst_255 = arith.constant 1.000000e+00 : f32
      %471 = vector.broadcast %cst_255 : f32 to vector<32x128xf32>
      %472 = arith.addf %471, %470 : vector<32x128xf32>
      %473 = arith.divf %471, %472 : vector<32x128xf32>
      %474 = vector.extract_strided_slice %467 {offsets = [32, 0], sizes = [32, 128], strides = [1, 1]} : vector<64x128xf32> to vector<32x128xf32>
      %475 = math.tanh %474 : vector<32x128xf32>
      %476 = arith.mulf %473, %475 : vector<32x128xf32>
      %c3_256 = arith.constant 3 : index
      %c0_257 = arith.constant 0 : index
      %c0_258 = arith.constant 0 : index
      %477 = vector.load %arg12[%c3_256, %c0_257, %c0_258] : memref<4x64x32xbf16, #tpu.memory_space<vmem>>, vector<1x64x32xbf16>
      %478 = vector.shape_cast %477 : vector<1x64x32xbf16> to vector<64x32xbf16>
      %479 = arith.truncf %476 : vector<32x128xf32> to vector<32x128xbf16>
      %cst_259 = arith.constant dense<0.000000e+00> : vector<64x128xf32>
      %480 = tpu.matmul %478, %479, %cst_259 {dimension_numbers = #tpu.dot_dimension_numbers<[1], [0], [0], [1], [0, 0, 1, 1], [], []>} : vector<64x32xbf16>, vector<32x128xbf16>, vector<64x128xf32> -> vector<64x128xf32>
      %c3_260 = arith.constant 3 : index
      %c0_261 = arith.constant 0 : index
      %c0_262 = arith.constant 0 : index
      %481 = vector.load %arg13[%c3_260, %c0_261, %c0_262] : memref<4x64x1xf32, #tpu.memory_space<vmem>>, vector<1x64x1xf32>
      %482 = vector.shape_cast %481 : vector<1x64x1xf32> to vector<64x1xf32>
      %483 = vector.broadcast %482 : vector<64x1xf32> to vector<64x128xf32>
      %484 = arith.addf %480, %483 : vector<64x128xf32>
      %485 = vector.extract_strided_slice %484 {offsets = [32, 0], sizes = [32, 128], strides = [1, 1]} : vector<64x128xf32> to vector<32x128xf32>
      %486 = arith.addf %441, %485 : vector<32x128xf32>
      %c0_263 = arith.constant 0 : index
      %c0_264 = arith.constant 0 : index
      %487 = vector.load %arg14[%c0_263, %c0_264] : memref<32x32xbf16, #tpu.memory_space<vmem>>, vector<32x32xbf16>
      %cst_265 = arith.constant 5.000000e-01 : f32
      %488 = vector.broadcast %cst_265 : f32 to vector<32x128xf32>
      %489 = arith.mulf %486, %488 : vector<32x128xf32>
      %490 = arith.truncf %489 : vector<32x128xf32> to vector<32x128xbf16>
      %cst_266 = arith.constant dense<0.000000e+00> : vector<32x128xf32>
      %491 = tpu.matmul %487, %490, %cst_266 {dimension_numbers = #tpu.dot_dimension_numbers<[1], [0], [0], [1], [0, 0, 1, 1], [], []>} : vector<32x32xbf16>, vector<32x128xbf16>, vector<32x128xf32> -> vector<32x128xf32>
      %c0_267 = arith.constant 0 : index
      %c0_268 = arith.constant 0 : index
      %492 = vector.load %arg15[%c0_267, %c0_268] : memref<32x1xf32, #tpu.memory_space<vmem>>, vector<32x1xf32>
      %493 = vector.broadcast %492 : vector<32x1xf32> to vector<32x128xf32>
      %494 = arith.addf %491, %493 : vector<32x128xf32>
      %cst_269 = arith.constant 0.000000e+00 : f32
      %495 = vector.broadcast %cst_269 : f32 to vector<32x128xf32>
      %496 = arith.maximumf %494, %495 : vector<32x128xf32>
      %c0_270 = arith.constant 0 : index
      %c0_271 = arith.constant 0 : index
      %497 = vector.load %arg16[%c0_270, %c0_271] : memref<16x32xbf16, #tpu.memory_space<vmem>>, vector<16x32xbf16>
      %498 = arith.truncf %496 : vector<32x128xf32> to vector<32x128xbf16>
      %cst_272 = arith.constant dense<0.000000e+00> : vector<16x128xf32>
      %499 = tpu.matmul %497, %498, %cst_272 {dimension_numbers = #tpu.dot_dimension_numbers<[1], [0], [0], [1], [0, 0, 1, 1], [], []>} : vector<16x32xbf16>, vector<32x128xbf16>, vector<16x128xf32> -> vector<16x128xf32>
      %c0_273 = arith.constant 0 : index
      %c0_274 = arith.constant 0 : index
      %500 = vector.load %arg17[%c0_273, %c0_274] : memref<16x1xf32, #tpu.memory_space<vmem>>, vector<16x1xf32>
      %501 = vector.broadcast %500 : vector<16x1xf32> to vector<16x128xf32>
      %502 = arith.addf %499, %501 : vector<16x128xf32>
      %c0_275 = arith.constant 0 : index
      %c0_276 = arith.constant 0 : index
      %503 = vector.load %arg26[%c0_275, %c0_276] : memref<16x128xf32, #tpu.memory_space<vmem>>, vector<16x128xf32>
      tpu.vector_store %arg26[%c0_275, %c0_276], %502 {strides = array<i32>} : memref<16x128xf32, #tpu.memory_space<vmem>>, vector<16x128xf32>,
    } else {
    }
    %247 = vector.broadcast %17 : f32 to vector<16x128xf32>
    %248 = arith.mulf %247, %243 : vector<16x128xf32>
    %c0_130 = arith.constant 0 : index
    %c0_131 = arith.constant 0 : index
    %249 = vector.load %arg26[%c0_130, %c0_131] : memref<16x128xf32, #tpu.memory_space<vmem>>, vector<16x128xf32>
    %250 = vector.broadcast %19 : f32 to vector<16x128xf32>
    %251 = arith.mulf %250, %249 : vector<16x128xf32>
    %252 = arith.addf %248, %251 : vector<16x128xf32>
    %c0_132 = arith.constant 0 : index
    %c0_133 = arith.constant 0 : index
    %253 = vector.load %arg23[%c0_132, %c0_133] : memref<16x128xf32, #tpu.memory_space<vmem>>, vector<16x128xf32>
    %254 = vector.broadcast %21 : f32 to vector<16x128xf32>
    %255 = arith.mulf %254, %253 : vector<16x128xf32>
    %256 = arith.addf %252, %255 : vector<16x128xf32>
    %c0_134 = arith.constant 0 : index
    %c0_135 = arith.constant 0 : index
    %257 = vector.load %arg24[%c0_134, %c0_135] : memref<16x128xf32, #tpu.memory_space<vmem>>, vector<16x128xf32>
    %258 = vector.broadcast %23 : f32 to vector<16x128xf32>
    %259 = arith.mulf %258, %257 : vector<16x128xf32>
    %260 = arith.addf %256, %259 : vector<16x128xf32>
    %c0_136 = arith.constant 0 : index
    %c0_137 = arith.constant 0 : index
    %261 = vector.load %arg25[%c0_136, %c0_137] : memref<16x128xf32, #tpu.memory_space<vmem>>, vector<16x128xf32>
    %262 = vector.broadcast %25 : f32 to vector<16x128xf32>
    %263 = arith.mulf %262, %261 : vector<16x128xf32>
    %264 = arith.addf %260, %263 : vector<16x128xf32>
    %c0_138 = arith.constant 0 : index
    %c0_139 = arith.constant 0 : index
    %265 = vector.load %arg24[%c0_138, %c0_139] : memref<16x128xf32, #tpu.memory_space<vmem>>, vector<16x128xf32>
    %c0_140 = arith.constant 0 : index
    %c0_141 = arith.constant 0 : index
    %266 = vector.load %arg25[%c0_140, %c0_141] : memref<16x128xf32, #tpu.memory_space<vmem>>, vector<16x128xf32>
    tpu.vector_store %arg25[%c0_140, %c0_141], %265 {strides = array<i32>} : memref<16x128xf32, #tpu.memory_space<vmem>>, vector<16x128xf32>,
    %c0_142 = arith.constant 0 : index
    %c0_143 = arith.constant 0 : index
    %267 = vector.load %arg23[%c0_142, %c0_143] : memref<16x128xf32, #tpu.memory_space<vmem>>, vector<16x128xf32>
    %c0_144 = arith.constant 0 : index
    %c0_145 = arith.constant 0 : index
    %268 = vector.load %arg24[%c0_144, %c0_145] : memref<16x128xf32, #tpu.memory_space<vmem>>, vector<16x128xf32>
    tpu.vector_store %arg24[%c0_144, %c0_145], %267 {strides = array<i32>} : memref<16x128xf32, #tpu.memory_space<vmem>>, vector<16x128xf32>,
    %c0_146 = arith.constant 0 : index
    %c0_147 = arith.constant 0 : index
    %269 = vector.load %arg23[%c0_146, %c0_147] : memref<16x128xf32, #tpu.memory_space<vmem>>, vector<16x128xf32>
    tpu.vector_store %arg23[%c0_146, %c0_147], %243 {strides = array<i32>} : memref<16x128xf32, #tpu.memory_space<vmem>>, vector<16x128xf32>,
    %cst_148 = arith.constant 1.000000e+00 : f32
    %270 = arith.addf %cst_148, %13 : f32
    %271 = vector.broadcast %270 : f32 to vector<16x128xf32>
    %272 = arith.mulf %271, %26 : vector<16x128xf32>
    %273 = vector.broadcast %15 : f32 to vector<16x128xf32>
    %274 = arith.mulf %273, %264 : vector<16x128xf32>
    %275 = arith.subf %272, %274 : vector<16x128xf32>
    %c0_149 = arith.constant 0 : index
    %c0_150 = arith.constant 0 : index
    %276 = vector.load %arg22[%c0_149, %c0_150] : memref<16x128xf32, #tpu.memory_space<vmem>>, vector<16x128xf32>
    tpu.vector_store %arg22[%c0_149, %c0_150], %275 {strides = array<i32>} : memref<16x128xf32, #tpu.memory_space<vmem>>, vector<16x128xf32>,
    %c3_i32 = arith.constant 3 : i32
    %277 = arith.cmpi eq, %arg0, %c3_i32 : i32
    %278 = arith.extui %277 : i1 to i32
    %c0_i32_151 = arith.constant 0 : i32
    %279 = arith.cmpi ne, %278, %c0_i32_151 : i32
    scf.if %279 {
      %c0_152 = arith.constant 0 : index
      %c0_153 = arith.constant 0 : index
      %280 = vector.load %arg18[%c0_152, %c0_153] : memref<16x1xf32, #tpu.memory_space<vmem>>, vector<16x1xf32>
      %281 = vector.broadcast %280 : vector<16x1xf32> to vector<16x128xf32>
      %282 = arith.mulf %275, %281 : vector<16x128xf32>
      %c0_154 = arith.constant 0 : index
      %c0_155 = arith.constant 0 : index
      %283 = vector.load %arg19[%c0_154, %c0_155] : memref<16x1xf32, #tpu.memory_space<vmem>>, vector<16x1xf32>
      %284 = vector.broadcast %283 : vector<16x1xf32> to vector<16x128xf32>
      %285 = arith.addf %282, %284 : vector<16x128xf32>
      %c0_156 = arith.constant 0 : index
      %c0_157 = arith.constant 0 : index
      %286 = vector.load %arg20[%c0_156, %c0_157] : memref<16x128xf32, #tpu.memory_space<vmem>>, vector<16x128xf32>
      tpu.vector_store %arg20[%c0_156, %c0_157], %285 {strides = array<i32>} : memref<16x128xf32, #tpu.memory_space<vmem>>, vector<16x128xf32>,
    } else {
    }
    return
  }
  func.func @transform_0(%arg0: i32) -> (i32, i32) {
    %c0_i32 = arith.constant 0 : i32
    %c0_i32_0 = arith.constant 0 : i32
    %c0_i32_1 = arith.constant 0 : i32
    return %c0_i32, %c0_i32_0 : i32, i32
  }
  func.func @transform_1(%arg0: i32) -> (i32, i32) {
    %c0_i32 = arith.constant 0 : i32
    %c0_i32_0 = arith.constant 0 : i32
    %c0_i32_1 = arith.constant 0 : i32
    return %c0_i32, %c0_i32_0 : i32, i32
  }
  func.func @transform_2(%arg0: i32) -> (i32, i32) {
    %c0_i32 = arith.constant 0 : i32
    %c0_i32_0 = arith.constant 0 : i32
    %c0_i32_1 = arith.constant 0 : i32
    return %c0_i32, %c0_i32_0 : i32, i32
  }
  func.func @transform_3(%arg0: i32) -> (i32, i32, i32, i32) {
    %c0_i32 = arith.constant 0 : i32
    %c0_i32_0 = arith.constant 0 : i32
    %c0_i32_1 = arith.constant 0 : i32
    %c0_i32_2 = arith.constant 0 : i32
    return %arg0, %c0_i32, %c0_i32_0, %c0_i32_1 : i32, i32, i32, i32
  }
  func.func @transform_4(%arg0: i32) -> (i32, i32, i32) {
    %c0_i32 = arith.constant 0 : i32
    %c0_i32_0 = arith.constant 0 : i32
    %c0_i32_1 = arith.constant 0 : i32
    %c0_i32_2 = arith.constant 0 : i32
    return %c0_i32, %c0_i32_0, %c0_i32_1 : i32, i32, i32
  }
  func.func @transform_5(%arg0: i32) -> (i32, i32, i32) {
    %c0_i32 = arith.constant 0 : i32
    %c0_i32_0 = arith.constant 0 : i32
    %c0_i32_1 = arith.constant 0 : i32
    %c0_i32_2 = arith.constant 0 : i32
    return %c0_i32, %c0_i32_0, %c0_i32_1 : i32, i32, i32
  }
  func.func @transform_6(%arg0: i32) -> (i32, i32, i32) {
    %c0_i32 = arith.constant 0 : i32
    %c0_i32_0 = arith.constant 0 : i32
    %c0_i32_1 = arith.constant 0 : i32
    %c0_i32_2 = arith.constant 0 : i32
    return %c0_i32, %c0_i32_0, %c0_i32_1 : i32, i32, i32
  }
  func.func @transform_7(%arg0: i32) -> (i32, i32) {
    %c0_i32 = arith.constant 0 : i32
    %c0_i32_0 = arith.constant 0 : i32
    %c0_i32_1 = arith.constant 0 : i32
    return %c0_i32, %c0_i32_0 : i32, i32
  }
  func.func @transform_8(%arg0: i32) -> (i32, i32) {
    %c0_i32 = arith.constant 0 : i32
    %c0_i32_0 = arith.constant 0 : i32
    %c0_i32_1 = arith.constant 0 : i32
    return %c0_i32, %c0_i32_0 : i32, i32
  }
  func.func @transform_9(%arg0: i32) -> (i32, i32, i32) {
    %c0_i32 = arith.constant 0 : i32
    %c0_i32_0 = arith.constant 0 : i32
    %c0_i32_1 = arith.constant 0 : i32
    %c0_i32_2 = arith.constant 0 : i32
    return %c0_i32, %c0_i32_0, %c0_i32_1 : i32, i32, i32
  }
  func.func @transform_10(%arg0: i32) -> (i32, i32, i32) {
    %c0_i32 = arith.constant 0 : i32
    %c0_i32_0 = arith.constant 0 : i32
    %c0_i32_1 = arith.constant 0 : i32
    %c0_i32_2 = arith.constant 0 : i32
    return %c0_i32, %c0_i32_0, %c0_i32_1 : i32, i32, i32
  }
  func.func @transform_11(%arg0: i32) -> (i32, i32, i32) {
    %c0_i32 = arith.constant 0 : i32
    %c0_i32_0 = arith.constant 0 : i32
    %c0_i32_1 = arith.constant 0 : i32
    %c0_i32_2 = arith.constant 0 : i32
    return %c0_i32, %c0_i32_0, %c0_i32_1 : i32, i32, i32
  }
  func.func @transform_12(%arg0: i32) -> (i32, i32, i32) {
    %c0_i32 = arith.constant 0 : i32
    %c0_i32_0 = arith.constant 0 : i32
    %c0_i32_1 = arith.constant 0 : i32
    %c0_i32_2 = arith.constant 0 : i32
    return %c0_i32, %c0_i32_0, %c0_i32_1 : i32, i32, i32
  }
  func.func @transform_13(%arg0: i32) -> (i32, i32) {
    %c0_i32 = arith.constant 0 : i32
    %c0_i32_0 = arith.constant 0 : i32
    %c0_i32_1 = arith.constant 0 : i32
    return %c0_i32, %c0_i32_0 : i32, i32
  }
  func.func @transform_14(%arg0: i32) -> (i32, i32) {
    %c0_i32 = arith.constant 0 : i32
    %c0_i32_0 = arith.constant 0 : i32
    %c0_i32_1 = arith.constant 0 : i32
    return %c0_i32, %c0_i32_0 : i32, i32
  }
  func.func @transform_15(%arg0: i32) -> (i32, i32) {
    %c0_i32 = arith.constant 0 : i32
    %c0_i32_0 = arith.constant 0 : i32
    %c0_i32_1 = arith.constant 0 : i32
    return %c0_i32, %c0_i32_0 : i32, i32
  }
  func.func @transform_16(%arg0: i32) -> (i32, i32) {
    %c0_i32 = arith.constant 0 : i32
    %c0_i32_0 = arith.constant 0 : i32
    %c0_i32_1 = arith.constant 0 : i32
    return %c0_i32, %c0_i32_0 : i32, i32
  }
  func.func @transform_17(%arg0: i32) -> (i32, i32) {
    %c0_i32 = arith.constant 0 : i32
    %c0_i32_0 = arith.constant 0 : i32
    %c0_i32_1 = arith.constant 0 : i32
    return %c0_i32, %c0_i32_0 : i32, i32
  }
  func.func @transform_18(%arg0: i32) -> (i32, i32) {
    %c0_i32 = arith.constant 0 : i32
    %c0_i32_0 = arith.constant 0 : i32
    %c0_i32_1 = arith.constant 0 : i32
    return %c0_i32, %c0_i32_0 : i32, i32
  }
  func.func @transform_19(%arg0: i32) -> (i32, i32) {
    %c0_i32 = arith.constant 0 : i32
    %c0_i32_0 = arith.constant 0 : i32
    %c0_i32_1 = arith.constant 0 : i32
    return %c0_i32, %c0_i32_0 : i32, i32
  }
}

</mosaic_0001>

<bundles_post_ra>
// kernel: tpu_custom_call.1
= control target key start
LH: loop header
LB: loop body
LE: loop exit
PB: predicated region body
PF: predicated region fallthrough
CT: control target
= control target key end

     0   :  { %s8518_s0 = inlined_call_operand.vmem [shape: f32[4,8], index: 0, kind: input, shape index: {}]   ;;  %s8519_s1 = inlined_call_operand.vmem [shape: f32[16,128], index: 1, kind: input, shape index: {}]   ;;  %s8520_s2 = inlined_call_operand.vmem [shape: f32[32,128], index: 2, kind: input, shape index: {}]   ;;  %s8521_s3 = inlined_call_operand.vmem [shape: f32[4,4,32,1], index: 3, kind: input, shape index: {}]   ;;  %s8522_s4 = inlined_call_operand.vmem [shape: f32[4,32,1], index: 4, kind: input, shape index: {}]   ;;  %s8523_s5 = inlined_call_operand.vmem [shape: bf16[4,64,32], index: 5, kind: input, shape index: {}]   ;;  %s8524_s6 = inlined_call_operand.vmem [shape: f32[4,64,1], index: 6, kind: input, shape index: {}]   ;;  %s8525_s7 = inlined_call_operand.vmem [shape: bf16[32,16], index: 7, kind: input, shape index: {}]   ;;  %s8526_s8 = inlined_call_operand.vmem [shape: f32[32,1], index: 8, kind: input, shape index: {}]   ;;  %s8527_s9 = inlined_call_operand.vmem [shape: bf16[4,64,96], index: 9, kind: input, shape index: {}]   ;;  %s8528_s10 = inlined_call_operand.vmem [shape: f32[4,64,1], index: 10, kind: input, shape index: {}]   ;;  %s8529_s11 = inlined_call_operand.vmem [shape: bf16[4,64,32], index: 11, kind: input, shape index: {}]   ;;  %s8530_s12 = inlined_call_operand.vmem [shape: f32[4,64,1], index: 12, kind: input, shape index: {}]   ;;  %s8531_s13 = inlined_call_operand.vmem [shape: bf16[32,32], index: 13, kind: input, shape index: {}]   ;;  %s8532_s14 = inlined_call_operand.vmem [shape: f32[32,1], index: 14, kind: input, shape index: {}]   ;;  %s8533_s15 = inlined_call_operand.vmem [shape: bf16[16,32], index: 15, kind: input, shape index: {}]   ;;  %s8534_s16 = inlined_call_operand.vmem [shape: f32[16,1], index: 16, kind: input, shape index: {}]   ;;  %s8535_s17 = inlined_call_operand.vmem [shape: f32[16,1], index: 17, kind: input, shape index: {}]   ;;  %s8536_s18 = inlined_call_operand.vmem [shape: f32[16,1], index: 18, kind: input, shape index: {}]   ;;  %s8537_s19 = inlined_call_operand.hbm [shape: f32[16,128], index: 19, kind: output, shape index: {}]  }
   0x1   :  { %8560 = sst [smem:[#allocation15_spill]] %s8518_s0 }
   0x2   :  { %8561 = sst [smem:[#allocation16_spill]] %s8519_s1 }
   0x3   :  { %8562 = sst [smem:[#allocation17_spill]] %s8520_s2 }
   0x4   :  { %8563 = sst [smem:[#allocation18_spill]] %s8521_s3 }
   0x5   :  { %8564 = sst [smem:[#allocation19_spill]] %s8523_s5 }
   0x6   :  { %8565 = sst [smem:[#allocation20_spill]] %s8524_s6 }
   0x7   :  { %8566 = sst [smem:[#allocation21_spill]] %s8535_s17 }
   0x8   :  { %8567 = sst [smem:[#allocation22_spill]] %s8537_s19 }
   0x9   :  { %24 = vsyncpa [#allocation10], 0 }
   0xa   :  { %25 = vsyncpa [#allocation9], 0  ;;  %s6453_s0 = smov 0  }
   0xb LB: > { %8568 = sst [smem:[#allocation14_spill]] %s6334_s0  ;;  %s6459_s30 = sadd.s32 4294967295, %s6334_s0   ;;  %s6334_s0 = sphi %s6453_s0, %s31_s0  }
   0xc   : > { %p4925_p0 = scmp.ge.s32.totalorder %s6334_s0, 1  ;;  %p461_p1 = scmp.lt.s32.totalorder %s6334_s0, 5 }
   0xd   : > { %p4926_p2 = scmp.ne.s32.totalorder %s6459_s30, 0  ;;  %s8569_s1 = sld [smem:[#allocation15_spill]] }
   0xe   : > { %p462_p3 = pnand %p4925_p0, %p461_p1  ;;  %p5885_p4 = scmp.eq.s32.totalorder %s6459_s30, 0 }
   0xf   : > { %s6336_s2 = smov [#allocation8]  }
  0x10   : > { %p5881_p5 = pneg %p462_p3  ;;  %545 = sbr.rel (%p462_p3) target bundleno = 5450 (0x154a), region = 96 }
  0x12   : > { %p5882_p6 = pnand %p5885_p4, %p5881_p5 }
  0x13   : > { %s473_s22 = sshll.u32 %s8569_s1, 4  ;;  %s474_s22 = int_to_ptr.vmem [resolvable:$true] %s473_s22 }
  0x14   : > { %5884 = dma.vmem_to_smem (!%p5882_p6), %s474_s22, 64, %s6336_s2, [#allocation10]  }
  0x15   : > { %6325 = dma.done.wait (%p5885_p4), [#allocation10], 64  }
  0x16   : > { %6327 = vsyncadd (%p5885_p4), [#allocation10], 4294967232 }
  0x17   : > { %552 = sfence }
  0x18   : > { %p598_p7 = scmp.lt.s32.totalorder %s6459_s30, 3  ;;  %s8570_s26 = sld [smem:[#allocation18_spill]] }
  0x19   : > { %s8571_s6 = sld [smem:[#allocation20_spill]] (!%p4926_p2) }
  0x1a   : > { %s599_s23 = scalar_select %p598_p7, %s6459_s30, 3 }
  0x1b   : > { %607 = sbr.rel (%p4926_p2) target bundleno = 237 (0xed), region = 104  ;;  %s8573_s29 = sld [smem:[#allocation17_spill]] (!%p4926_p2) }
  0x1c   : > { %s5782_s24 = sshll.u32 %s599_s23, 7  ;;  %s8574_s5 = sld [smem:[#allocation19_spill]] (!%p4926_p2) }
  0x1e   : > { %s6473_s27 = scalar_lea.vmem %s8570_s26, %s5782_s24  ;;  %s8572_s24 = sld [smem:[#allocation16_spill]] (!%p4926_p2) }
  0x20   : > { %v638_v0 = vld [vmem:[%s8571_s6 + $0x20] sm:$0xff]  ;;  %v636_v1 = vld [vmem:[%s8571_s6 + $0x10] sm:$0xff]  ;;  %v6337_v3 = vmov 0   ;;  %v6338_v6 = vmov 0.0   ;;  %v639_v13 = vld [vmem:[%s8571_s6 + $0x28] sm:$0xff]  ;;  %vm702_vm0 = vcmask 261120  }
  0x21   : > { %v634_v2 = vld [vmem:[%s8571_s6] sm:$0xff]  ;;  %5916 = vset.pattern.permute.xlu2 %v6337_v3  ;;  %5915 = vset.pattern.permute.xlu1 %v6337_v3  ;;  %612 = vst [vmem:[#allocation4] sm:$0xff] %v6338_v6  ;;  %v622_v7 = vld [vmem:[%s8573_s29 + $0x10] sm:$0xff]  ;;  %v623_v8 = vld [vmem:[%s8573_s29 + $0x18] sm:$0xff] }
  0x22   : > { %5914 = vset.pattern.permute.xlu0 %v6337_v3  ;;  %664 = vperm.xlu2 %5916, %v638_v0   ;;  %v620_v9 = vld [vmem:[%s8573_s29] sm:$0xff]  ;;  %v621_v10 = vld [vmem:[%s8573_s29 + $0x8] sm:$0xff]  ;;  %v625_v11 = vpack.c.bf16 %v623_v8, %v622_v7  ;;  %613 = vst [vmem:[#allocation4 + $0x8] sm:$0xff] %v6338_v6  ;;  %v637_v14 = vld [vmem:[%s8571_s6 + $0x18] sm:$0xff] }
  0x23   : > { %654 = vperm.xlu1 %5915, %v636_v1   ;;  %644 = vperm.xlu0 %5914, %v634_v2   ;;  %614 = vst [vmem:[#allocation5 + $0x8] sm:$0xff] %v6338_v6  ;;  %v624_v12 = vpack.c.bf16 %v621_v10, %v620_v9  ;;  %v5783_v15 = vld [vmem:[%s8574_s5] sm:$0xff]  ;;  %v635_v16 = vld [vmem:[%s8571_s6 + $0x8] sm:$0xff]  ;;  %v641_v21 = vld [vmem:[%s8571_s6 + $0x38] sm:$0xff] }
  0x24   : > { %v608_v4 = vld [vmem:[%s8572_s24] sm:$0xff]  ;;  %v609_v5 = vld [vmem:[%s8572_s24 + $0x8] sm:$0xff]  ;;  %721 = vmatpush.bf16.msra.mxu0 %v625_v11  ;;  %848 = vmatpush.bf16.msra.mxu1 %v625_v11  ;;  %615 = vst [vmem:[#allocation5] sm:$0xff] %v6338_v6  ;;  %v640_v22 = vld [vmem:[%s8571_s6 + $0x30] sm:$0xff] }
  0x25   : > { %610 = vst [vmem:[#allocation3] sm:$0xff] %v608_v4  ;;  %976 = vmatpush.bf16.msra.mxu2 %v625_v11  ;;  %1104 = vmatpush.bf16.msra.mxu3 %v625_v11  ;;  %v5787_v17 = vld [vmem:[%s8574_s5 + $0x20] sm:$0xff]  ;;  %v4964_v23 = vld [vmem:[%s8571_s6 + $0x58] sm:$0xff]  ;;  %v4963_v24 = vld [vmem:[%s8571_s6 + $0x50] sm:$0xff] }
  0x26   : > { %611 = vst [vmem:[#allocation3 + $0x8] sm:$0xff] %v609_v5  ;;  %v5791_v18 = vld [vmem:[%s8574_s5 + $0x40] sm:$0xff]  ;;  %v5784_v25 = vld [vmem:[%s8574_s5 + $0x8] sm:$0xff]  ;;  %v4967_v30 = vld [vmem:[%s8571_s6 + $0x70] sm:$0xff] }
  0x27   : > { %616 = vst [vmem:[#allocation6] sm:$0xff] %v6338_v6  ;;  %v5795_v19 = vld [vmem:[%s8574_s5 + $0x60] sm:$0xff]  ;;  %v4962_v26 = vld [vmem:[%s8571_s6 + $0x48] sm:$0xff]  ;;  %v5785_v35 = vld [vmem:[%s8574_s5 + $0x10] sm:$0xff] }
  0x28   : > { %617 = vst [vmem:[#allocation6 + $0x8] sm:$0xff] %v6338_v6  ;;  %722 = vmatpush.bf16.msra.mxu0 %v624_v12  ;;  %849 = vmatpush.bf16.msra.mxu1 %v624_v12  ;;  %v4961_v20 = vld [vmem:[%s8571_s6 + $0x40] sm:$0xff]  ;;  %v5788_v27 = vld [vmem:[%s8574_s5 + $0x28] sm:$0xff]  ;;  %v4968_v36 = vld [vmem:[%s8571_s6 + $0x78] sm:$0xff] }
  0x29   : > { %618 = vst [vmem:[#allocation7 + $0x8] sm:$0xff] %v6338_v6  ;;  %977 = vmatpush.bf16.msra.mxu2 %v624_v12  ;;  %1105 = vmatpush.bf16.msra.mxu3 %v624_v12  ;;  %v5792_v28 = vld [vmem:[%s8574_s5 + $0x48] sm:$0xff]  ;;  %v4965_v32 = vld [vmem:[%s8571_s6 + $0x60] sm:$0xff]  ;;  %v5789_v37 = vld [vmem:[%s8574_s5 + $0x30] sm:$0xff] }
  0x2a   : > { %619 = vst [vmem:[#allocation7] sm:$0xff] %v6338_v6  ;;  %669 = vperm.xlu2 %5916, %v639_v13   ;;  %v5796_v29 = vld [vmem:[%s8574_s5 + $0x68] sm:$0xff]  ;;  %v4997_v34 = vld [vmem:[%s8571_s6 + $0x80] sm:$0xff]  ;;  %v5793_v38 = vld [vmem:[%s8574_s5 + $0x50] sm:$0xff] }
  0x2b   : > { %659 = vperm.xlu1 %5915, %v637_v14   ;;  %649 = vperm.xlu0 %5914, %v635_v16   ;;  %v4966_v31 = vld [vmem:[%s8571_s6 + $0x68] sm:$0xff]  ;;  %v5797_v39 = vld [vmem:[%s8574_s5 + $0x70] sm:$0xff]  ;;  %v5001_v40 = vld [vmem:[%s8571_s6 + $0xa0] sm:$0xff] }
  0x2c   : > { %4949 = vmatmul.msk.bf16.vlgmr.msra.gmra.mxu0 %vm702_vm0, %v5783_v15  ;;  %4985 = vmatmul.msk.bf16.vlgmr.msra.gmra.mxu1 %vm702_vm0, %v5787_v17  ;;  %v4998_v33 = vld [vmem:[%s8571_s6 + $0x88] sm:$0xff]  ;;  %v5000_v41 = vld [vmem:[%s8571_s6 + $0x98] sm:$0xff]  ;;  %v4999_v42 = vld [vmem:[%s8571_s6 + $0x90] sm:$0xff] }
  0x2d   : > { %5021 = vmatmul.msk.bf16.vlgmr.msra.gmra.mxu2 %vm702_vm0, %v5791_v18  ;;  %5057 = vmatmul.msk.bf16.vlgmr.msra.gmra.mxu3 %vm702_vm0, %v5795_v19  ;;  %v5004_v43 = vld [vmem:[%s8571_s6 + $0xb8] sm:$0xff]  ;;  %v5003_v44 = vld [vmem:[%s8571_s6 + $0xb0] sm:$0xff]  ;;  %v5002_v46 = vld [vmem:[%s8571_s6 + $0xa8] sm:$0xff] }
  0x2e   : > { %v5786_v45 = vld [vmem:[%s8574_s5 + $0x18] sm:$0xff]  ;;  %v5035_v50 = vld [vmem:[%s8571_s6 + $0xd0] sm:$0xff]  ;;  %v5034_v51 = vld [vmem:[%s8571_s6 + $0xc8] sm:$0xff] }
  0x2f   : > { %v5790_v47 = vld [vmem:[%s8574_s5 + $0x38] sm:$0xff]  ;;  %v5033_v52 = vld [vmem:[%s8571_s6 + $0xc0] sm:$0xff]  ;;  %v5038_v53 = vld [vmem:[%s8571_s6 + $0xe8] sm:$0xff] }
  0x30   : > { %v5794_v48 = vld [vmem:[%s8574_s5 + $0x58] sm:$0xff]  ;;  %v5037_v54 = vld [vmem:[%s8571_s6 + $0xe0] sm:$0xff]  ;;  %v5039_v57 = vld [vmem:[%s8571_s6 + $0xf0] sm:$0xff] }
  0x31   : > { %v5798_v49 = vld [vmem:[%s8574_s5 + $0x78] sm:$0xff] }
  0x32   : > { %772 = vperm.xlu2 %5916, %v4961_v20   ;;  %v5036_v55 = vld [vmem:[%s8571_s6 + $0xd8] sm:$0xff] }
  0x33   : > { %679 = vperm.xlu1 %5915, %v641_v21   ;;  %674 = vperm.xlu0 %5914, %v640_v22   ;;  %v5040_v56 = vld [vmem:[%s8571_s6 + $0xf8] sm:$0xff] }
  0x3a   : > { %787 = vperm.xlu2 %5916, %v4964_v23  }
  0x3b   : > { %782 = vperm.xlu1 %5915, %v4963_v24   ;;  %777 = vperm.xlu0 %5914, %v4962_v26  }
  0x3c   : > { %4950 = vmatmul.msk.bf16.gmra.mxu0 %vm702_vm0, %v5784_v25  ;;  %4986 = vmatmul.msk.bf16.gmra.mxu1 %vm702_vm0, %v5788_v27 }
  0x3d   : > { %5022 = vmatmul.msk.bf16.gmra.mxu2 %vm702_vm0, %v5792_v28  ;;  %5058 = vmatmul.msk.bf16.gmra.mxu3 %vm702_vm0, %v5796_v29 }
  0x42   : > { %802 = vperm.xlu2 %5916, %v4967_v30  }
  0x43   : > { %797 = vperm.xlu1 %5915, %v4966_v31   ;;  %792 = vperm.xlu0 %5914, %v4965_v32  }
  0x4a   : > { %905 = vperm.xlu2 %5916, %v4998_v33  }
  0x4b   : > { %900 = vperm.xlu1 %5915, %v4997_v34   ;;  %807 = vperm.xlu0 %5914, %v4968_v36  }
  0x4c   : > { %4951 = vmatmul.msk.bf16.gmra.mxu0 %vm702_vm0, %v5785_v35  ;;  %4987 = vmatmul.msk.bf16.gmra.mxu1 %vm702_vm0, %v5789_v37 }
  0x4d   : > { %5023 = vmatmul.msk.bf16.gmra.mxu2 %vm702_vm0, %v5793_v38  ;;  %5059 = vmatmul.msk.bf16.gmra.mxu3 %vm702_vm0, %v5797_v39 }
  0x52   : > { %920 = vperm.xlu2 %5916, %v5001_v40  }
  0x53   : > { %915 = vperm.xlu1 %5915, %v5000_v41   ;;  %910 = vperm.xlu0 %5914, %v4999_v42  }
  0x5a   : > { %935 = vperm.xlu2 %5916, %v5004_v43  }
  0x5b   : > { %930 = vperm.xlu1 %5915, %v5003_v44   ;;  %925 = vperm.xlu0 %5914, %v5002_v46  }
  0x5c   : > { %4952 = vmatmul.msk.bf16.gmra.mxu0 %vm702_vm0, %v5786_v45  ;;  %4988 = vmatmul.msk.bf16.gmra.mxu1 %vm702_vm0, %v5790_v47 }
  0x5d   : > { %5024 = vmatmul.msk.bf16.gmra.mxu2 %vm702_vm0, %v5794_v48  ;;  %5060 = vmatmul.msk.bf16.gmra.mxu3 %vm702_vm0, %v5798_v49 }
  0x62   : > { %1038 = vperm.xlu2 %5916, %v5035_v50  }
  0x63   : > { %1033 = vperm.xlu1 %5915, %v5034_v51   ;;  %1028 = vperm.xlu0 %5914, %v5033_v52  }
  0x6a   : > { %1053 = vperm.xlu2 %5916, %v5038_v53  }
  0x6b   : > { %1048 = vperm.xlu1 %5915, %v5037_v54   ;;  %1043 = vperm.xlu0 %5914, %v5036_v55  }
  0x73   : > { %1063 = vperm.xlu1 %5915, %v5040_v56   ;;  %1058 = vperm.xlu0 %5914, %v5039_v57  }
  0x7c   : > { %v6655_v58 = vpop.permute.xlu2 %664 }
  0x84   : > { %v6657_v59 = vpop.permute.xlu2 %669 }
  0x8c   : > { %v773_v60 = vpop.permute.xlu2 %772 }
  0x94   : > { %v788_v61 = vpop.permute.xlu2 %787 }
  0x95   : > { %v655_v62 = vpop.permute.xlu1 %654  ;;  %v645_v63 = vpop.permute.xlu0 %644 }
  0x9c   : > { %v6659_v0 = vpop.permute.xlu2 %802 }
  0x9d   : > { %v660_v1 = vpop.permute.xlu1 %659  ;;  %v650_v2 = vpop.permute.xlu0 %649 }
  0xa4   : > { %v906_v3 = vpop.permute.xlu2 %905 }
  0xa5   : > { %v6661_v4 = vpop.permute.xlu1 %679  ;;  %v6663_v5 = vpop.permute.xlu0 %674 }
  0xa9   : > { %v724_v6 = vpop.f32.mrf.mxu0  ;;  %v851_v8 = vpop.f32.mrf.mxu1 }
  0xaa   : > { %v725_v7 = vadd.f32 %v724_v6, %v645_v63  ;;  %v852_v9 = vadd.f32 %v851_v8, %v773_v60 }
  0xac   : > { %744 = vst [vmem:[#allocation2 + $0xb0] sm:$0xff] %v725_v7  ;;  %v921_v10 = vpop.permute.xlu2 %920 }
  0xad   : > { %872 = vst [vmem:[#allocation2 + $0x80] sm:$0xff] %v852_v9  ;;  %v783_v11 = vpop.permute.xlu1 %782  ;;  %v778_v12 = vpop.permute.xlu0 %777 }
  0xb0   : > { %v979_v13 = vpop.f32.mrf.mxu2  ;;  %v6665_v14 = vpop.f32.mrf.mxu3 }
  0xb1   : > { %v726_v15 = vpop.f32.mrf.mxu0  ;;  %v853_v17 = vpop.f32.mrf.mxu1 }
  0xb2   : > { %v727_v16 = vadd.f32 %v726_v15, %v650_v2  ;;  %v854_v18 = vadd.f32 %v853_v17, %v778_v12 }
  0xb4   : > { %745 = vst [vmem:[#allocation2] sm:$0xff] %v727_v16  ;;  %v6667_v19 = vpop.permute.xlu2 %935 }
  0xb5   : > { %873 = vst [vmem:[#allocation2 + $0x88] sm:$0xff] %v854_v18  ;;  %v798_v20 = vpop.permute.xlu1 %797  ;;  %v793_v21 = vpop.permute.xlu0 %792 }
  0xb8   : > { %v981_v22 = vpop.f32.mrf.mxu2  ;;  %v1109_v24 = vpop.f32.mrf.mxu3 }
  0xb9   : > { %v982_v23 = vadd.f32 %v981_v22, %v906_v3  ;;  %v729_v25 = vpop.f32.mrf.mxu0  ;;  %v856_v27 = vpop.f32.mrf.mxu1 }
  0xba   : > { %v730_v26 = vadd.f32 %v729_v25, %v655_v62  ;;  %v857_v28 = vadd.f32 %v856_v27, %v783_v11 }
  0xbb   : > { %1001 = vst [vmem:[#allocation2 + $0x58] sm:$0xff] %v982_v23 }
  0xbc   : > { %746 = vst [vmem:[#allocation2 + $0xd8] sm:$0xff] %v730_v26  ;;  %v1039_v32 = vpop.permute.xlu2 %1038 }
  0xbd   : > { %874 = vst [vmem:[#allocation2 + $0xe8] sm:$0xff] %v857_v28  ;;  %v901_v29 = vpop.permute.xlu1 %900  ;;  %v6669_v31 = vpop.permute.xlu0 %807 }
  0xbe   : > { %v980_v30 = vadd.f32 %v979_v13, %v901_v29 }
  0xc0   : > { %1000 = vst [vmem:[#allocation2 + $0x38] sm:$0xff] %v980_v30  ;;  %v984_v33 = vpop.f32.mrf.mxu2  ;;  %v1112_v34 = vpop.f32.mrf.mxu3 }
  0xc1   : > { %v731_v35 = vpop.f32.mrf.mxu0  ;;  %v1113_v36 = vadd.f32 %v1112_v34, %v1039_v32  ;;  %v858_v38 = vpop.f32.mrf.mxu1 }
  0xc2   : > { %v732_v37 = vadd.f32 %v731_v35, %v660_v1  ;;  %v859_v39 = vadd.f32 %v858_v38, %v788_v61 }
  0xc3   : > { %1130 = vst [vmem:[#allocation2 + $0x10] sm:$0xff] %v1113_v36 }
  0xc4   : > { %747 = vst [vmem:[#allocation2 + $0x18] sm:$0xff] %v732_v37  ;;  %v1054_v1 = vpop.permute.xlu2 %1053 }
  0xc5   : > { %v916_v40 = vpop.permute.xlu1 %915  ;;  %875 = vst [vmem:[#allocation2 + $0xb8] sm:$0xff] %v859_v39  ;;  %v911_v41 = vpop.permute.xlu0 %910 }
  0xc6   : > { %v985_v42 = vadd.f32 %v984_v33, %v911_v41 }
  0xc8   : > { %v986_v43 = vpop.f32.mrf.mxu2  ;;  %1002 = vst [vmem:[#allocation2 + $0x40] sm:$0xff] %v985_v42  ;;  %v1114_v45 = vpop.f32.mrf.mxu3 }
  0xc9   : > { %v987_v44 = vadd.f32 %v986_v43, %v916_v40  ;;  %v734_v46 = vpop.f32.mrf.mxu0  ;;  %v861_v48 = vpop.f32.mrf.mxu1 }
  0xca   : > { %v735_v47 = vadd.f32 %v734_v46, %v6655_v58  ;;  %v862_v49 = vadd.f32 %v861_v48, %v793_v21 }
  0xcb   : > { %1003 = vst [vmem:[#allocation2 + $0xc8] sm:$0xff] %v987_v44 }
  0xcc   : > { %748 = vst [vmem:[#allocation2 + $0x50] sm:$0xff] %v735_v47 }
  0xcd   : > { %876 = vst [vmem:[#allocation2 + $0x60] sm:$0xff] %v862_v49  ;;  %v931_v50 = vpop.permute.xlu1 %930  ;;  %v926_v51 = vpop.permute.xlu0 %925 }
  0xd0   : > { %v989_v52 = vpop.f32.mrf.mxu2  ;;  %v1117_v54 = vpop.f32.mrf.mxu3 }
  0xd1   : > { %v990_v53 = vadd.f32 %v989_v52, %v921_v10  ;;  %v736_v55 = vpop.f32.mrf.mxu0  ;;  %v863_v57 = vpop.f32.mrf.mxu1 }
  0xd2   : > { %v737_v56 = vadd.f32 %v736_v55, %v6657_v59  ;;  %v864_v60 = vadd.f32 %v863_v57, %v798_v20 }
  0xd3   : > { %1004 = vst [vmem:[#allocation2 + $0xe0] sm:$0xff] %v990_v53 }
  0xd4   : > { %749 = vst [vmem:[#allocation2 + $0x68] sm:$0xff] %v737_v56 }
  0xd5   : > { %877 = vst [vmem:[#allocation2 + $0xf0] sm:$0xff] %v864_v60  ;;  %v1034_v61 = vpop.permute.xlu1 %1033  ;;  %v1029_v62 = vpop.permute.xlu0 %1028 }
  0xd6   : > { %v1110_v58 = vadd.f32 %v1109_v24, %v1034_v61  ;;  %v1108_v63 = vadd.f32 %v6665_v14, %v1029_v62 }
  0xd8   : > { %1129 = vst [vmem:[#allocation2 + $0xd0] sm:$0xff] %v1110_v58  ;;  %v991_v2 = vpop.f32.mrf.mxu2  ;;  %v1119_v6 = vpop.f32.mrf.mxu3 }
  0xd9   : > { %1128 = vst [vmem:[#allocation2 + $0xa8] sm:$0xff] %v1108_v63  ;;  %v992_v3 = vadd.f32 %v991_v2, %v926_v51  ;;  %v739_v7 = vpop.f32.mrf.mxu0  ;;  %v1120_v8 = vadd.f32 %v1119_v6, %v1054_v1  ;;  %v866_v9 = vpop.f32.mrf.mxu1 }
  0xda   : > { %v740_v59 = vadd.f32 %v739_v7, %v6663_v5  ;;  %v867_v10 = vadd.f32 %v866_v9, %v6659_v0 }
  0xdb   : > { %1005 = vst [vmem:[#allocation2 + $0x90] sm:$0xff] %v992_v3 }
  0xdc   : > { %1133 = vst [vmem:[#allocation2 + $0xf8] sm:$0xff] %v1120_v8 }
  0xdd   : > { %750 = vst [vmem:[#allocation2 + $0x30] sm:$0xff] %v740_v59  ;;  %v1049_v11 = vpop.permute.xlu1 %1048  ;;  %v1044_v13 = vpop.permute.xlu0 %1043 }
  0xde   : > { %878 = vst [vmem:[#allocation2 + $0x8] sm:$0xff] %v867_v10  ;;  %v1118_v12 = vadd.f32 %v1117_v54, %v1049_v11  ;;  %v1115_v14 = vadd.f32 %v1114_v45, %v1044_v13 }
  0xe0   : > { %1132 = vst [vmem:[#allocation2 + $0xa0] sm:$0xff] %v1118_v12  ;;  %v994_v15 = vpop.f32.mrf.mxu2  ;;  %v1122_v17 = vpop.f32.mrf.mxu3 }
  0xe1   : > { %1131 = vst [vmem:[#allocation2 + $0x28] sm:$0xff] %v1115_v14  ;;  %v995_v16 = vadd.f32 %v994_v15, %v931_v50  ;;  %v741_v18 = vpop.f32.mrf.mxu0  ;;  %v868_v5 = vpop.f32.mrf.mxu1 }
  0xe2   : > { %v742_v20 = vadd.f32 %v741_v18, %v6661_v4  ;;  %v869_v21 = vadd.f32 %v868_v5, %v6669_v31 }
  0xe3   : > { %1006 = vst [vmem:[#allocation2 + $0x70] sm:$0xff] %v995_v16 }
  0xe4   : > { %751 = vst [vmem:[#allocation2 + $0x48] sm:$0xff] %v742_v20 }
  0xe5   : > { %879 = vst [vmem:[#allocation2 + $0x78] sm:$0xff] %v869_v21  ;;  %v1059_v0 = vpop.permute.xlu0 %1058  ;;  %v1064_v22 = vpop.permute.xlu1 %1063 }
  0xe6   : > { %v1123_v23 = vadd.f32 %v1122_v17, %v1059_v0 }
  0xe8   : > { %v996_v24 = vpop.f32.mrf.mxu2  ;;  %1134 = vst [vmem:[#allocation2 + $0x20] sm:$0xff] %v1123_v23  ;;  %v1124_v26 = vpop.f32.mrf.mxu3 }
  0xe9   : > { %v997_v25 = vadd.f32 %v996_v24, %v6667_v19  ;;  %v1125_v27 = vadd.f32 %v1124_v26, %v1064_v22 }
  0xeb   : > { %1007 = vst [vmem:[#allocation2 + $0xc0] sm:$0xff] %v997_v25 }
  0xec   : > { %1135 = vst [vmem:[#allocation2 + $0x98] sm:$0xff] %v1125_v27 }
  0xed PF: > { %v1165_v4 = vld [vmem:[%s8526_s8 + $0x10] sm:$0xff]  ;;  %v1163_v28 = vld [vmem:[%s8526_s8] sm:$0xff]  ;;  %s5061_s26 = sshll.u32 %s6459_s30, 7  ;;  %v6339_v30 = vmov 0   ;;  %v6690_v19 = vld [vmem:[#allocation3 + $0x8] sm:$0xff]  ;;  %vm1197_vm1 = vcmask 130048   ;;  %v1136_v22 = vlaneseq }
  0xee   : > { %v6686_v29 = vld [vmem:[#allocation3] sm:$0xff]  ;;  %5918 = vset.pattern.permute.xlu1 %v6339_v30  ;;  %5917 = vset.pattern.permute.xlu0 %v6339_v30  ;;  %s6688_s28 = sld [smem:[#allocation8 + %s5061_s26]]  ;;  %s1144_s24 = sadd.s32 1, %s5061_s26  ;;  %v1229_v33 = vld [vmem:[%s6473_s27 + $0x10] sm:$0xff]  ;;  %v1166_v34 = vld [vmem:[%s8526_s8 + $0x18] sm:$0xff]  ;;  %vm1365_vm6 = vcmask 785408  }
  0xef   : > { %1179 = vperm.xlu0 %5917, %v1165_v4   ;;  %1169 = vperm.xlu1 %5918, %v1163_v28   ;;  %s6692_s29 = sld [smem:[#allocation8 + %s1144_s24]]  ;;  %s1146_s20 = sadd.s32 2, %s5061_s26  ;;  %v1162_v31 = vpack.c.bf16 %v6690_v19, %v6686_v29  ;;  %v5799_v32 = vld [vmem:[%s8525_s7] sm:$0xff]  ;;  %v1164_v35 = vld [vmem:[%s8526_s8 + $0x8] sm:$0xff]  ;;  %v1230_v36 = vld [vmem:[%s6473_s27 + $0x18] sm:$0xff]  ;;  %v6796_v23 = vand.u32 127, %v1136_v22 }
  0xf0   : > { %s6696_s21 = sld [smem:[#allocation8 + %s1146_s20]]  ;;  %s1148_s1 = sadd.s32 3, %s5061_s26  ;;  %5919 = vset.pattern.permute.xlu2 %v6339_v30  ;;  %v1227_v37 = vld [vmem:[%s6473_s27] sm:$0xff]  ;;  %v1228_v38 = vld [vmem:[%s6473_s27 + $0x8] sm:$0xff]  ;;  %v1299_v61 = vld [vmem:[%s8528_s10 + $0x10] sm:$0xff] }
  0xf1   : > { %s6702_s23 = sld [smem:[#allocation8 + %s1148_s1]]  ;;  %s1150_s25 = sadd.s32 4, %s5061_s26  ;;  %1211 = vmatpush.bf16.msra.mxu0 %v1162_v31  ;;  %1243 = vperm.xlu2 %5919, %v1229_v33   ;;  %v5800_v39 = vld [vmem:[%s8525_s7 + $0x8] sm:$0xff]  ;;  %v1300_v9 = vld [vmem:[%s8528_s10 + $0x18] sm:$0xff]  ;;  %v1301_v10 = vld [vmem:[%s8528_s10 + $0x20] sm:$0xff]  ;;  %vm1139_vm2 = vcmp.lt.s32.totalorder %v6796_v23, 127 }
  0xf2   : > { %s6704_s3 = sld [smem:[#allocation8 + %s1150_s25]]  ;;  %s1152_s24 = sadd.s32 5, %s5061_s26  ;;  %v1298_v8 = vld [vmem:[%s8528_s10 + $0x8] sm:$0xff]  ;;  %v1303_v11 = vld [vmem:[%s8528_s10 + $0x30] sm:$0xff]  ;;  %v1297_v12 = vld [vmem:[%s8528_s10] sm:$0xff]  ;;  %vm1138_vm4 = vcmp.ge.s32.totalorder %v6796_v23, 1 }
  0xf3   : > { %s6706_s20 = sld [smem:[#allocation8 + %s1152_s24]]  ;;  %s1154_s5 = sadd.s32 6, %s5061_s26  ;;  %v1520_v13 = vld [vmem:[%s8530_s12 + $0x18] sm:$0xff]  ;;  %v1302_v14 = vld [vmem:[%s8528_s10 + $0x28] sm:$0xff]  ;;  %v5130_v16 = vld [vmem:[%s6473_s27 + $0x30] sm:$0xff] }
  0xf4   : > { %s6708_s6 = sld [smem:[#allocation8 + %s1154_s5]]  ;;  %5070 = vmatmul.msk.bf16.vlgmr.msra.gmra.mxu0 %vm1197_vm1, %v5799_v32  ;;  %s8543_s0 = smov 127   ;;  %v1304_v15 = vld [vmem:[%s8528_s10 + $0x38] sm:$0xff]  ;;  %v1517_v17 = vld [vmem:[%s8530_s12] sm:$0xff]  ;;  %v1519_v18 = vld [vmem:[%s8530_s12 + $0x10] sm:$0xff] }
  0xf5   : > { %s8546_s1 = smov 1   ;;  %v5129_v20 = vld [vmem:[%s6473_s27 + $0x28] sm:$0xff]  ;;  %v5131_v5 = vld [vmem:[%s6473_s27 + $0x38] sm:$0xff]  ;;  %v5128_v0 = vld [vmem:[%s6473_s27 + $0x20] sm:$0xff]  ;;  %s8548_s25 = smov 126  }
  0xf6   : > { %v1518_v21 = vld [vmem:[%s8530_s12 + $0x8] sm:$0xff]  ;;  %vm6799_vm3 = vmpackc.low %vm1139_vm2, %vm1139_vm2  ;;  %s8550_s22 = smov 2   ;;  %s8595_s5 = smov 127  }
  0xf7   : > { %1184 = vperm.xlu0 %5917, %v1166_v34   ;;  %1174 = vperm.xlu1 %5918, %v1164_v35   ;;  %vm6811_vm5 = vmpackc.low %vm1138_vm4, %vm1138_vm4  ;;  %s8596_s17 = smov 1   ;;  %s2977_s2 = sadd.f32 (!%p4926_p2), 1.0, %s6688_s28 }
  0xf8   : > { %s8552_s19 = smov (!%p4926_p2), 127   ;;  %s8631_s26 = smov (!%p4926_p2), 126  }
  0xf9   : > { %1248 = vperm.xlu2 %5919, %v1230_v36   ;;  %s8632_s24 = smov (!%p4926_p2), 2  }
  0xff   : > { %1233 = vperm.xlu0 %5917, %v1227_v37   ;;  %1238 = vperm.xlu1 %5918, %v1228_v38  }
 0x104   : > { %5071 = vmatmul.msk.bf16.gmra.mxu0 %vm1197_vm1, %v5800_v39 }
 0x14b   : > { %v1244_v57 = vpop.permute.xlu2 %1243 }
 0x153   : > { %v1249_v2 = vpop.permute.xlu2 %1248 }
 0x161   : > { %v1180_v40 = vpop.permute.xlu0 %1179  ;;  %v1170_v41 = vpop.permute.xlu1 %1169 }
 0x169   : > { %v1185_v43 = vpop.permute.xlu0 %1184  ;;  %v1175_v44 = vpop.permute.xlu1 %1174 }
 0x171   : > { %v1213_v42 = vpop.f32.mrf.mxu0  ;;  %v1234_v50 = vpop.permute.xlu0 %1233 }
 0x172   : > { %v6724_v45 = vadd.f32 %v1213_v42, %v1170_v41  ;;  %v1239_v51 = vpop.permute.xlu1 %1238  ;;  %v5801_v42 = vld [vmem:[%s8527_s9] sm:$0xff] }
 0x174   : > { %v1223_v47 = vmax.f32 %v6724_v45, 0.0 }
 0x176   : > { %v6732_v52 = vadd.f32 %v1234_v50, %v1223_v47 }
 0x179   : > { %v1215_v46 = vpop.f32.mrf.mxu0 }
 0x17a   : > { %v6727_v48 = vadd.f32 %v1215_v46, %v1175_v44  ;;  %v5803_v44 = vld [vmem:[%s8527_s9 + $0x10] sm:$0xff]  ;;  %v5804_v46 = vld [vmem:[%s8527_s9 + $0x18] sm:$0xff] }
 0x17c   : > { %v1224_v49 = vmax.f32 %v6727_v48, 0.0 }
 0x17e   : > { %v6736_v53 = vadd.f32 %v1239_v51, %v1224_v49 }
 0x180   : > { %v5925_v54 = vpack.i.bf16 %v6736_v53, %v6732_v52  ;;  %v1285_v55 = vpack.c.bf16 %v6736_v53, %v6732_v52 }
 0x181   : > { %v1218_v56 = vpop.f32.mrf.mxu0 }
 0x182   : > { %5926 = vrot.lane.b32.xlu0 %v5925_v54, %s8543_s0  ;;  %v6743_v60 = vadd.f32 %v1218_v56, %v1180_v40 }
 0x184   : > { %v1225_v62 = vmax.f32 %v6743_v60, 0.0 }
 0x186   : > { %v1253_v3 = vadd.f32 %v1244_v57, %v1225_v62 }
 0x189   : > { %v1220_v58 = vpop.f32.mrf.mxu0 }
 0x18a   : > { %v6749_v63 = vadd.f32 %v1220_v58, %v1185_v43  ;;  %1317 = vperm.xlu0 %5917, %v1299_v61   ;;  %v5802_v43 = vld [vmem:[%s8527_s9 + $0x8] sm:$0xff]  ;;  %v1409_v58 = vld [vmem:[#allocation2 + $0xd8] sm:$0xff] }
 0x18c   : > { %v1226_v1 = vmax.f32 %v6749_v63, 0.0  ;;  %v5143_v63 = vld [vmem:[%s8528_s10 + $0x58] sm:$0xff] }
 0x18e   : > { %v1254_v6 = vadd.f32 %v1249_v2, %v1226_v1 }
 0x190   : > { %v5930_v7 = vpack.i.bf16 %v1254_v6, %v1253_v3  ;;  %v1286_v59 = vpack.c.bf16 %v1254_v6, %v1253_v3  ;;  %v1408_v3 = vld [vmem:[#allocation2] sm:$0xff] }
 0x192   : > { %5931 = vrot.lane.b32.xlu1 %v5930_v7, %s8546_s1  ;;  %5921 = vrot.lane.b32.xlu2 %v5930_v7, %s8543_s0 }
 0x193   : > { %1312 = vperm.xlu0 %5917, %v1298_v8  }
 0x19a   : > { %1322 = vperm.xlu1 %5918, %v1300_v9   ;;  %5936 = vrot.lane.b32.xlu2 %v5925_v54, %s8546_s1  ;;  %s8603_s1 = smov 126  }
 0x19b   : > { %1327 = vperm.xlu0 %5917, %v1301_v10  }
 0x1a2   : > { %1337 = vperm.xlu1 %5918, %v1303_v11   ;;  %1307 = vperm.xlu2 %5919, %v1297_v12  }
 0x1a3   : > { %1542 = vperm.xlu0 %5917, %v1520_v13   ;;  %v1410_v13 = vld [vmem:[#allocation2 + $0x18] sm:$0xff] }
 0x1aa   : > { %1332 = vperm.xlu1 %5918, %v1302_v14   ;;  %1342 = vperm.xlu2 %5919, %v1304_v15  }
 0x1ab   : > { %1656 = vperm.xlu0 %5917, %v5130_v16  }
 0x1b2   : > { %1527 = vperm.xlu1 %5918, %v1517_v17   ;;  %1537 = vperm.xlu2 %5919, %v1519_v18  }
 0x1b3   : > { %1651 = vperm.xlu0 %5917, %v5129_v20  }
 0x1ba   : > { %1661 = vperm.xlu1 %5918, %v5131_v5   ;;  %1532 = vperm.xlu2 %5919, %v1518_v21  }
 0x1c2   : > { %1646 = vperm.xlu2 %5919, %v5128_v0  }
 0x1ec   : > { %v5922_v24 = vpop.permute.xlu2 %5921 }
 0x1ed   : > { %v5924_v25 = vunpack.i.h.bf16 %v5922_v24  ;;  %v5923_v26 = vunpack.i.l.bf16 %v5922_v24 }
 0x1ef   : > { %v5089_v4 = vpack.c.bf16 %v5924_v25, %v5923_v26 }
 0x1f1   : > { %5090 = vmatpush.bf16.msk.msra.mxu1 %vm6799_vm3, %v5089_v4 }
 0x1f4   : > { %v5927_v28 = vpop.permute.xlu0 %5926  ;;  %v5937_v33 = vpop.permute.xlu2 %5936 }
 0x1f5   : > { %v5929_v30 = vunpack.i.h.bf16 %v5927_v28  ;;  %v5928_v31 = vunpack.i.l.bf16 %v5927_v28  ;;  %v5939_v38 = vunpack.i.h.bf16 %v5937_v33  ;;  %v5938_v39 = vunpack.i.l.bf16 %v5937_v33 }
 0x1f7   : > { %v5092_v32 = vpack.c.bf16 %v5929_v30, %v5928_v31  ;;  %v5098_v41 = vpack.c.bf16 %v5939_v38, %v5938_v39 }
 0x1f9   : > { %5093 = vmatpush.bf16.msk.msra.mxu1 %vm6799_vm3, %v5092_v32 }
 0x1fc   : > { %v1318_v51 = vpop.permute.xlu0 %1317  ;;  %v1308_v53 = vpop.permute.xlu2 %1307 }
 0x1fd   : > { %1382 = vmatpush.bf16.msra.mxu1 %v1286_v59 }
 0x201   : > { %1383 = vmatpush.bf16.msra.mxu1 %v1285_v55  ;;  %v1407_v55 = vld [vmem:[#allocation2 + $0xb0] sm:$0xff] }
 0x204   : > { %v5932_v34 = vpop.permute.xlu1 %5931 }
 0x205   : > { %v5934_v35 = vunpack.i.h.bf16 %v5932_v34  ;;  %v5933_v36 = vunpack.i.l.bf16 %v5932_v34  ;;  %v1313_v56 = vpop.permute.xlu0 %1312 }
 0x207   : > { %v5095_v40 = vpack.c.bf16 %v5934_v35, %v5933_v36 }
 0x209   : > { %5096 = vmatpush.bf16.msk.msra.mxu1 %vm6811_vm5, %v5095_v40 }
 0x20c   : > { %v1323_v10 = vpop.permute.xlu1 %1322 }
 0x20d   : > { %5099 = vmatpush.bf16.msk.msra.mxu1 %vm6811_vm5, %v5098_v41 }
 0x210   : > { %5100 = vmatmul.msk.bf16.vlgmr.msra.gmra.mxu1 %vm1365_vm6, %v5801_v42  ;;  %v1413_v42 = vld [vmem:[#allocation2 + $0x30] sm:$0xff] }
 0x214   : > { %v1338_v4 = vpop.permute.xlu1 %1337 }
 0x21c   : > { %v1333_v39 = vpop.permute.xlu1 %1332 }
 0x220   : > { %5101 = vmatmul.msk.bf16.gmra.mxu1 %vm1365_vm6, %v5802_v43 }
 0x230   : > { %5102 = vmatmul.msk.bf16.gmra.mxu1 %vm1365_vm6, %v5803_v44 }
 0x240   : > { %5103 = vmatmul.msk.bf16.gmra.mxu1 %vm1365_vm6, %v5804_v46  ;;  %v1412_v46 = vld [vmem:[#allocation2 + $0x68] sm:$0xff] }
 0x28d   : > { %v1387_v50 = vpop.f32.mrf.mxu1 }
 0x28e   : > { %v1388_v54 = vadd.f32 %v1387_v50, %v1308_v53  ;;  %v1328_v50 = vpop.permute.xlu0 %1327 }
 0x290   : > { %v1415_v2 = vadd.f32 %v1407_v55, %v1388_v54  ;;  %v1343_v55 = vpop.permute.xlu2 %1342 }
 0x292   : > { %v5104_v59 = vmul.f32 -1.442695, %v1415_v2 }
 0x294   : > { %6000 = vpow2.f32 %v5104_v59 }
 0x295   : > { %v1389_v52 = vpop.f32.mrf.mxu1 }
 0x296   : > { %v1390_v57 = vadd.f32 %v1389_v52, %v1313_v56  ;;  %v1411_v56 = vld [vmem:[#allocation2 + $0x50] sm:$0xff] }
 0x298   : > { %v1416_v8 = vadd.f32 %v1408_v3, %v1390_v57 }
 0x29a   : > { %v5105_v11 = vmul.f32 -1.442695, %v1416_v8  ;;  %v6001_v17 = vpop.eup %6000 }
 0x29b   : > { %v6835_v21 = vadd.f32 1.0, %v6001_v17 }
 0x29d   : > { %v1392_v61 = vpop.f32.mrf.mxu1  ;;  %vm1444_vm0 = vweird.f32 %v6835_v21 }
 0x29e   : > { %v1393_v6 = vadd.f32 %v1392_v61, %v1318_v51 }
 0x2a0   : > { %v1417_v7 = vadd.f32 %v1409_v58, %v1393_v6  ;;  %v1414_v58 = vld [vmem:[#allocation2 + $0x48] sm:$0xff] }
 0x2a2   : > { %v5106_v9 = vmul.f32 -1.442695, %v1417_v7 }
 0x2a4   : > { %6002 = vpow2.f32 %v5106_v9 }
 0x2a5   : > { %v1394_v12 = vpop.f32.mrf.mxu1  ;;  %6004 = vpow2.f32 %v5105_v11 }
 0x2a6   : > { %v1395_v14 = vadd.f32 %v1394_v12, %v1323_v10 }
 0x2a8   : > { %v1418_v15 = vadd.f32 %v1410_v13, %v1395_v14 }
 0x2aa   : > { %v5107_v16 = vmul.f32 -1.442695, %v1418_v15  ;;  %v6003_v18 = vpop.eup %6002 }
 0x2ab   : > { %v6005_v5 = vpop.eup %6004  ;;  %v6837_v0 = vadd.f32 1.0, %v6003_v18 }
 0x2ac   : > { %6006 = vpow2.f32 %v5107_v16  ;;  %v6839_v24 = vadd.f32 1.0, %v6005_v5 }
 0x2ad   : > { %v1397_v20 = vpop.f32.mrf.mxu1  ;;  %6008 = vrcp.f32 %v6835_v21  ;;  %vm1474_vm10 = vweird.f32 %v6837_v0  ;;  %v1480_v12 = vand.u32 2147483648, %v6837_v0  ;;  %v1478_v15 = vand.u32 2147483647, %v6837_v0 }
 0x2ae   : > { %6010 = vrcp.f32 %v6837_v0  ;;  %v1398_v53 = vadd.f32 %v1397_v20, %v1328_v50  ;;  %vm1459_vm15 = vweird.f32 %v6839_v24  ;;  %v1465_v20 = vand.u32 2147483648, %v6839_v24 }
 0x2af   : > { %vm1479_vm4 = vcmp.eq.f32.partialorder %v1478_v15, 8.507059e+37 }
 0x2b0   : > { %v1419_v59 = vadd.f32 %v1411_v56, %v1398_v53  ;;  %v1543_v56 = vpop.permute.xlu0 %1542 }
 0x2b2   : > { %v6007_v22 = vpop.eup %6006 }
 0x2b3   : > { %v6842_v25 = vadd.f32 1.0, %v6007_v22  ;;  %v6847_v28 = vpop.eup %6008 }
 0x2b4   : > { %v6849_v30 = vpop.eup %6010  ;;  %v1440_v36 = vmul.f32 %v6847_v28, %v6835_v21  ;;  %vm1445_vm14 = vweird.f32 %v6847_v28 }
 0x2b5   : > { %6012 = vrcp.f32 %v6842_v25  ;;  %v1399_v26 = vpop.f32.mrf.mxu1  ;;  %v1470_v34 = vmul.f32 %v6849_v30, %v6837_v0  ;;  %vm1475_vm8 = vweird.f32 %v6849_v30  ;;  %v1495_v13 = vand.u32 2147483648, %v6842_v25 }
 0x2b6   : > { %6014 = vrcp.f32 %v6839_v24  ;;  %v1400_v41 = vadd.f32 %v1399_v26, %v1333_v39  ;;  %v1441_v51 = vsub.f32 1.0, %v1440_v36  ;;  %vm6875_vm11 = vmor %vm1474_vm10, %vm1475_vm8  ;;  %vm1489_vm12 = vweird.f32 %v6842_v25 }
 0x2b7   : > { %v1471_v43 = vsub.f32 1.0, %v1470_v34  ;;  %v1493_v16 = vand.u32 2147483647, %v6842_v25  ;;  %v1450_v34 = vand.u32 2147483648, %v6835_v21 }
 0x2b8   : > { %v1420_v57 = vadd.f32 %v1412_v46, %v1400_v41  ;;  %v1442_v7 = vmul.f32 %v6847_v28, %v1441_v51 }
 0x2b9   : > { %v1472_v2 = vmul.f32 %v6849_v30, %v1471_v43  ;;  %vm1494_vm8 = vcmp.eq.f32.partialorder %v1493_v16, 8.507059e+37  ;;  %v1451_v46 = vor.u32 1.1754944e-38, %v1450_v34  ;;  %v5140_v34 = vld [vmem:[%s8528_s10 + $0x40] sm:$0xff] }
 0x2ba   : > { %v1443_v22 = vadd.f32 %v6847_v28, %v1442_v7 }
 0x2bb   : > { %v6851_v31 = vpop.eup %6012  ;;  %v1473_v10 = vadd.f32 %v6849_v30, %v1472_v2 }
 0x2bc   : > { %v6853_v32 = vpop.eup %6014  ;;  %v1485_v35 = vmul.f32 %v6851_v31, %v6842_v25  ;;  %vm1490_vm9 = vweird.f32 %v6851_v31  ;;  %v1463_v25 = vand.u32 2147483647, %v6839_v24 }
 0x2bd   : > { %v1402_v33 = vpop.f32.mrf.mxu1  ;;  %v1455_v38 = vmul.f32 %v6853_v32, %v6839_v24  ;;  %vm1460_vm7 = vweird.f32 %v6853_v32  ;;  %vm6883_vm13 = vmor %vm1489_vm12, %vm1490_vm9  ;;  %v1477_v5 = vsel %vm6875_vm11, %v6849_v30, %v1473_v10  ;;  %vm1585_vm11 = vcmask 261120  }
 0x2be   : > { %v1403_v40 = vadd.f32 %v1402_v33, %v1338_v4  ;;  %v1486_v44 = vsub.f32 1.0, %v1485_v35  ;;  %v1481_v4 = vor.u32 1.1754944e-38, %v1480_v12  ;;  %v1496_v33 = vor.u32 1.1754944e-38, %v1495_v13  ;;  %vm6902_vm2 = vmor %vm1459_vm15, %vm1460_vm7  ;;  %v5195_v35 = vld [vmem:[%s8530_s12 + $0x58] sm:$0xff] }
 0x2bf   : > { %v1456_v52 = vsub.f32 1.0, %v1455_v38  ;;  %vm1446_vm9 = vmor %vm1444_vm0, %vm1445_vm14  ;;  %vm1464_vm7 = vcmp.eq.f32.partialorder %v1463_v25, 8.507059e+37  ;;  %vm1141_vm12 = vcmp.lt.s32.totalorder %v6796_v23, 126  ;;  %vm1140_vm14 = vcmp.ge.s32.totalorder %v6796_v23, 2  ;;  %v5809_v23 = vld [vmem:[%s8527_s9 + $0x20] sm:$0xff] }
 0x2c0   : > { %v1421_v54 = vadd.f32 %v1413_v42, %v1403_v40  ;;  %v1487_v3 = vmul.f32 %v6851_v31, %v1486_v44  ;;  %v1482_v38 = vsel %vm1479_vm4, %v1481_v4, %v1477_v5  ;;  %v1466_v40 = vor.u32 1.1754944e-38, %v1465_v20  ;;  %vm7006_vm15 = vmpackc.low %vm1140_vm14, %vm1140_vm14 }
 0x2c1   : > { %v1457_v8 = vmul.f32 %v6853_v32, %v1456_v52  ;;  %v1447_v43 = vsel %vm1446_vm9, %v6847_v28, %v1443_v22  ;;  %v5806_v28 = vld [vmem:[%s8529_s11 + $0x8] sm:$0xff] }
 0x2c2   : > { %6016 = vtanh.f32 %v1421_v54  ;;  %v1488_v11 = vadd.f32 %v6851_v31, %v1487_v3  ;;  %v5805_v54 = vld [vmem:[%s8529_s11] sm:$0xff]  ;;  %v1657_v3 = vpop.permute.xlu0 %1656 }
 0x2c3   : > { %6018 = vtanh.f32 %v1420_v57  ;;  %v1458_v17 = vadd.f32 %v6853_v32, %v1457_v8 }
 0x2c4   : > { %v1492_v0 = vsel %vm6883_vm13, %v6851_v31, %v1488_v11  ;;  %v1448_v31 = vand.u32 2147483647, %v6835_v21  ;;  %vm6994_vm13 = vmpackc.low %vm1141_vm12, %vm1141_vm12 }
 0x2c5   : > { %v1404_v61 = vpop.f32.mrf.mxu1  ;;  %v1462_v24 = vsel %vm6902_vm2, %v6853_v32, %v1458_v17  ;;  %v1497_v39 = vsel %vm1494_vm8, %v1496_v33, %v1492_v0  ;;  %v5142_v17 = vld [vmem:[%s8528_s10 + $0x50] sm:$0xff] }
 0x2c6   : > { %v1405_v6 = vadd.f32 %v1404_v61, %v1343_v55  ;;  %v1467_v50 = vsel %vm1464_vm7, %v1466_v40, %v1462_v24  ;;  %vm1449_vm10 = vcmp.eq.f32.partialorder %v1448_v31, 8.507059e+37  ;;  %v1538_v55 = vpop.permute.xlu2 %1537  ;;  %v1528_v61 = vpop.permute.xlu1 %1527  ;;  %v5146_v33 = vld [vmem:[%s8528_s10 + $0x70] sm:$0xff]  ;;  %v5147_v31 = vld [vmem:[%s8528_s10 + $0x78] sm:$0xff] }
 0x2c7   : > { %v1452_v52 = vsel %vm1449_vm10, %v1451_v46, %v1447_v43  ;;  %v5222_v24 = vld [vmem:[%s6473_s27 + $0x50] sm:$0xff]  ;;  %v5223_v40 = vld [vmem:[%s6473_s27 + $0x58] sm:$0xff] }
 0x2c8   : > { %v1422_v9 = vadd.f32 %v1414_v58, %v1405_v6  ;;  %v6017_v26 = vpop.eup %6016 }
 0x2c9   : > { %v6019_v30 = vpop.eup %6018  ;;  %v1505_v41 = vmul.f32 %v6017_v26, %v1482_v38  ;;  %v5141_v26 = vld [vmem:[%s8528_s10 + $0x48] sm:$0xff]  ;;  %v5194_v38 = vld [vmem:[%s8530_s12 + $0x50] sm:$0xff] }
 0x2ca   : > { %6020 = vtanh.f32 %v1422_v9  ;;  %v1504_v51 = vmul.f32 %v6019_v30, %v1467_v50  ;;  %v1652_v12 = vpop.permute.xlu0 %1651  ;;  %v5145_v30 = vld [vmem:[%s8528_s10 + $0x68] sm:$0xff] }
 0x2cb   : > { %6022 = vtanh.f32 %v1419_v59 }
 0x2ce   : > { %v1533_v2 = vpop.permute.xlu2 %1532  ;;  %v1662_v22 = vpop.permute.xlu1 %1661 }
 0x2d0   : > { %v6021_v36 = vpop.eup %6020 }
 0x2d1   : > { %v1506_v42 = vmul.f32 %v6021_v36, %v1497_v39  ;;  %v6023_v44 = vpop.eup %6022  ;;  %v5192_v36 = vld [vmem:[%s8530_s12 + $0x40] sm:$0xff]  ;;  %v5221_v39 = vld [vmem:[%s6473_s27 + $0x48] sm:$0xff] }
 0x2d2   : > { %v1503_v32 = vmul.f32 %v6023_v44, %v1452_v52 }
 0x2d3   : > { %v1516_v21 = vpack.c.bf16 %v1506_v42, %v1505_v41  ;;  %v5193_v41 = vld [vmem:[%s8530_s12 + $0x48] sm:$0xff]  ;;  %v5220_v42 = vld [vmem:[%s6473_s27 + $0x40] sm:$0xff] }
 0x2d4   : > { %v1515_v53 = vpack.c.bf16 %v1504_v51, %v1503_v32 }
 0x2d5   : > { %1604 = vmatpush.bf16.msra.mxu2 %v1516_v21 }
 0x2d6   : > { %v1647_v11 = vpop.permute.xlu2 %1646 }
 0x2d9   : > { %1605 = vmatpush.bf16.msra.mxu2 %v1515_v53 }
 0x2dc   : > { %5124 = vmatmul.msk.bf16.vlgmr.msra.gmra.mxu2 %vm1585_vm11, %v5805_v54 }
 0x2ec   : > { %5125 = vmatmul.msk.bf16.gmra.mxu2 %vm1585_vm11, %v5806_v28 }
 0x35f   : > { %v1607_v57 = vpop.f32.mrf.mxu2 }
 0x360   : > { %v1608_v58 = vadd.f32 %v1607_v57, %v1528_v61 }
 0x362   : > { %v1627_v6 = vadd.f32 %v1608_v58, %v1223_v47 }
 0x364   : > { %v6923_v59 = vmul.f32 0.70710677, %v1627_v6  ;;  %v5810_v6 = vld [vmem:[%s8527_s9 + $0x28] sm:$0xff] }
 0x366   : > { %v6930_v13 = vadd.f32 %v1647_v11, %v6923_v59 }
 0x367   : > { %v1609_v7 = vpop.f32.mrf.mxu2 }
 0x368   : > { %v1610_v8 = vadd.f32 %v1609_v7, %v1533_v2  ;;  %v5811_v7 = vld [vmem:[%s8527_s9 + $0x30] sm:$0xff] }
 0x36a   : > { %v1628_v9 = vadd.f32 %v1610_v8, %v1224_v49  ;;  %v5812_v8 = vld [vmem:[%s8527_s9 + $0x38] sm:$0xff] }
 0x36c   : > { %v6927_v10 = vmul.f32 0.70710677, %v1628_v9 }
 0x36e   : > { %v6933_v14 = vadd.f32 %v1652_v12, %v6927_v10 }
 0x36f   : > { %v1612_v15 = vpop.f32.mrf.mxu2 }
 0x370   : > { %v5945_v45 = vpack.i.bf16 %v6933_v14, %v6930_v13  ;;  %v1698_v47 = vpack.c.bf16 %v6933_v14, %v6930_v13  ;;  %v1613_v16 = vadd.f32 %v1612_v15, %v1538_v55  ;;  %v1822_v15 = vld [vmem:[#allocation2 + $0x80] sm:$0xff] }
 0x372   : > { %5946 = vrot.lane.b32.xlu2 %v5945_v45, %s8548_s25  ;;  %v1629_v48 = vadd.f32 %v1613_v16, %v1225_v62 }
 0x374   : > { %v6945_v20 = vmul.f32 0.70710677, %v1629_v48  ;;  %v1824_v48 = vld [vmem:[#allocation2 + $0xe8] sm:$0xff] }
 0x376   : > { %v1666_v25 = vadd.f32 %v1657_v3, %v6945_v20 }
 0x377   : > { %v1614_v49 = vpop.f32.mrf.mxu2 }
 0x378   : > { %v1615_v18 = vadd.f32 %v1614_v49, %v1543_v56 }
 0x37a   : > { %v1630_v5 = vadd.f32 %v1615_v18, %v1226_v1  ;;  %1732 = vperm.xlu2 %5919, %v5142_v17   ;;  %v5144_v1 = vld [vmem:[%s8528_s10 + $0x60] sm:$0xff]  ;;  %v1823_v17 = vld [vmem:[#allocation2 + $0x88] sm:$0xff] }
 0x37c   : > { %v6949_v0 = vmul.f32 0.70710677, %v1630_v5 }
 0x37e   : > { %v1667_v60 = vadd.f32 %v1662_v22, %v6949_v0 }
 0x380   : > { %v5950_v62 = vpack.i.bf16 %v1667_v60, %v1666_v25  ;;  %v1699_v4 = vpack.c.bf16 %v1667_v60, %v1666_v25 }
 0x382   : > { %5951 = vrot.lane.b32.xlu0 %v5950_v62, %s8550_s22  ;;  %5941 = vrot.lane.b32.xlu1 %v5950_v62, %s8548_s25  ;;  %s8604_s25 = smov 2  }
 0x383   : > { %1727 = vperm.xlu2 %5919, %v5141_v26  }
 0x38a   : > { %1737 = vperm.xlu0 %5917, %v5143_v63   ;;  %5956 = vrot.lane.b32.xlu1 %v5945_v45, %s8550_s22  ;;  %v1825_v63 = vld [vmem:[#allocation2 + $0xb8] sm:$0xff] }
 0x38b   : > { %1742 = vperm.xlu2 %5919, %v5144_v1  }
 0x392   : > { %1752 = vperm.xlu0 %5917, %v5146_v33   ;;  %1722 = vperm.xlu1 %5918, %v5140_v34  }
 0x393   : > { %1959 = vperm.xlu2 %5919, %v5195_v35  }
 0x39a   : > { %1747 = vperm.xlu0 %5917, %v5145_v30   ;;  %1757 = vperm.xlu1 %5918, %v5147_v31  }
 0x39b   : > { %2072 = vperm.xlu2 %5919, %v5222_v24  }
 0x3a2   : > { %1944 = vperm.xlu0 %5917, %v5192_v36   ;;  %1954 = vperm.xlu1 %5918, %v5194_v38  }
 0x3a3   : > { %2067 = vperm.xlu2 %5919, %v5221_v39  }
 0x3aa   : > { %2077 = vperm.xlu0 %5917, %v5223_v40   ;;  %1949 = vperm.xlu1 %5918, %v5193_v41  }
 0x3b2   : > { %2062 = vperm.xlu1 %5918, %v5220_v42  }
 0x3cc   : > { %v5947_v43 = vpop.permute.xlu2 %5946 }
 0x3cd   : > { %v5949_v51 = vunpack.i.h.bf16 %v5947_v43  ;;  %v5948_v52 = vunpack.i.l.bf16 %v5947_v43 }
 0x3cf   : > { %v5168_v53 = vpack.c.bf16 %v5949_v51, %v5948_v52 }
 0x3d4   : > { %v1733_v11 = vpop.permute.xlu2 %1732 }
 0x3dd   : > { %v1728_v45 = vpop.permute.xlu2 %1727 }
 0x3f4   : > { %v5942_v44 = vpop.permute.xlu1 %5941  ;;  %v5952_v54 = vpop.permute.xlu0 %5951 }
 0x3f5   : > { %v5944_v46 = vunpack.i.h.bf16 %v5942_v44  ;;  %v5943_v50 = vunpack.i.l.bf16 %v5942_v44  ;;  %v5954_v28 = vunpack.i.h.bf16 %v5952_v54  ;;  %v5953_v55 = vunpack.i.l.bf16 %v5952_v54 }
 0x3f7   : > { %v5165_v32 = vpack.c.bf16 %v5944_v46, %v5943_v50  ;;  %v5171_v61 = vpack.c.bf16 %v5954_v28, %v5953_v55 }
 0x3f9   : > { %5166 = vmatpush.bf16.msk.msra.mxu3 %vm6994_vm13, %v5165_v32 }
 0x3fc   : > { %v5957_v56 = vpop.permute.xlu1 %5956  ;;  %v1738_v62 = vpop.permute.xlu0 %1737 }
 0x3fd   : > { %5169 = vmatpush.bf16.msk.msra.mxu3 %vm6994_vm13, %v5168_v53  ;;  %v5959_v58 = vunpack.i.h.bf16 %v5957_v56  ;;  %v5958_v2 = vunpack.i.l.bf16 %v5957_v56 }
 0x3ff   : > { %v5174_v3 = vpack.c.bf16 %v5959_v58, %v5958_v2  ;;  %v1828_v58 = vld [vmem:[#allocation2 + $0x8] sm:$0xff] }
 0x401   : > { %1796 = vmatpush.bf16.msra.mxu3 %v1699_v4 }
 0x404   : > { %v1723_v13 = vpop.permute.xlu1 %1722  ;;  %v1753_v43 = vpop.permute.xlu0 %1752 }
 0x405   : > { %1797 = vmatpush.bf16.msra.mxu3 %v1698_v47 }
 0x409   : > { %5172 = vmatpush.bf16.msk.msra.mxu3 %vm7006_vm15, %v5171_v61 }
 0x40c   : > { %v1748_v55 = vpop.permute.xlu0 %1747 }
 0x40d   : > { %5175 = vmatpush.bf16.msk.msra.mxu3 %vm7006_vm15, %v5174_v3 }
 0x410   : > { %5176 = vmatmul.msk.bf16.vlgmr.msra.gmra.mxu3 %vm1365_vm6, %v5809_v23  ;;  %v1827_v23 = vld [vmem:[#allocation2 + $0xf0] sm:$0xff] }
 0x420   : > { %5177 = vmatmul.msk.bf16.gmra.mxu3 %vm1365_vm6, %v5810_v6  ;;  %v1743_v6 = vpop.permute.xlu2 %1742 }
 0x430   : > { %5178 = vmatmul.msk.bf16.gmra.mxu3 %vm1365_vm6, %v5811_v7 }
 0x440   : > { %5179 = vmatmul.msk.bf16.gmra.mxu3 %vm1365_vm6, %v5812_v8 }
 0x493   : > { %v1801_v9 = vpop.f32.mrf.mxu3 }
 0x494   : > { %v1802_v14 = vadd.f32 %v1801_v9, %v1723_v13  ;;  %v1826_v13 = vld [vmem:[#allocation2 + $0x60] sm:$0xff] }
 0x496   : > { %v1830_v49 = vadd.f32 %v1822_v15, %v1802_v14 }
 0x498   : > { %v5180_v25 = vmul.f32 -1.442695, %v1830_v49 }
 0x49a   : > { %6024 = vpow2.f32 %v5180_v25 }
 0x49b   : > { %v1803_v12 = vpop.f32.mrf.mxu3 }
 0x49c   : > { %v1804_v47 = vadd.f32 %v1803_v12, %v1728_v45  ;;  %v1758_v12 = vpop.permute.xlu1 %1757  ;;  %v1829_v45 = vld [vmem:[#allocation2 + $0x78] sm:$0xff] }
 0x49e   : > { %v1831_v22 = vadd.f32 %v1823_v17, %v1804_v47 }
 0x4a0   : > { %v5181_v26 = vmul.f32 -1.442695, %v1831_v22  ;;  %v6025_v35 = vpop.eup %6024 }
 0x4a1   : > { %v7030_v36 = vadd.f32 1.0, %v6025_v35 }
 0x4a3   : > { %v1806_v16 = vpop.f32.mrf.mxu3 }
 0x4a4   : > { %v1807_v18 = vadd.f32 %v1806_v16, %v1733_v11 }
 0x4a6   : > { %v1832_v5 = vadd.f32 %v1824_v48, %v1807_v18 }
 0x4a8   : > { %v5182_v60 = vmul.f32 -1.442695, %v1832_v5 }
 0x4aa   : > { %6026 = vpow2.f32 %v5182_v60 }
 0x4ab   : > { %v1808_v4 = vpop.f32.mrf.mxu3  ;;  %6028 = vpow2.f32 %v5181_v26 }
 0x4ac   : > { %v1809_v1 = vadd.f32 %v1808_v4, %v1738_v62 }
 0x4ae   : > { %v1833_v33 = vadd.f32 %v1825_v63, %v1809_v1 }
 0x4b0   : > { %v5183_v34 = vmul.f32 -1.442695, %v1833_v33  ;;  %v6027_v30 = vpop.eup %6026 }
 0x4b1   : > { %v6029_v24 = vpop.eup %6028  ;;  %v7032_v38 = vadd.f32 1.0, %v6027_v30 }
 0x4b2   : > { %6030 = vpow2.f32 %v5183_v34  ;;  %v7034_v40 = vadd.f32 1.0, %v6029_v24 }
 0x4b3   : > { %v1811_v31 = vpop.f32.mrf.mxu3  ;;  %6032 = vrcp.f32 %v7030_v36  ;;  %vm1889_vm8 = vweird.f32 %v7032_v38  ;;  %v1895_v60 = vand.u32 2147483648, %v7032_v38  ;;  %v1893_v4 = vand.u32 2147483647, %v7032_v38 }
 0x4b4   : > { %6034 = vrcp.f32 %v7032_v38  ;;  %v1812_v9 = vadd.f32 %v1811_v31, %v1743_v6  ;;  %vm1874_vm14 = vweird.f32 %v7034_v40  ;;  %v1880_v34 = vand.u32 2147483648, %v7034_v40 }
 0x4b5   : > { %v1878_v24 = vand.u32 2147483647, %v7034_v40 }
 0x4b6   : > { %v1834_v18 = vadd.f32 %v1826_v13, %v1812_v9  ;;  %v1955_v9 = vpop.permute.xlu1 %1954 }
 0x4b8   : > { %v6031_v39 = vpop.eup %6030 }
 0x4b9   : > { %v7037_v41 = vadd.f32 1.0, %v6031_v39  ;;  %v7042_v44 = vpop.eup %6032  ;;  %v1896_v39 = vor.u32 1.1754944e-38, %v1895_v60 }
 0x4ba   : > { %v7044_v46 = vpop.eup %6034  ;;  %v1855_v54 = vmul.f32 %v7042_v44, %v7030_v36  ;;  %vm1860_vm12 = vweird.f32 %v7042_v44 }
 0x4bb   : > { %6036 = vrcp.f32 %v7037_v41  ;;  %v1813_v42 = vpop.f32.mrf.mxu3  ;;  %v1885_v32 = vmul.f32 %v7044_v46, %v7032_v38  ;;  %vm1890_vm2 = vweird.f32 %v7044_v46  ;;  %v1910_v62 = vand.u32 2147483648, %v7037_v41 }
 0x4bc   : > { %6038 = vrcp.f32 %v7034_v40  ;;  %v1814_v61 = vadd.f32 %v1813_v42, %v1748_v55  ;;  %v1856_v7 = vsub.f32 1.0, %v1855_v54  ;;  %vm7070_vm9 = vmor %vm1889_vm8, %vm1890_vm2  ;;  %vm1904_vm7 = vweird.f32 %v7037_v41 }
 0x4bd   : > { %v1886_v2 = vsub.f32 1.0, %v1885_v32  ;;  %v1908_v63 = vand.u32 2147483647, %v7037_v41  ;;  %vm1859_vm2 = vweird.f32 %v7030_v36  ;;  %v1865_v42 = vand.u32 2147483648, %v7030_v36 }
 0x4be   : > { %v1835_v14 = vadd.f32 %v1827_v23, %v1814_v61  ;;  %v1857_v49 = vmul.f32 %v7042_v44, %v1856_v7  ;;  %vm1894_vm8 = vcmp.eq.f32.partialorder %v1893_v4, 8.507059e+37  ;;  %v1881_v54 = vor.u32 1.1754944e-38, %v1880_v34  ;;  %v5813_v7 = vld [vmem:[%s8529_s11 + $0x20] sm:$0xff] }
 0x4bf   : > { %v1887_v47 = vmul.f32 %v7044_v46, %v1886_v2 }
 0x4c0   : > { %v1858_v31 = vadd.f32 %v7042_v44, %v1857_v49 }
 0x4c1   : > { %v7046_v50 = vpop.eup %6036  ;;  %v1888_v22 = vadd.f32 %v7044_v46, %v1887_v47 }
 0x4c2   : > { %v7048_v51 = vpop.eup %6038  ;;  %v1900_v53 = vmul.f32 %v7046_v50, %v7037_v41  ;;  %vm1905_vm4 = vweird.f32 %v7046_v50  ;;  %v1911_v41 = vor.u32 1.1754944e-38, %v1910_v62 }
 0x4c3   : > { %v1816_v52 = vpop.f32.mrf.mxu3  ;;  %v1870_v28 = vmul.f32 %v7048_v51, %v7034_v40  ;;  %vm1875_vm0 = vweird.f32 %v7048_v51  ;;  %vm7078_vm10 = vmor %vm1904_vm7, %vm1905_vm4  ;;  %v1892_v35 = vsel %vm7070_vm9, %v7044_v46, %v1888_v22  ;;  %vm1909_vm9 = vcmp.eq.f32.partialorder %v1908_v63, 8.507059e+37  ;;  %v5234_v63 = vld [vmem:[%s8528_s10 + $0x90] sm:$0xff] }
 0x4c4   : > { %v1817_v56 = vadd.f32 %v1816_v52, %v1753_v43  ;;  %v1901_v3 = vsub.f32 1.0, %v1900_v53  ;;  %vm7097_vm4 = vmor %vm1874_vm14, %vm1875_vm0  ;;  %v1897_v32 = vsel %vm1894_vm8, %v1896_v39, %v1892_v35  ;;  %vm1879_vm0 = vcmp.eq.f32.partialorder %v1878_v24, 8.507059e+37  ;;  %v5232_v43 = vld [vmem:[%s8528_s10 + $0x80] sm:$0xff] }
 0x4c5   : > { %v1871_v8 = vsub.f32 1.0, %v1870_v28  ;;  %vm1861_vm7 = vmor %vm1859_vm2, %vm1860_vm12 }
 0x4c6   : > { %v1836_v11 = vadd.f32 %v1828_v58, %v1817_v56  ;;  %v1902_v16 = vmul.f32 %v7046_v50, %v1901_v3  ;;  %v1862_v56 = vsel %vm1861_vm7, %v7042_v44, %v1858_v31  ;;  %v1866_v58 = vor.u32 1.1754944e-38, %v1865_v42  ;;  %v5814_v44 = vld [vmem:[%s8529_s11 + $0x28] sm:$0xff]  ;;  %v5238_v42 = vld [vmem:[%s8528_s10 + $0xb0] sm:$0xff] }
 0x4c7   : > { %v1872_v17 = vmul.f32 %v7048_v51, %v1871_v8  ;;  %v1960_v8 = vpop.permute.xlu2 %1959 }
 0x4c8   : > { %6040 = vtanh.f32 %v1836_v11  ;;  %v1903_v25 = vadd.f32 %v7046_v50, %v1902_v16 }
 0x4c9   : > { %6042 = vtanh.f32 %v1835_v14  ;;  %v1873_v1 = vadd.f32 %v7048_v51, %v1872_v17 }
 0x4ca   : > { %v1907_v30 = vsel %vm7078_vm10, %v7046_v50, %v1903_v25  ;;  %v1863_v50 = vand.u32 2147483647, %v7030_v36 }
 0x4cb   : > { %v1818_v15 = vpop.f32.mrf.mxu3  ;;  %v1877_v40 = vsel %vm7097_vm4, %v7048_v51, %v1873_v1  ;;  %v1912_v53 = vsel %vm1909_vm9, %v1911_v41, %v1907_v30  ;;  %v5236_v41 = vld [vmem:[%s8528_s10 + $0xa0] sm:$0xff] }
 0x4cc   : > { %v1819_v48 = vadd.f32 %v1818_v15, %v1758_v12  ;;  %v1882_v2 = vsel %vm1879_vm0, %v1881_v54, %v1877_v40  ;;  %vm1864_vm10 = vcmp.eq.f32.partialorder %v1863_v50, 8.507059e+37  ;;  %v1945_v12 = vpop.permute.xlu0 %1944  ;;  %v1950_v15 = vpop.permute.xlu1 %1949  ;;  %v5237_v50 = vld [vmem:[%s8528_s10 + $0xa8] sm:$0xff]  ;;  %v5239_v40 = vld [vmem:[%s8528_s10 + $0xb8] sm:$0xff] }
 0x4cd   : > { %v1867_v23 = vsel %vm1864_vm10, %v1866_v58, %v1862_v56  ;;  %v5313_v54 = vld [vmem:[%s6473_s27 + $0x68] sm:$0xff]  ;;  %v5312_v56 = vld [vmem:[%s6473_s27 + $0x60] sm:$0xff]  ;;  %v5808_v58 = vld [vmem:[%s8529_s11 + $0x18] sm:$0xff] }
 0x4ce   : > { %v1837_v5 = vadd.f32 %v1829_v45, %v1819_v48  ;;  %v6041_v38 = vpop.eup %6040 }
 0x4cf   : > { %v6043_v46 = vpop.eup %6042  ;;  %v1920_v28 = vmul.f32 %v6041_v38, %v1897_v32  ;;  %v2073_v14 = vpop.permute.xlu2 %2072  ;;  %v5284_v32 = vld [vmem:[%s8530_s12 + $0x80] sm:$0xff] }
 0x4d0   : > { %6044 = vtanh.f32 %v1837_v5  ;;  %v1919_v3 = vmul.f32 %v6043_v46, %v1882_v2  ;;  %v5287_v46 = vld [vmem:[%s8530_s12 + $0x98] sm:$0xff] }
 0x4d1   : > { %6046 = vtanh.f32 %v1834_v18 }
 0x4d4   : > { %v2063_v5 = vpop.permute.xlu1 %2062  ;;  %v2078_v30 = vpop.permute.xlu0 %2077 }
 0x4d6   : > { %v6045_v52 = vpop.eup %6044 }
 0x4d7   : > { %v1921_v55 = vmul.f32 %v6045_v52, %v1912_v53  ;;  %v6047_v61 = vpop.eup %6046  ;;  %v2068_v18 = vpop.permute.xlu2 %2067  ;;  %v5314_v52 = vld [vmem:[%s6473_s27 + $0x70] sm:$0xff] }
 0x4d8   : > { %v1918_v51 = vmul.f32 %v6047_v61, %v1867_v23  ;;  %v5286_v53 = vld [vmem:[%s8530_s12 + $0x90] sm:$0xff] }
 0x4d9   : > { %v1932_v36 = vpack.c.bf16 %v1921_v55, %v1920_v28  ;;  %v5315_v28 = vld [vmem:[%s6473_s27 + $0x78] sm:$0xff]  ;;  %v5285_v55 = vld [vmem:[%s8530_s12 + $0x88] sm:$0xff]  ;;  %v5807_v61 = vld [vmem:[%s8529_s11 + $0x10] sm:$0xff]  ;;  %s8554_s27 = smov (!%p4926_p2), 126  }
 0x4da   : > { %v1931_v6 = vpack.c.bf16 %v1919_v3, %v1918_v51  ;;  %5126 = vmatmul.msk.bf16.gmra.mxu2 %vm1585_vm11, %v5807_v61 }
 0x4db   : > { %2020 = vmatpush.bf16.msrb.mxu0 %v1932_v36 }
 0x4df   : > { %2021 = vmatpush.bf16.msrb.mxu0 %v1931_v6 }
 0x4e2   : > { %5216 = vmatmul.msk.bf16.vlgmr.msrb.gmra.mxu0 %vm1585_vm11, %v5813_v7 }
 0x4ea   : > { %5127 = vmatmul.msk.bf16.gmra.mxu2 %vm1585_vm11, %v5808_v58 }
 0x4f2   : > { %5217 = vmatmul.msk.bf16.gmra.mxu0 %vm1585_vm11, %v5814_v44 }
 0x55f   : > { %v2023_v11 = vpop.f32.mrf.mxu0 }
 0x560   : > { %v2024_v13 = vadd.f32 %v2023_v11, %v1945_v12 }
 0x562   : > { %v2043_v45 = vadd.f32 %v2024_v13, %v6923_v59 }
 0x564   : > { %v7117_v48 = vmul.f32 0.70710677, %v2043_v45 }
 0x566   : > { %v7123_v22 = vadd.f32 %v2063_v5, %v7117_v48  ;;  %v7219_v5 = vpop.f32.mrf.mxu2 }
 0x567   : > { %v2025_v47 = vpop.f32.mrf.mxu0 }
 0x568   : > { %v2026_v16 = vadd.f32 %v2025_v47, %v1950_v15  ;;  %v5817_v47 = vld [vmem:[%s8527_s9 + $0x40] sm:$0xff] }
 0x56a   : > { %v2044_v49 = vadd.f32 %v2026_v16, %v6927_v10  ;;  %v5818_v16 = vld [vmem:[%s8527_s9 + $0x48] sm:$0xff] }
 0x56c   : > { %v7120_v17 = vmul.f32 0.70710677, %v2044_v49  ;;  %v5819_v49 = vld [vmem:[%s8527_s9 + $0x50] sm:$0xff] }
 0x56e   : > { %v7126_v25 = vadd.f32 %v2068_v18, %v7120_v17  ;;  %v5820_v18 = vld [vmem:[%s8527_s9 + $0x58] sm:$0xff] }
 0x56f   : > { %v2028_v60 = vpop.f32.mrf.mxu0 }
 0x570   : > { %v5965_v59 = vpack.i.bf16 %v7126_v25, %v7123_v22  ;;  %v2110_v62 = vpack.c.bf16 %v7126_v25, %v7123_v22  ;;  %v2029_v26 = vadd.f32 %v2028_v60, %v1955_v9  ;;  %v7221_v22 = vpop.f32.mrf.mxu2 }
 0x572   : > { %5966 = vrot.lane.b32.xlu1 %v5965_v59, %s8595_s5  ;;  %v2045_v10 = vadd.f32 %v2029_v26, %v6945_v20  ;;  %v5233_v20 = vld [vmem:[%s8528_s10 + $0x88] sm:$0xff] }
 0x574   : > { %v7137_v33 = vmul.f32 0.70710677, %v2045_v10 }
 0x576   : > { %v2082_v31 = vadd.f32 %v2073_v14, %v7137_v33 }
 0x577   : > { %v2030_v4 = vpop.f32.mrf.mxu0 }
 0x578   : > { %v2031_v1 = vadd.f32 %v2030_v4, %v1960_v8  ;;  %v7223_v25 = vpop.f32.mrf.mxu2 }
 0x57a   : > { %v2046_v34 = vadd.f32 %v2031_v1, %v6949_v0  ;;  %2144 = vperm.xlu1 %5918, %v5234_v63   ;;  %v5235_v0 = vld [vmem:[%s8528_s10 + $0x98] sm:$0xff] }
 0x57b   : > { %v2234_v63 = vld [vmem:[#allocation2 + $0x38] sm:$0xff] }
 0x57c   : > { %v7140_v35 = vmul.f32 0.70710677, %v2046_v34 }
 0x57e   : > { %v2083_v24 = vadd.f32 %v2078_v30, %v7140_v35 }
 0x580   : > { %v5970_v38 = vpack.i.bf16 %v2083_v24, %v2082_v31  ;;  %v2111_v39 = vpack.c.bf16 %v2083_v24, %v2082_v31  ;;  %v7225_v60 = vpop.f32.mrf.mxu2  ;;  %v2236_v31 = vld [vmem:[#allocation2 + $0x40] sm:$0xff] }
 0x582   : > { %5971 = vrot.lane.b32.xlu2 %v5970_v38, %s8596_s17  ;;  %5961 = vrot.lane.b32.xlu0 %v5970_v38, %s8595_s5  ;;  %v2235_v38 = vld [vmem:[#allocation2 + $0x58] sm:$0xff] }
 0x583   : > { %2139 = vperm.xlu1 %5918, %v5233_v20  }
 0x58a   : > { %2149 = vperm.xlu2 %5919, %v5235_v0   ;;  %5976 = vrot.lane.b32.xlu0 %v5965_v59, %s8596_s17 }
 0x58b   : > { %2154 = vperm.xlu1 %5918, %v5236_v41  }
 0x592   : > { %2164 = vperm.xlu2 %5919, %v5238_v42   ;;  %2134 = vperm.xlu0 %5917, %v5232_v43  }
 0x593   : > { %2371 = vperm.xlu1 %5918, %v5287_v46  }
 0x59a   : > { %2159 = vperm.xlu2 %5919, %v5237_v50   ;;  %2169 = vperm.xlu0 %5917, %v5239_v40   ;;  %v2237_v40 = vld [vmem:[#allocation2 + $0xc8] sm:$0xff] }
 0x59b   : > { %2484 = vperm.xlu1 %5918, %v5314_v52  }
 0x5a2   : > { %2356 = vperm.xlu2 %5919, %v5284_v32   ;;  %2366 = vperm.xlu0 %5917, %v5286_v53  }
 0x5a3   : > { %2479 = vperm.xlu1 %5918, %v5313_v54  }
 0x5aa   : > { %2489 = vperm.xlu2 %5919, %v5315_v28   ;;  %2361 = vperm.xlu0 %5917, %v5285_v55  }
 0x5b2   : > { %2474 = vperm.xlu0 %5917, %v5312_v56  }
 0x5dc   : > { %v5972_v8 = vpop.permute.xlu2 %5971 }
 0x5dd   : > { %v5974_v9 = vunpack.i.h.bf16 %v5972_v8  ;;  %v5973_v11 = vunpack.i.l.bf16 %v5972_v8 }
 0x5df   : > { %v5263_v13 = vpack.c.bf16 %v5974_v9, %v5973_v11 }
 0x5e4   : > { %v5967_v2 = vpop.permute.xlu1 %5966  ;;  %v2150_v43 = vpop.permute.xlu2 %2149 }
 0x5e5   : > { %v5969_v51 = vunpack.i.h.bf16 %v5967_v2  ;;  %v5968_v6 = vunpack.i.l.bf16 %v5967_v2 }
 0x5e7   : > { %v5260_v44 = vpack.c.bf16 %v5969_v51, %v5968_v6 }
 0x5ec   : > { %v2165_v51 = vpop.permute.xlu2 %2164 }
 0x5f4   : > { %v5962_v36 = vpop.permute.xlu0 %5961 }
 0x5f5   : > { %v5964_v3 = vunpack.i.h.bf16 %v5962_v36  ;;  %v5963_v23 = vunpack.i.l.bf16 %v5962_v36 }
 0x5f7   : > { %v5257_v7 = vpack.c.bf16 %v5964_v3, %v5963_v23 }
 0x5f9   : > { %5258 = vmatpush.bf16.msk.msrb.mxu2 %vm6799_vm3, %v5257_v7 }
 0x5fc   : > { %v5977_v12 = vpop.permute.xlu0 %5976 }
 0x5fd   : > { %5261 = vmatpush.bf16.msk.msrb.mxu2 %vm6799_vm3, %v5260_v44  ;;  %v5979_v14 = vunpack.i.h.bf16 %v5977_v12  ;;  %v5978_v15 = vunpack.i.l.bf16 %v5977_v12 }
 0x5ff   : > { %v5266_v45 = vpack.c.bf16 %v5979_v14, %v5978_v15  ;;  %v2160_v15 = vpop.permute.xlu2 %2159 }
 0x601   : > { %2208 = vmatpush.bf16.msrb.mxu2 %v2111_v39 }
 0x604   : > { %v2135_v10 = vpop.permute.xlu0 %2134 }
 0x605   : > { %2209 = vmatpush.bf16.msrb.mxu2 %v2110_v62  ;;  %v2145_v62 = vpop.permute.xlu1 %2144 }
 0x609   : > { %5264 = vmatpush.bf16.msk.msrb.mxu2 %vm6811_vm5, %v5263_v13 }
 0x60d   : > { %5267 = vmatpush.bf16.msk.msrb.mxu2 %vm6811_vm5, %v5266_v45  ;;  %v2140_v1 = vpop.permute.xlu1 %2139 }
 0x610   : > { %5268 = vmatmul.msk.bf16.vlgmr.msrb.gmra.mxu2 %vm1365_vm6, %v5817_v47 }
 0x620   : > { %5269 = vmatmul.msk.bf16.gmra.mxu2 %vm1365_vm6, %v5818_v16  ;;  %v2240_v16 = vld [vmem:[#allocation2 + $0x70] sm:$0xff] }
 0x630   : > { %5270 = vmatmul.msk.bf16.gmra.mxu2 %vm1365_vm6, %v5819_v49 }
 0x640   : > { %5271 = vmatmul.msk.bf16.gmra.mxu2 %vm1365_vm6, %v5820_v18 }
 0x693   : > { %v2213_v59 = vpop.f32.mrf.mxu2 }
 0x694   : > { %v2214_v4 = vadd.f32 %v2213_v59, %v2135_v10  ;;  %v2239_v59 = vld [vmem:[#allocation2 + $0x90] sm:$0xff] }
 0x696   : > { %v2242_v24 = vadd.f32 %v2234_v63, %v2214_v4 }
 0x698   : > { %v5272_v41 = vmul.f32 -1.442695, %v2242_v24  ;;  %v2241_v24 = vld [vmem:[#allocation2 + $0xc0] sm:$0xff] }
 0x69a   : > { %6048 = vpow2.f32 %v5272_v41 }
 0x69b   : > { %v2215_v26 = vpop.f32.mrf.mxu2 }
 0x69c   : > { %v2216_v34 = vadd.f32 %v2215_v26, %v2140_v1  ;;  %v2170_v1 = vpop.permute.xlu0 %2169 }
 0x69e   : > { %v2243_v0 = vadd.f32 %v2235_v38, %v2216_v34  ;;  %v2238_v34 = vld [vmem:[#allocation2 + $0xe0] sm:$0xff] }
 0x6a0   : > { %v5273_v46 = vmul.f32 -1.442695, %v2243_v0  ;;  %v6049_v54 = vpop.eup %6048 }
 0x6a1   : > { %v7227_v61 = vadd.f32 1.0, %v6049_v54 }
 0x6a3   : > { %v2218_v30 = vpop.f32.mrf.mxu2 }
 0x6a4   : > { %v2219_v20 = vadd.f32 %v2218_v30, %v2145_v62  ;;  %v2155_v62 = vpop.permute.xlu1 %2154 }
 0x6a6   : > { %v2244_v39 = vadd.f32 %v2236_v31, %v2219_v20 }
 0x6a8   : > { %v5274_v42 = vmul.f32 -1.442695, %v2244_v39 }
 0x6aa   : > { %6050 = vpow2.f32 %v5274_v42 }
 0x6ab   : > { %v2220_v50 = vpop.f32.mrf.mxu2  ;;  %6052 = vpow2.f32 %v5273_v46 }
 0x6ac   : > { %v2221_v52 = vadd.f32 %v2220_v50, %v2150_v43 }
 0x6ae   : > { %v2245_v32 = vadd.f32 %v2237_v40, %v2221_v52 }
 0x6b0   : > { %v5275_v53 = vmul.f32 -1.442695, %v2245_v32  ;;  %v6051_v28 = vpop.eup %6050 }
 0x6b1   : > { %v6053_v56 = vpop.eup %6052  ;;  %v7229_v58 = vadd.f32 1.0, %v6051_v28 }
 0x6b2   : > { %6054 = vpow2.f32 %v5275_v53  ;;  %v7231_v36 = vadd.f32 1.0, %v6053_v56 }
 0x6b3   : > { %v2223_v55 = vpop.f32.mrf.mxu2  ;;  %6056 = vrcp.f32 %v7227_v61  ;;  %vm2301_vm4 = vweird.f32 %v7229_v58  ;;  %v2307_v40 = vand.u32 2147483648, %v7229_v58  ;;  %v2305_v53 = vand.u32 2147483647, %v7229_v58 }
 0x6b4   : > { %6058 = vrcp.f32 %v7229_v58  ;;  %v2224_v4 = vadd.f32 %v2223_v55, %v2155_v62  ;;  %vm2286_vm10 = vweird.f32 %v7231_v36  ;;  %v2292_v56 = vand.u32 2147483648, %v7231_v36 }
 0x6b6   : > { %v2246_v42 = vadd.f32 %v2238_v34, %v2224_v4  ;;  %v5815_v34 = vld [vmem:[%s8529_s11 + $0x30] sm:$0xff] }
 0x6b7   : > { %5218 = vmatmul.msk.bf16.gmra.mxu0 %vm1585_vm11, %v5815_v34  ;;  %v5289_v34 = vld [vmem:[%s8530_s12 + $0xa8] sm:$0xff] }
 0x6b8   : > { %v6055_v2 = vpop.eup %6054 }
 0x6b9   : > { %v7234_v3 = vadd.f32 1.0, %v6055_v2  ;;  %v7239_v6 = vpop.eup %6056 }
 0x6ba   : > { %v7241_v7 = vpop.eup %6058  ;;  %v2267_v13 = vmul.f32 %v7239_v6, %v7227_v61  ;;  %vm2272_vm0 = vweird.f32 %v7239_v6 }
 0x6bb   : > { %6060 = vrcp.f32 %v7234_v3  ;;  %v2225_v23 = vpop.f32.mrf.mxu2  ;;  %v2297_v11 = vmul.f32 %v7241_v7, %v7229_v58  ;;  %vm2302_vm14 = vweird.f32 %v7241_v7  ;;  %v2322_v52 = vand.u32 2147483648, %v7234_v3 }
 0x6bc   : > { %6062 = vrcp.f32 %v7231_v36  ;;  %v2226_v47 = vadd.f32 %v2225_v23, %v2160_v15  ;;  %v2268_v26 = vsub.f32 1.0, %v2267_v13  ;;  %vm7267_vm8 = vmor %vm2301_vm4, %vm2302_vm14  ;;  %vm2316_vm9 = vweird.f32 %v7234_v3 }
 0x6bd   : > { %v2298_v49 = vsub.f32 1.0, %v2297_v11  ;;  %v2320_v54 = vand.u32 2147483647, %v7234_v3  ;;  %v2290_v23 = vand.u32 2147483647, %v7231_v36  ;;  %v2323_v11 = vor.u32 1.1754944e-38, %v2322_v52 }
 0x6be   : > { %v2247_v30 = vadd.f32 %v2239_v59, %v2226_v47  ;;  %v2269_v0 = vmul.f32 %v7239_v6, %v2268_v26  ;;  %vm2271_vm14 = vweird.f32 %v7227_v61  ;;  %vm2306_vm4 = vcmp.eq.f32.partialorder %v2305_v53, 8.507059e+37  ;;  %v5824_v53 = vld [vmem:[%s8529_s11 + $0x58] sm:$0xff] }
 0x6bf   : > { %v2299_v38 = vmul.f32 %v7241_v7, %v2298_v49  ;;  %v2293_v47 = vor.u32 1.1754944e-38, %v2292_v56 }
 0x6c1   : > { %v7243_v44 = vpop.eup %6060  ;;  %v2300_v46 = vadd.f32 %v7241_v7, %v2299_v38  ;;  %v5823_v38 = vld [vmem:[%s8529_s11 + $0x50] sm:$0xff] }
 0x6c2   : > { %v7245_v8 = vpop.eup %6062  ;;  %v2312_v12 = vmul.f32 %v7243_v44, %v7234_v3  ;;  %vm2317_vm2 = vweird.f32 %v7243_v44  ;;  %v2270_v3 = vadd.f32 %v7239_v6, %v2269_v0 }
 0x6c3   : > { %v2228_v9 = vpop.f32.mrf.mxu2  ;;  %v2282_v14 = vmul.f32 %v7245_v8, %v7231_v36  ;;  %vm2287_vm12 = vweird.f32 %v7245_v8  ;;  %vm7275_vm7 = vmor %vm2316_vm9, %vm2317_vm2  ;;  %v2304_v58 = vsel %vm7267_vm8, %v7241_v7, %v2300_v46  ;;  %vm2321_vm8 = vcmp.eq.f32.partialorder %v2320_v54, 8.507059e+37 }
 0x6c4   : > { %v2229_v45 = vadd.f32 %v2228_v9, %v2165_v51  ;;  %v2313_v18 = vsub.f32 1.0, %v2312_v12  ;;  %v2308_v9 = vor.u32 1.1754944e-38, %v2307_v40  ;;  %v2277_v12 = vand.u32 2147483648, %v7227_v61  ;;  %vm7294_vm2 = vmor %vm2286_vm10, %vm2287_vm12 }
 0x6c5   : > { %v2283_v10 = vsub.f32 1.0, %v2282_v14  ;;  %vm2273_vm9 = vmor %vm2271_vm14, %vm2272_vm0  ;;  %vm2291_vm12 = vcmp.eq.f32.partialorder %v2290_v23, 8.507059e+37 }
 0x6c6   : > { %v2248_v63 = vadd.f32 %v2240_v16, %v2229_v45  ;;  %v2314_v20 = vmul.f32 %v7243_v44, %v2313_v18  ;;  %v2309_v15 = vsel %vm2306_vm4, %v2308_v9, %v2304_v58  ;;  %v2274_v18 = vsel %vm2273_vm9, %v7239_v6, %v2270_v3  ;;  %v5822_v6 = vld [vmem:[%s8529_s11 + $0x48] sm:$0xff] }
 0x6c7   : > { %v2284_v41 = vmul.f32 %v7245_v8, %v2283_v10  ;;  %v2278_v62 = vor.u32 1.1754944e-38, %v2277_v12 }
 0x6c8   : > { %6064 = vtanh.f32 %v2248_v63  ;;  %v2315_v50 = vadd.f32 %v7243_v44, %v2314_v20 }
 0x6c9   : > { %6066 = vtanh.f32 %v2247_v30  ;;  %v2285_v28 = vadd.f32 %v7245_v8, %v2284_v41  ;;  %v2372_v30 = vpop.permute.xlu1 %2371 }
 0x6ca   : > { %v2319_v2 = vsel %vm7275_vm7, %v7243_v44, %v2315_v50  ;;  %v2275_v44 = vand.u32 2147483647, %v7227_v61 }
 0x6cb   : > { %v2230_v31 = vpop.f32.mrf.mxu2  ;;  %v2289_v36 = vsel %vm7294_vm2, %v7245_v8, %v2285_v28  ;;  %v2324_v45 = vsel %vm2321_vm8, %v2323_v11, %v2319_v2 }
 0x6cc   : > { %v2231_v39 = vadd.f32 %v2230_v31, %v2170_v1  ;;  %v2294_v26 = vsel %vm2291_vm12, %v2293_v47, %v2289_v36  ;;  %vm2276_vm7 = vcmp.eq.f32.partialorder %v2275_v44, 8.507059e+37  ;;  %v5821_v1 = vld [vmem:[%s8529_s11 + $0x40] sm:$0xff]  ;;  %v2367_v31 = vpop.permute.xlu0 %2366  ;;  %v5330_v47 = vld [vmem:[%s8528_s10 + $0xf0] sm:$0xff] }
 0x6cd   : > { %v2279_v4 = vsel %vm2276_vm7, %v2278_v62, %v2274_v18  ;;  %v5329_v18 = vld [vmem:[%s8528_s10 + $0xe8] sm:$0xff]  ;;  %v5290_v62 = vld [vmem:[%s8530_s12 + $0xb0] sm:$0xff] }
 0x6ce   : > { %v2249_v43 = vadd.f32 %v2241_v24, %v2231_v39  ;;  %v6065_v51 = vpop.eup %6064  ;;  %v5816_v24 = vld [vmem:[%s8529_s11 + $0x38] sm:$0xff]  ;;  %v2357_v39 = vpop.permute.xlu2 %2356 }
 0x6cf   : > { %v6067_v7 = vpop.eup %6066  ;;  %v2332_v16 = vmul.f32 %v6065_v51, %v2309_v15  ;;  %5219 = vmatmul.msk.bf16.gmra.mxu0 %vm1585_vm11, %v5816_v24  ;;  %v5326_v51 = vld [vmem:[%s8528_s10 + $0xd0] sm:$0xff] }
 0x6d0   : > { %6068 = vtanh.f32 %v2249_v43  ;;  %v2331_v10 = vmul.f32 %v6067_v7, %v2294_v26  ;;  %v5198_v26 = vld [vmem:[%s8530_s12 + $0x70] sm:$0xff] }
 0x6d1   : > { %6070 = vtanh.f32 %v2246_v42  ;;  %v2485_v41 = vpop.permute.xlu1 %2484  ;;  %v2875_v24 = vld [vmem:[%s8532_s14 + $0x10] sm:$0xff] }
 0x6d4   : > { %v2362_v42 = vpop.permute.xlu0 %2361 }
 0x6d6   : > { %v6069_v14 = vpop.eup %6068  ;;  %v2490_v7 = vpop.permute.xlu2 %2489 }
 0x6d7   : > { %v2333_v49 = vmul.f32 %v6069_v14, %v2324_v45  ;;  %v6071_v59 = vpop.eup %6070  ;;  %v5328_v45 = vld [vmem:[%s8528_s10 + $0xe0] sm:$0xff] }
 0x6d8   : > { %v2330_v8 = vmul.f32 %v6071_v59, %v2279_v4  ;;  %v5331_v59 = vld [vmem:[%s8528_s10 + $0xf8] sm:$0xff] }
 0x6d9   : > { %v2344_v61 = vpack.c.bf16 %v2333_v49, %v2332_v16  ;;  %v2480_v54 = vpop.permute.xlu1 %2479  ;;  %v5324_v16 = vld [vmem:[%s8528_s10 + $0xc0] sm:$0xff]  ;;  %v1524_v49 = vld [vmem:[%s8530_s12 + $0x38] sm:$0xff] }
 0x6da   : > { %v2343_v63 = vpack.c.bf16 %v2331_v10, %v2330_v8  ;;  %v1522_v10 = vld [vmem:[%s8530_s12 + $0x28] sm:$0xff]  ;;  %v5291_v4 = vld [vmem:[%s8530_s12 + $0xb8] sm:$0xff] }
 0x6db   : > { %2432 = vmatpush.bf16.msrb.mxu1 %v2344_v61  ;;  %v1523_v61 = vld [vmem:[%s8530_s12 + $0x30] sm:$0xff]  ;;  %v5199_v8 = vld [vmem:[%s8530_s12 + $0x78] sm:$0xff] }
 0x6dc   : > { %v2475_v28 = vpop.permute.xlu0 %2474 }
 0x6df   : > { %2433 = vmatpush.bf16.msrb.mxu1 %v2343_v63  ;;  %v5382_v63 = vld [vmem:[%s8530_s12 + $0xf0] sm:$0xff] }
 0x6e2   : > { %5308 = vmatmul.msk.bf16.vlgmr.msrb.gmra.mxu1 %vm1585_vm11, %v5821_v1  ;;  %v5196_v1 = vld [vmem:[%s8530_s12 + $0x60] sm:$0xff] }
 0x6f2   : > { %5309 = vmatmul.msk.bf16.gmra.mxu1 %vm1585_vm11, %v5822_v6  ;;  %v1521_v6 = vld [vmem:[%s8530_s12 + $0x20] sm:$0xff] }
 0x702   : > { %5310 = vmatmul.msk.bf16.gmra.mxu1 %vm1585_vm11, %v5823_v38  ;;  %v5380_v38 = vld [vmem:[%s8530_s12 + $0xe0] sm:$0xff] }
 0x712   : > { %5311 = vmatmul.msk.bf16.gmra.mxu1 %vm1585_vm11, %v5824_v53 }
 0x75f   : > { %v2435_v20 = vpop.f32.mrf.mxu1 }
 0x760   : > { %v2436_v0 = vadd.f32 %v2435_v20, %v2357_v39  ;;  %v5288_v20 = vld [vmem:[%s8530_s12 + $0xa0] sm:$0xff]  ;;  %v2874_v39 = vld [vmem:[%s8532_s14 + $0x8] sm:$0xff] }
 0x762   : > { %v2455_v43 = vadd.f32 %v2436_v0, %v7117_v48  ;;  %v2876_v0 = vld [vmem:[%s8532_s14 + $0x18] sm:$0xff] }
 0x764   : > { %v2459_v40 = vmul.f32 0.70710677, %v2455_v43  ;;  %v2873_v43 = vld [vmem:[%s8532_s14] sm:$0xff] }
 0x766   : > { %v7330_v55 = vadd.f32 %v2475_v28, %v2459_v40 }
 0x767   : > { %v2437_v46 = vpop.f32.mrf.mxu1 }
 0x768   : > { %v2438_v50 = vadd.f32 %v2437_v46, %v2362_v42  ;;  %v2940_v42 = vld [vmem:[%s8534_s16] sm:$0xff]  ;;  %v2941_v46 = vld [vmem:[%s8534_s16 + $0x8] sm:$0xff] }
 0x76a   : > { %v2456_v52 = vadd.f32 %v2438_v50, %v7120_v17 }
 0x76c   : > { %v2460_v32 = vmul.f32 0.70710677, %v2456_v52 }
 0x76e   : > { %v7332_v56 = vadd.f32 %v2480_v54, %v2460_v32 }
 0x76f   : > { %v2440_v58 = vpop.f32.mrf.mxu1 }
 0x770   : > { %v5985_v48 = vpack.i.bf16 %v7332_v56, %v7330_v55  ;;  %v2522_v17 = vpack.c.bf16 %v7332_v56, %v7330_v55  ;;  %v2441_v2 = vadd.f32 %v2440_v58, %v2367_v31  ;;  %v5197_v31 = vld [vmem:[%s8530_s12 + $0x68] sm:$0xff]  ;;  %v5827_v56 = vld [vmem:[%s8527_s9 + $0x70] sm:$0xff] }
 0x771   : > { %v5826_v55 = vld [vmem:[%s8527_s9 + $0x68] sm:$0xff] }
 0x772   : > { %5986 = vrot.lane.b32.xlu0 %v5985_v48, %s8603_s1  ;;  %v2457_v3 = vadd.f32 %v2441_v2, %v7137_v33  ;;  %v5325_v33 = vld [vmem:[%s8528_s10 + $0xc8] sm:$0xff] }
 0x774   : > { %v2461_v11 = vmul.f32 0.70710677, %v2457_v3 }
 0x776   : > { %v7345_v44 = vadd.f32 %v2485_v41, %v2461_v11  ;;  %v5381_v41 = vld [vmem:[%s8530_s12 + $0xe8] sm:$0xff] }
 0x777   : > { %v2442_v23 = vpop.f32.mrf.mxu1 }
 0x778   : > { %v2443_v9 = vadd.f32 %v2442_v23, %v2372_v30  ;;  %v5383_v30 = vld [vmem:[%s8530_s12 + $0xf8] sm:$0xff] }
 0x77a   : > { %v2458_v12 = vadd.f32 %v2443_v9, %v7140_v35  ;;  %2556 = vperm.xlu0 %5917, %v5326_v51   ;;  %v5327_v35 = vld [vmem:[%s8528_s10 + $0xd8] sm:$0xff] }
 0x77c   : > { %v2462_v13 = vmul.f32 0.70710677, %v2458_v12 }
 0x77e   : > { %v7347_v36 = vadd.f32 %v2490_v7, %v2462_v13  ;;  %v5825_v13 = vld [vmem:[%s8527_s9 + $0x60] sm:$0xff] }
 0x780   : > { %v5990_v14 = vpack.i.bf16 %v7347_v36, %v7345_v44  ;;  %v2523_v15 = vpack.c.bf16 %v7347_v36, %v7345_v44 }
 0x782   : > { %5991 = vrot.lane.b32.xlu1 %v5990_v14, %s8604_s25  ;;  %5981 = vrot.lane.b32.xlu2 %v5990_v14, %s8603_s1  ;;  %s8624_s1 = smov (!%p4926_p2), 1  }
 0x783   : > { %2551 = vperm.xlu0 %5917, %v5325_v33  }
 0x78a   : > { %2561 = vperm.xlu1 %5918, %v5327_v35   ;;  %5996 = vrot.lane.b32.xlu2 %v5985_v48, %s8604_s25  ;;  %s8558_s25 = smov (!%p4926_p2), 2  }
 0x78b   : > { %2566 = vperm.xlu0 %5917, %v5328_v45  }
 0x792   : > { %2576 = vperm.xlu1 %5918, %v5330_v47   ;;  %2546 = vperm.xlu2 %5919, %v5324_v16   ;;  %v2648_v16 = vld [vmem:[#allocation2 + $0x10] sm:$0xff] }
 0x793   : > { %1562 = vperm.xlu0 %5917, %v1524_v49  }
 0x79a   : > { %2571 = vperm.xlu1 %5918, %v5329_v18   ;;  %2581 = vperm.xlu2 %5919, %v5331_v59   ;;  %v2647_v18 = vld [vmem:[#allocation2 + $0xd0] sm:$0xff] }
 0x79b   : > { %2386 = vperm.xlu0 %5917, %v5290_v62  }
 0x7a2   : > { %1974 = vperm.xlu1 %5918, %v5198_v26   ;;  %1557 = vperm.xlu2 %5919, %v1523_v61  }
 0x7a3   : > { %1552 = vperm.xlu0 %5917, %v1522_v10  }
 0x7aa   : > { %2391 = vperm.xlu1 %5918, %v5291_v4   ;;  %1979 = vperm.xlu2 %5919, %v5199_v8  }
 0x7ab   : > { %2794 = vperm.xlu0 %5917, %v5382_v63  }
 0x7b2   : > { %1964 = vperm.xlu1 %5918, %v5196_v1   ;;  %1547 = vperm.xlu2 %5919, %v1521_v6   ;;  %v2649_v1 = vld [vmem:[#allocation2 + $0x28] sm:$0xff] }
 0x7b3   : > { %2381 = vperm.xlu0 %5917, %v5289_v34  }
 0x7ba   : > { %2799 = vperm.xlu1 %5918, %v5383_v30   ;;  %1969 = vperm.xlu2 %5919, %v5197_v31  }
 0x7bb   : > { %2889 = vperm.xlu0 %5917, %v2875_v24  }
 0x7c2   : > { %2784 = vperm.xlu1 %5918, %v5380_v38   ;;  %2376 = vperm.xlu2 %5919, %v5288_v20  }
 0x7c3   : > { %2884 = vperm.xlu0 %5917, %v2874_v39  }
 0x7ca   : > { %2894 = vperm.xlu1 %5918, %v2876_v0   ;;  %2789 = vperm.xlu2 %5919, %v5381_v41  }
 0x7d2   : > { %2944 = vperm.xlu1 %5918, %v2940_v42   ;;  %2879 = vperm.xlu2 %5919, %v2873_v43  }
 0x7da   : > { %2949 = vperm.xlu2 %5919, %v2941_v46  }
 0x7dc   : > { %v5982_v50 = vpop.permute.xlu2 %5981 }
 0x7dd   : > { %v5984_v40 = vunpack.i.h.bf16 %v5982_v50  ;;  %v5983_v52 = vunpack.i.l.bf16 %v5982_v50 }
 0x7df   : > { %v5349_v32 = vpack.c.bf16 %v5984_v40, %v5983_v52 }
 0x7e1   : > { %5350 = vmatpush.bf16.msk.msrb.mxu3 %vm6994_vm13, %v5349_v32 }
 0x7e4   : > { %v5987_v53 = vpop.permute.xlu0 %5986  ;;  %v5997_v48 = vpop.permute.xlu2 %5996 }
 0x7e5   : > { %v5989_v54 = vunpack.i.h.bf16 %v5987_v53  ;;  %v5988_v28 = vunpack.i.l.bf16 %v5987_v53  ;;  %v5999_v51 = vunpack.i.h.bf16 %v5997_v48  ;;  %v5998_v9 = vunpack.i.l.bf16 %v5997_v48 }
 0x7e7   : > { %v5352_v58 = vpack.c.bf16 %v5989_v54, %v5988_v28  ;;  %v5358_v12 = vpack.c.bf16 %v5999_v51, %v5998_v9 }
 0x7e9   : > { %5353 = vmatpush.bf16.msk.msrb.mxu3 %vm6994_vm13, %v5352_v58 }
 0x7ec   : > { %v2557_v44 = vpop.permute.xlu0 %2556  ;;  %v2547_v14 = vpop.permute.xlu2 %2546 }
 0x7ed   : > { %2620 = vmatpush.bf16.msrb.mxu3 %v2523_v15  ;;  %v2646_v15 = vld [vmem:[#allocation2 + $0xa8] sm:$0xff] }
 0x7f1   : > { %2621 = vmatpush.bf16.msrb.mxu3 %v2522_v17  ;;  %v5828_v17 = vld [vmem:[%s8527_s9 + $0x78] sm:$0xff] }
 0x7f4   : > { %v5992_v2 = vpop.permute.xlu1 %5991 }
 0x7f5   : > { %v5994_v3 = vunpack.i.h.bf16 %v5992_v2  ;;  %v5993_v23 = vunpack.i.l.bf16 %v5992_v2  ;;  %v2552_v35 = vpop.permute.xlu0 %2551 }
 0x7f7   : > { %v5355_v11 = vpack.c.bf16 %v5994_v3, %v5993_v23 }
 0x7f9   : > { %5356 = vmatpush.bf16.msk.msrb.mxu3 %vm7006_vm15, %v5355_v11 }
 0x7fc   : > { %v2562_v4 = vpop.permute.xlu1 %2561 }
 0x7fd   : > { %5359 = vmatpush.bf16.msk.msrb.mxu3 %vm7006_vm15, %v5358_v12  ;;  %v2652_v12 = vld [vmem:[#allocation2 + $0x20] sm:$0xff] }
 0x800   : > { %5360 = vmatmul.msk.bf16.vlgmr.msrb.gmra.mxu3 %vm1365_vm6, %v5825_v13  ;;  %v2651_v13 = vld [vmem:[#allocation2 + $0xf8] sm:$0xff] }
 0x804   : > { %v2577_v50 = vpop.permute.xlu1 %2576 }
 0x80c   : > { %v2572_v3 = vpop.permute.xlu1 %2571 }
 0x810   : > { %5361 = vmatmul.msk.bf16.gmra.mxu3 %vm1365_vm6, %v5826_v55  ;;  %v2567_v55 = vpop.permute.xlu0 %2566 }
 0x820   : > { %5362 = vmatmul.msk.bf16.gmra.mxu3 %vm1365_vm6, %v5827_v56 }
 0x830   : > { %5363 = vmatmul.msk.bf16.gmra.mxu3 %vm1365_vm6, %v5828_v17 }
 0x883   : > { %v2625_v7 = vpop.f32.mrf.mxu3 }
 0x884   : > { %v2626_v33 = vadd.f32 %v2625_v7, %v2547_v14  ;;  %v2650_v14 = vld [vmem:[#allocation2 + $0xa0] sm:$0xff] }
 0x886   : > { %v2654_v49 = vadd.f32 %v2646_v15, %v2626_v33 }
 0x888   : > { %v5364_v61 = vmul.f32 -1.442695, %v2654_v49 }
 0x88a   : > { %6072 = vpow2.f32 %v5364_v61 }
 0x88b   : > { %v2627_v36 = vpop.f32.mrf.mxu3 }
 0x88c   : > { %v2628_v45 = vadd.f32 %v2627_v36, %v2552_v35  ;;  %v2582_v36 = vpop.permute.xlu2 %2581  ;;  %v2653_v35 = vld [vmem:[#allocation2 + $0x98] sm:$0xff] }
 0x88e   : > { %v2655_v26 = vadd.f32 %v2647_v18, %v2628_v45 }
 0x890   : > { %v5365_v8 = vmul.f32 -1.442695, %v2655_v26  ;;  %v6073_v31 = vpop.eup %6072 }
 0x891   : > { %v7473_v39 = vadd.f32 1.0, %v6073_v31 }
 0x893   : > { %v2630_v47 = vpop.f32.mrf.mxu3 }
 0x894   : > { %v2631_v59 = vadd.f32 %v2630_v47, %v2557_v44 }
 0x896   : > { %v2656_v62 = vadd.f32 %v2648_v16, %v2631_v59 }
 0x898   : > { %v5366_v10 = vmul.f32 -1.442695, %v2656_v62 }
 0x89a   : > { %6074 = vpow2.f32 %v5366_v10 }
 0x89b   : > { %v2632_v63 = vpop.f32.mrf.mxu3  ;;  %6076 = vpow2.f32 %v5365_v8 }
 0x89c   : > { %v2633_v6 = vadd.f32 %v2632_v63, %v2562_v4 }
 0x89e   : > { %v2657_v34 = vadd.f32 %v2649_v1, %v2633_v6 }
 0x8a0   : > { %v5367_v30 = vmul.f32 -1.442695, %v2657_v34  ;;  %v6075_v24 = vpop.eup %6074 }
 0x8a1   : > { %v6077_v20 = vpop.eup %6076  ;;  %v7475_v0 = vadd.f32 1.0, %v6075_v24 }
 0x8a2   : > { %6078 = vpow2.f32 %v5367_v30  ;;  %v7477_v42 = vadd.f32 1.0, %v6077_v20 }
 0x8a3   : > { %v2635_v38 = vpop.f32.mrf.mxu3  ;;  %6080 = vrcp.f32 %v7473_v39  ;;  %vm2713_vm2 = vweird.f32 %v7475_v0  ;;  %v2719_v10 = vand.u32 2147483648, %v7475_v0  ;;  %v2717_v63 = vand.u32 2147483647, %v7475_v0 }
 0x8a4   : > { %6082 = vrcp.f32 %v7475_v0  ;;  %v2636_v7 = vadd.f32 %v2635_v38, %v2567_v55  ;;  %vm2698_vm7 = vweird.f32 %v7477_v42  ;;  %v2704_v30 = vand.u32 2147483648, %v7477_v42 }
 0x8a5   : > { %v2702_v20 = vand.u32 2147483647, %v7477_v42 }
 0x8a6   : > { %v2658_v59 = vadd.f32 %v2650_v14, %v2636_v7  ;;  %v5832_v7 = vld [vmem:[%s8529_s11 + $0x78] sm:$0xff] }
 0x8a8   : > { %v6079_v41 = vpop.eup %6078 }
 0x8a9   : > { %v7480_v43 = vadd.f32 1.0, %v6079_v41  ;;  %v7485_v40 = vpop.eup %6080  ;;  %v2720_v41 = vor.u32 1.1754944e-38, %v2719_v10 }
 0x8aa   : > { %v7487_v52 = vpop.eup %6082  ;;  %v2679_v48 = vmul.f32 %v7485_v40, %v7473_v39  ;;  %vm2684_vm12 = vweird.f32 %v7485_v40 }
 0x8ab   : > { %6084 = vrcp.f32 %v7480_v43  ;;  %v2637_v46 = vpop.f32.mrf.mxu3  ;;  %v2709_v54 = vmul.f32 %v7487_v52, %v7475_v0  ;;  %vm2714_vm10 = vweird.f32 %v7487_v52  ;;  %v2734_v4 = vand.u32 2147483648, %v7480_v43 }
 0x8ac   : > { %6086 = vrcp.f32 %v7477_v42  ;;  %v2638_v11 = vadd.f32 %v2637_v46, %v2572_v3  ;;  %v2680_v56 = vsub.f32 1.0, %v2679_v48  ;;  %vm7513_vm4 = vmor %vm2713_vm2, %vm2714_vm10  ;;  %vm2728_vm8 = vweird.f32 %v7480_v43 }
 0x8ad   : > { %v2710_v51 = vsub.f32 1.0, %v2709_v54  ;;  %v2732_v1 = vand.u32 2147483647, %v7480_v43  ;;  %vm2683_vm10 = vweird.f32 %v7473_v39  ;;  %v2689_v46 = vand.u32 2147483648, %v7473_v39 }
 0x8ae   : > { %v2659_v33 = vadd.f32 %v2651_v13, %v2638_v11  ;;  %v2681_v49 = vmul.f32 %v7485_v40, %v2680_v56  ;;  %vm2718_vm2 = vcmp.eq.f32.partialorder %v2717_v63, 8.507059e+37  ;;  %v2705_v48 = vor.u32 1.1754944e-38, %v2704_v30  ;;  %v5829_v56 = vld [vmem:[%s8529_s11 + $0x60] sm:$0xff] }
 0x8af   : > { %v2711_v45 = vmul.f32 %v7487_v52, %v2710_v51 }
 0x8b0   : > { %v2682_v38 = vadd.f32 %v7485_v40, %v2681_v49  ;;  %v1975_v49 = vpop.permute.xlu1 %1974 }
 0x8b1   : > { %v7489_v32 = vpop.eup %6084  ;;  %v2712_v26 = vadd.f32 %v7487_v52, %v2711_v45 }
 0x8b2   : > { %v7491_v53 = vpop.eup %6086  ;;  %v2724_v28 = vmul.f32 %v7489_v32, %v7480_v43  ;;  %vm2729_vm14 = vweird.f32 %v7489_v32  ;;  %v2735_v43 = vor.u32 1.1754944e-38, %v2734_v4 }
 0x8b3   : > { %v2640_v58 = vpop.f32.mrf.mxu3  ;;  %v2694_v2 = vmul.f32 %v7491_v53, %v7477_v42  ;;  %vm2699_vm0 = vweird.f32 %v7491_v53  ;;  %vm7521_vm9 = vmor %vm2728_vm8, %vm2729_vm14  ;;  %v2716_v31 = vsel %vm7513_vm4, %v7487_v52, %v2712_v26  ;;  %vm2733_vm4 = vcmp.eq.f32.partialorder %v2732_v1, 8.507059e+37 }
 0x8b4   : > { %v2641_v23 = vadd.f32 %v2640_v58, %v2577_v50  ;;  %v2725_v9 = vsub.f32 1.0, %v2724_v28  ;;  %vm7540_vm14 = vmor %vm2698_vm7, %vm2699_vm0  ;;  %v2721_v28 = vsel %vm2718_vm2, %v2720_v41, %v2716_v31  ;;  %vm2703_vm0 = vcmp.eq.f32.partialorder %v2702_v20, 8.507059e+37 }
 0x8b5   : > { %v2695_v17 = vsub.f32 1.0, %v2694_v2  ;;  %vm2685_vm8 = vmor %vm2683_vm10, %vm2684_vm12 }
 0x8b6   : > { %v2660_v44 = vadd.f32 %v2652_v12, %v2641_v23  ;;  %v2726_v47 = vmul.f32 %v7489_v32, %v2725_v9  ;;  %v2686_v23 = vsel %vm2685_vm8, %v7485_v40, %v2682_v38  ;;  %v2690_v9 = vor.u32 1.1754944e-38, %v2689_v46  ;;  %v5830_v40 = vld [vmem:[%s8529_s11 + $0x68] sm:$0xff] }
 0x8b7   : > { %v2696_v18 = vmul.f32 %v7491_v53, %v2695_v17  ;;  %v5831_v17 = vld [vmem:[%s8529_s11 + $0x70] sm:$0xff] }
 0x8b8   : > { %6088 = vtanh.f32 %v2660_v44  ;;  %v2727_v61 = vadd.f32 %v7489_v32, %v2726_v47  ;;  %v2033_v44 = vpop.f32.mrf.mxu0  ;;  %v1563_v47 = vpop.permute.xlu0 %1562 }
 0x8b9   : > { %6090 = vtanh.f32 %v2659_v33  ;;  %v2697_v6 = vadd.f32 %v7491_v53, %v2696_v18  ;;  %v2392_v10 = vpop.permute.xlu1 %2391  ;;  %v1625_v50 = vadd.f32 %v7225_v60, %v1563_v47 }
 0x8ba   : > { %v2731_v24 = vsel %vm7521_vm9, %v7489_v32, %v2727_v61  ;;  %v2687_v32 = vand.u32 2147483647, %v7473_v39 }
 0x8bb   : > { %v2642_v15 = vpop.f32.mrf.mxu3  ;;  %v2701_v42 = vsel %vm7540_vm14, %v7491_v53, %v2697_v6  ;;  %v2736_v58 = vsel %vm2733_vm4, %v2735_v43, %v2731_v24 }
 0x8bc   : > { %v2643_v16 = vadd.f32 %v2642_v15, %v2582_v36  ;;  %v2706_v11 = vsel %vm2703_vm0, %v2705_v48, %v2701_v42  ;;  %vm2688_vm9 = vcmp.eq.f32.partialorder %v2687_v32, 8.507059e+37 }
 0x8bd   : > { %v2691_v13 = vsel %vm2688_vm9, %v2690_v9, %v2686_v23 }
 0x8be   : > { %v2661_v62 = vadd.f32 %v2653_v35, %v2643_v16  ;;  %v6089_v0 = vpop.eup %6088  ;;  %v1558_v35 = vpop.permute.xlu2 %1557 }
 0x8bf   : > { %v6091_v52 = vpop.eup %6090  ;;  %v2744_v2 = vmul.f32 %v6089_v0, %v2721_v28  ;;  %v1623_v41 = vadd.f32 %v7223_v25, %v1558_v35 }
 0x8c0   : > { %6092 = vtanh.f32 %v2661_v62  ;;  %v2743_v12 = vmul.f32 %v6091_v52, %v2706_v11  ;;  %v2035_v36 = vpop.f32.mrf.mxu0  ;;  %v2445_v62 = vpop.f32.mrf.mxu1 }
 0x8c1   : > { %6094 = vtanh.f32 %v2658_v59  ;;  %v2387_v59 = vpop.permute.xlu0 %2386  ;;  %v1965_v6 = vpop.permute.xlu1 %1964 }
 0x8c2   : > { %v2034_v28 = vadd.f32 %v2033_v44, %v1965_v6 }
 0x8c6   : > { %v6093_v54 = vpop.eup %6092  ;;  %v1980_v16 = vpop.permute.xlu2 %1979 }
 0x8c7   : > { %v2745_v3 = vmul.f32 %v6093_v54, %v2736_v58  ;;  %v6095_v51 = vpop.eup %6094 }
 0x8c8   : > { %v2742_v53 = vmul.f32 %v6095_v51, %v2691_v13  ;;  %v2038_v14 = vpop.f32.mrf.mxu0  ;;  %v2447_v8 = vpop.f32.mrf.mxu1 }
 0x8c9   : > { %v2756_v39 = vpack.c.bf16 %v2745_v3, %v2744_v2  ;;  %v1553_v4 = vpop.permute.xlu0 %1552  ;;  %v2800_v38 = vpop.permute.xlu1 %2799  ;;  %v2039_v20 = vadd.f32 %v2038_v14, %v1975_v49  ;;  %v5834_v49 = vld [vmem:[%s8531_s13 + $0x8] sm:$0xff] }
 0x8ca   : > { %v2755_v55 = vpack.c.bf16 %v2743_v12, %v2742_v53  ;;  %v1620_v54 = vadd.f32 %v7221_v22, %v1553_v4 }
 0x8cb   : > { %2840 = vmatpush.bf16.msra.mxu0 %v2756_v39  ;;  %v2053_v32 = vadd.f32 %v2039_v20, %v1623_v41  ;;  %v5835_v41 = vld [vmem:[%s8533_s15] sm:$0xff] }
 0x8ce   : > { %v1548_v26 = vpop.permute.xlu2 %1547 }
 0x8cf   : > { %2841 = vmatpush.bf16.msra.mxu0 %v2755_v55  ;;  %v1618_v48 = vadd.f32 %v7219_v5, %v1548_v26 }
 0x8d0   : > { %v2040_v33 = vpop.f32.mrf.mxu0  ;;  %v2450_v31 = vpop.f32.mrf.mxu1 }
 0x8d1   : > { %v2795_v34 = vpop.permute.xlu0 %2794  ;;  %v2041_v46 = vadd.f32 %v2040_v33, %v1980_v16  ;;  %v2451_v2 = vadd.f32 %v2450_v31, %v2387_v59  ;;  %v2051_v25 = vadd.f32 %v2034_v28, %v1618_v48  ;;  %v2785_v53 = vpop.permute.xlu1 %2784  ;;  %v5833_v16 = vld [vmem:[%s8531_s13] sm:$0xff] }
 0x8d2   : > { %5400 = vmatmul.msk.bf16.vlgmr.msra.gmra.mxu0 %vm1585_vm11, %v5829_v56 }
 0x8d3   : > { %v2054_v51 = vadd.f32 %v2041_v46, %v1625_v50  ;;  %v2465_v12 = vadd.f32 %v2451_v2, %v2053_v32 }
 0x8d6   : > { %v1970_v1 = vpop.permute.xlu2 %1969 }
 0x8d7   : > { %v2036_v42 = vadd.f32 %v2035_v36, %v1970_v1 }
 0x8d8   : > { %v2452_v43 = vpop.f32.mrf.mxu1 }
 0x8d9   : > { %v2382_v52 = vpop.permute.xlu0 %2381  ;;  %v2453_v58 = vadd.f32 %v2452_v43, %v2392_v10  ;;  %v2052_v11 = vadd.f32 %v2036_v42, %v1620_v54  ;;  %v2895_v4 = vpop.permute.xlu1 %2894 }
 0x8da   : > { %v2448_v3 = vadd.f32 %v2447_v8, %v2382_v52 }
 0x8db   : > { %v2466_v13 = vadd.f32 %v2453_v58, %v2054_v51 }
 0x8dc   : > { %v2464_v56 = vadd.f32 %v2448_v3, %v2052_v11 }
 0x8de   : > { %v2377_v24 = vpop.permute.xlu2 %2376 }
 0x8df   : > { %v2446_v60 = vadd.f32 %v2445_v62, %v2377_v24 }
 0x8e1   : > { %v2890_v62 = vpop.permute.xlu0 %2889  ;;  %v2945_v43 = vpop.permute.xlu1 %2944 }
 0x8e2   : > { %5401 = vmatmul.msk.bf16.gmra.mxu0 %vm1585_vm11, %v5830_v40 }
 0x8e6   : > { %v2790_v9 = vpop.permute.xlu2 %2789 }
 0x8ee   : > { %v2880_v6 = vpop.permute.xlu2 %2879 }
 0x8f2   : > { %5402 = vmatmul.msk.bf16.gmra.mxu0 %vm1585_vm11, %v5831_v17 }
 0x8f6   : > { %v2950_v52 = vpop.permute.xlu2 %2949 }
 0x902   : > { %5403 = vmatmul.msk.bf16.gmra.mxu0 %vm1585_vm11, %v5832_v7  ;;  %v2463_v7 = vadd.f32 %v2446_v60, %v2051_v25 }
 0x94f   : > { %v2843_v15 = vpop.f32.mrf.mxu0 }
 0x957   : > { %v2844_v45 = vpop.f32.mrf.mxu0 }
 0x95f   : > { %v2846_v18 = vpop.f32.mrf.mxu0 }
 0x967   : > { %v2847_v61 = vpop.f32.mrf.mxu0 }
 0x968   : > { %v2885_v61 = vpop.permute.xlu0 %2884 }
 0x96f   : > { %v2849_v63 = vpop.f32.mrf.mxu0 }
 0x970   : > { %v2850_v40 = vadd.f32 %v2849_v63, %v2785_v53 }
 0x972   : > { %v2859_v36 = vadd.f32 %v2850_v40, %v2463_v7 }
 0x974   : > { %v2867_v45 = vmul.f32 0.5, %v2859_v36 }
 0x977   : > { %v2851_v30 = vpop.f32.mrf.mxu0 }
 0x978   : > { %v2852_v39 = vadd.f32 %v2851_v30, %v2790_v9 }
 0x97a   : > { %v2860_v44 = vadd.f32 %v2852_v39, %v2464_v56 }
 0x97c   : > { %v2868_v15 = vmul.f32 0.5, %v2860_v44 }
 0x97e   : > { %v2871_v47 = vpack.c.bf16 %v2868_v15, %v2867_v45 }
 0x97f   : > { %v2854_v0 = vpop.f32.mrf.mxu0 }
 0x980   : > { %v2855_v23 = vadd.f32 %v2854_v0, %v2795_v34 }
 0x982   : > { %v2861_v22 = vadd.f32 %v2855_v23, %v2465_v12 }
 0x984   : > { %v2869_v14 = vmul.f32 0.5, %v2861_v22 }
 0x987   : > { %v2856_v55 = vpop.f32.mrf.mxu0 }
 0x988   : > { %v2857_v17 = vadd.f32 %v2856_v55, %v2800_v38 }
 0x98a   : > { %v2862_v5 = vadd.f32 %v2857_v17, %v2466_v13 }
 0x98c   : > { %v2870_v33 = vmul.f32 0.5, %v2862_v5 }
 0x98e   : > { %v2872_v35 = vpack.c.bf16 %v2870_v33, %v2869_v14 }
 0x990   : > { %2919 = vmatpush.bf16.msra.mxu2 %v2872_v35 }
 0x994   : > { %2920 = vmatpush.bf16.msra.mxu2 %v2871_v47 }
 0x997   : > { %5412 = vmatmul.msk.bf16.vlgmr.msra.gmra.mxu2 %vm1585_vm11, %v5833_v16 }
 0x9a7   : > { %5413 = vmatmul.msk.bf16.gmra.mxu2 %vm1585_vm11, %v5834_v49 }
 0xa1a   : > { %v2922_v18 = vpop.f32.mrf.mxu2 }
 0xa1b   : > { %v2923_v34 = vadd.f32 %v2922_v18, %v2880_v6 }
 0xa1d   : > { %v2932_v20 = vmax.f32 %v2923_v34, 0.0 }
 0xa22   : > { %v2924_v59 = vpop.f32.mrf.mxu2 }
 0xa23   : > { %v2925_v63 = vadd.f32 %v2924_v59, %v2885_v61 }
 0xa25   : > { %v2933_v24 = vmax.f32 %v2925_v63, 0.0 }
 0xa27   : > { %v2938_v0 = vpack.c.bf16 %v2933_v24, %v2932_v20 }
 0xa2a   : > { %v2927_v26 = vpop.f32.mrf.mxu2 }
 0xa2b   : > { %v2928_v10 = vadd.f32 %v2927_v26, %v2890_v62 }
 0xa2d   : > { %v2934_v30 = vmax.f32 %v2928_v10, 0.0 }
 0xa32   : > { %v2929_v8 = vpop.f32.mrf.mxu2 }
 0xa33   : > { %v2930_v1 = vadd.f32 %v2929_v8, %v2895_v4 }
 0xa35   : > { %v2935_v31 = vmax.f32 %v2930_v1, 0.0 }
 0xa37   : > { %v2939_v38 = vpack.c.bf16 %v2935_v31, %v2934_v30 }
 0xa39   : > { %2966 = vmatpush.bf16.msra.mxu1 %v2939_v38 }
 0xa3d   : > { %2967 = vmatpush.bf16.msra.mxu1 %v2938_v0 }
 0xa40   : > { %5418 = vmatmul.msk.bf16.vlgmr.msra.gmra.mxu1 %vm1585_vm11, %v5835_v41 }
 0xabd   : > { %v2969_v46 = vpop.f32.mrf.mxu1 }
 0xabe   : > { %v7583_v50 = vadd.f32 %v2969_v46, %v2945_v43 }
 0xac2   : > { %2976 = sbr.rel (%p4926_p2) target bundleno = 5287 (0x14a7), region = 108 }
 0xac5   : > { %v2971_v32 = vpop.f32.mrf.mxu1 }
 0xac6   : > { %v7585_v42 = vadd.f32 %v2971_v32, %v2950_v52 }
 0xac7   : > { %v2993_v54 = vld [vmem:[%s8526_s8 + $0x10] sm:$0xff]  ;;  %v2991_v28 = vld [vmem:[%s8526_s8] sm:$0xff]  ;;  %v2981_v58 = vstv %s6692_s29  ;;  %v6344_v48 = vmov 0   ;;  %v2978_v23 = vstv %s2977_s2  ;;  %s8556_s2 = smov 1  }
 0xac8   : > { %6097 = vset.pattern.permute.xlu1 %v6344_v48  ;;  %6096 = vset.pattern.permute.xlu0 %v6344_v48  ;;  %v2982_v2 = vmul.f32 %v2981_v58, %v7583_v50  ;;  %v2983_v3 = vmul.f32 %v2981_v58, %v7585_v42  ;;  %v3056_v51 = vld [vmem:[%s8522_s4 + $0x10] sm:$0xff]  ;;  %v2979_v9 = vmul.f32 %v2978_v23, %v6686_v29  ;;  %v2994_v13 = vld [vmem:[%s8526_s8 + $0x18] sm:$0xff]  ;;  %v2992_v60 = vld [vmem:[%s8526_s8 + $0x8] sm:$0xff] }
 0xac9   : > { %3007 = vperm.xlu0 %6096, %v2993_v54   ;;  %2997 = vperm.xlu1 %6097, %v2991_v28   ;;  %v2980_v11 = vmul.f32 %v2978_v23, %v6690_v19  ;;  %v5836_v53 = vld [vmem:[%s8525_s7] sm:$0xff]  ;;  %v3057_v55 = vld [vmem:[%s8522_s4 + $0x18] sm:$0xff]  ;;  %v3055_v40 = vld [vmem:[%s8522_s4 + $0x8] sm:$0xff] }
 0xaca   : > { %6098 = vset.pattern.permute.xlu2 %v6344_v48  ;;  %v2984_v25 = vsub.f32 %v2979_v9, %v2982_v2  ;;  %v3054_v56 = vld [vmem:[%s8522_s4] sm:$0xff]  ;;  %v5837_v22 = vld [vmem:[%s8525_s7 + $0x8] sm:$0xff]  ;;  %v3122_v4 = vld [vmem:[%s8528_s10 + $0x10] sm:$0xff] }
 0xacb   : > { %3070 = vperm.xlu2 %6098, %v3056_v51   ;;  %v2985_v39 = vsub.f32 %v2980_v11, %v2983_v3  ;;  %v3121_v38 = vld [vmem:[%s8528_s10 + $0x8] sm:$0xff]  ;;  %v3123_v0 = vld [vmem:[%s8528_s10 + $0x18] sm:$0xff]  ;;  %v3124_v41 = vld [vmem:[%s8528_s10 + $0x20] sm:$0xff] }
 0xacc   : > { %v3126_v43 = vld [vmem:[%s8528_s10 + $0x30] sm:$0xff]  ;;  %v3120_v46 = vld [vmem:[%s8528_s10] sm:$0xff]  ;;  %v3342_v52 = vld [vmem:[%s8530_s12 + $0x18] sm:$0xff] }
 0xacd   : > { %v2990_v12 = vpack.c.bf16 %v2985_v39, %v2984_v25  ;;  %v3125_v32 = vld [vmem:[%s8528_s10 + $0x28] sm:$0xff]  ;;  %v3127_v54 = vld [vmem:[%s8528_s10 + $0x38] sm:$0xff]  ;;  %v5488_v28 = vld [vmem:[%s8522_s4 + $0x30] sm:$0xff] }
 0xace   : > { %v3339_v58 = vld [vmem:[%s8530_s12] sm:$0xff]  ;;  %v3341_v48 = vld [vmem:[%s8530_s12 + $0x10] sm:$0xff]  ;;  %v5487_v2 = vld [vmem:[%s8522_s4 + $0x28] sm:$0xff] }
 0xacf   : > { %3038 = vmatpush.bf16.msra.mxu0 %v2990_v12  ;;  %v5489_v3 = vld [vmem:[%s8522_s4 + $0x38] sm:$0xff]  ;;  %v3340_v23 = vld [vmem:[%s8530_s12 + $0x8] sm:$0xff]  ;;  %v5486_v51 = vld [vmem:[%s8522_s4 + $0x20] sm:$0xff] }
 0xad0   : > { %v5854_v27 = vld [vmem:[%s8527_s9 + $0x40] sm:$0xff] }
 0xad1   : > { %3012 = vperm.xlu0 %6096, %v2994_v13   ;;  %3002 = vperm.xlu1 %6097, %v2992_v60  }
 0xad2   : > { %5428 = vmatmul.msk.bf16.vlgmr.msra.gmra.mxu0 %vm1197_vm1, %v5836_v53 }
 0xad3   : > { %3075 = vperm.xlu2 %6098, %v3057_v55  }
 0xad9   : > { %3060 = vperm.xlu0 %6096, %v3054_v56   ;;  %3065 = vperm.xlu1 %6097, %v3055_v40  }
 0xae2   : > { %5429 = vmatmul.msk.bf16.gmra.mxu0 %vm1197_vm1, %v5837_v22 }
 0xb25   : > { %v3071_v61 = vpop.permute.xlu2 %3070 }
 0xb2d   : > { %v3076_v34 = vpop.permute.xlu2 %3075 }
 0xb3b   : > { %v3008_v17 = vpop.permute.xlu0 %3007  ;;  %v2998_v7 = vpop.permute.xlu1 %2997 }
 0xb43   : > { %v3013_v5 = vpop.permute.xlu0 %3012  ;;  %v3003_v36 = vpop.permute.xlu1 %3002 }
 0xb4b   : > { %v3061_v47 = vpop.permute.xlu0 %3060  ;;  %v3066_v16 = vpop.permute.xlu1 %3065 }
 0xb4f   : > { %v3040_v44 = vpop.f32.mrf.mxu0 }
 0xb50   : > { %v7627_v14 = vadd.f32 %v3040_v44, %v2998_v7 }
 0xb52   : > { %v3050_v15 = vmax.f32 %v7627_v14, 0.0 }
 0xb54   : > { %v7635_v49 = vadd.f32 %v3061_v47, %v3050_v15  ;;  %v5840_v47 = vld [vmem:[%s8527_s9 + $0x10] sm:$0xff] }
 0xb57   : > { %v3042_v33 = vpop.f32.mrf.mxu0 }
 0xb58   : > { %v7630_v35 = vadd.f32 %v3042_v33, %v3003_v36  ;;  %v5838_v36 = vld [vmem:[%s8527_s9] sm:$0xff]  ;;  %v5839_v33 = vld [vmem:[%s8527_s9 + $0x8] sm:$0xff] }
 0xb5a   : > { %v3051_v45 = vmax.f32 %v7630_v35, 0.0 }
 0xb5c   : > { %v7639_v18 = vadd.f32 %v3066_v16, %v3051_v45  ;;  %v5841_v16 = vld [vmem:[%s8527_s9 + $0x18] sm:$0xff] }
 0xb5e   : > { %v6104_v59 = vpack.i.bf16 %v7639_v18, %v7635_v49  ;;  %v3108_v62 = vpack.c.bf16 %v7639_v18, %v7635_v49 }
 0xb5f   : > { %v3045_v26 = vpop.f32.mrf.mxu0 }
 0xb60   : > { %6105 = vrot.lane.b32.xlu0 %v6104_v59, %s8552_s19  ;;  %v7646_v10 = vadd.f32 %v3045_v26, %v3008_v17 }
 0xb62   : > { %v3052_v63 = vmax.f32 %v7646_v10, 0.0 }
 0xb64   : > { %v3080_v30 = vadd.f32 %v3071_v61, %v3052_v63  ;;  %v3229_v61 = vld [vmem:[#allocation2 + $0xb0] sm:$0xff] }
 0xb67   : > { %v3047_v8 = vpop.f32.mrf.mxu0 }
 0xb68   : > { %v7652_v1 = vadd.f32 %v3047_v8, %v3013_v5  ;;  %3140 = vperm.xlu0 %6096, %v3122_v4  }
 0xb6a   : > { %v3053_v6 = vmax.f32 %v7652_v1, 0.0  ;;  %v5501_v1 = vld [vmem:[%s8528_s10 + $0x58] sm:$0xff] }
 0xb6c   : > { %v3081_v31 = vadd.f32 %v3076_v34, %v3053_v6 }
 0xb6e   : > { %v6109_v24 = vpack.i.bf16 %v3081_v31, %v3080_v30  ;;  %v3109_v20 = vpack.c.bf16 %v3081_v31, %v3080_v30  ;;  %v3231_v30 = vld [vmem:[#allocation2 + $0xd8] sm:$0xff] }
 0xb70   : > { %6110 = vrot.lane.b32.xlu1 %v6109_v24, %s8556_s2  ;;  %6100 = vrot.lane.b32.xlu2 %v6109_v24, %s8552_s19  ;;  %v3230_v24 = vld [vmem:[#allocation2] sm:$0xff]  ;;  %s8623_s19 = smov 127  }
 0xb71   : > { %3135 = vperm.xlu0 %6096, %v3121_v38  }
 0xb78   : > { %3145 = vperm.xlu1 %6097, %v3123_v0   ;;  %6115 = vrot.lane.b32.xlu2 %v6104_v59, %s8556_s2 }
 0xb79   : > { %3150 = vperm.xlu0 %6096, %v3124_v41  }
 0xb80   : > { %3160 = vperm.xlu1 %6097, %v3126_v43   ;;  %3130 = vperm.xlu2 %6098, %v3120_v46  }
 0xb81   : > { %3364 = vperm.xlu0 %6096, %v3342_v52  }
 0xb88   : > { %3155 = vperm.xlu1 %6097, %v3125_v32   ;;  %3165 = vperm.xlu2 %6098, %v3127_v54   ;;  %v3232_v54 = vld [vmem:[#allocation2 + $0x18] sm:$0xff] }
 0xb89   : > { %3477 = vperm.xlu0 %6096, %v5488_v28  }
 0xb90   : > { %3349 = vperm.xlu1 %6097, %v3339_v58   ;;  %3359 = vperm.xlu2 %6098, %v3341_v48  }
 0xb91   : > { %3472 = vperm.xlu0 %6096, %v5487_v2  }
 0xb98   : > { %3482 = vperm.xlu1 %6097, %v5489_v3   ;;  %3354 = vperm.xlu2 %6098, %v3340_v23  }
 0xba0   : > { %3467 = vperm.xlu2 %6098, %v5486_v51  }
 0xbca   : > { %v6101_v9 = vpop.permute.xlu2 %6100 }
 0xbcb   : > { %v6103_v11 = vunpack.i.h.bf16 %v6101_v9  ;;  %v6102_v25 = vunpack.i.l.bf16 %v6101_v9 }
 0xbcd   : > { %v5447_v39 = vpack.c.bf16 %v6103_v11, %v6102_v25 }
 0xbcf   : > { %5448 = vmatpush.bf16.msk.msra.mxu1 %vm6799_vm3, %v5447_v39 }
 0xbd2   : > { %v6106_v12 = vpop.permute.xlu0 %6105  ;;  %v6116_v55 = vpop.permute.xlu2 %6115 }
 0xbd3   : > { %v6108_v13 = vunpack.i.h.bf16 %v6106_v12  ;;  %v6107_v60 = vunpack.i.l.bf16 %v6106_v12  ;;  %v6118_v17 = vunpack.i.h.bf16 %v6116_v55  ;;  %v6117_v7 = vunpack.i.l.bf16 %v6116_v55 }
 0xbd5   : > { %v5450_v53 = vpack.c.bf16 %v6108_v13, %v6107_v60  ;;  %v5456_v5 = vpack.c.bf16 %v6118_v17, %v6117_v7 }
 0xbd7   : > { %5451 = vmatpush.bf16.msk.msra.mxu1 %vm6799_vm3, %v5450_v53 }
 0xbda   : > { %v3141_v18 = vpop.permute.xlu0 %3140 }
 0xbdb   : > { %3204 = vmatpush.bf16.msra.mxu1 %v3109_v20 }
 0xbdf   : > { %3205 = vmatpush.bf16.msra.mxu1 %v3108_v62  ;;  %v3131_v62 = vpop.permute.xlu2 %3130 }
 0xbe2   : > { %v6111_v56 = vpop.permute.xlu1 %6110 }
 0xbe3   : > { %v6113_v40 = vunpack.i.h.bf16 %v6111_v56  ;;  %v6112_v22 = vunpack.i.l.bf16 %v6111_v56  ;;  %v3136_v4 = vpop.permute.xlu0 %3135 }
 0xbe5   : > { %v5453_v44 = vpack.c.bf16 %v6113_v40, %v6112_v22 }
 0xbe7   : > { %5454 = vmatpush.bf16.msk.msra.mxu1 %vm6811_vm5, %v5453_v44 }
 0xbea   : > { %v3146_v46 = vpop.permute.xlu1 %3145 }
 0xbeb   : > { %5457 = vmatpush.bf16.msk.msra.mxu1 %vm6811_vm5, %v5456_v5 }
 0xbee   : > { %5458 = vmatmul.msk.bf16.vlgmr.msra.gmra.mxu1 %vm1365_vm6, %v5838_v36 }
 0xbf2   : > { %v3161_v60 = vpop.permute.xlu1 %3160 }
 0xbfa   : > { %v3156_v36 = vpop.permute.xlu1 %3155 }
 0xbfe   : > { %5459 = vmatmul.msk.bf16.gmra.mxu1 %vm1365_vm6, %v5839_v33 }
 0xc0e   : > { %5460 = vmatmul.msk.bf16.gmra.mxu1 %vm1365_vm6, %v5840_v47 }
 0xc1e   : > { %5461 = vmatmul.msk.bf16.gmra.mxu1 %vm1365_vm6, %v5841_v16  ;;  %v3235_v16 = vld [vmem:[#allocation2 + $0x30] sm:$0xff] }
 0xc6b   : > { %v3209_v49 = vpop.f32.mrf.mxu1 }
 0xc6c   : > { %v3210_v26 = vadd.f32 %v3209_v49, %v3131_v62  ;;  %v3151_v62 = vpop.permute.xlu0 %3150 }
 0xc6e   : > { %v3237_v31 = vadd.f32 %v3229_v61, %v3210_v26 }
 0xc70   : > { %v5462_v41 = vmul.f32 -1.442695, %v3237_v31 }
 0xc72   : > { %6179 = vpow2.f32 %v5462_v41 }
 0xc73   : > { %v3211_v59 = vpop.f32.mrf.mxu1 }
 0xc74   : > { %v3212_v8 = vadd.f32 %v3211_v59, %v3136_v4  ;;  %v3234_v59 = vld [vmem:[#allocation2 + $0x68] sm:$0xff] }
 0xc76   : > { %v3238_v0 = vadd.f32 %v3230_v24, %v3212_v8 }
 0xc78   : > { %v5463_v52 = vmul.f32 -1.442695, %v3238_v0  ;;  %v6180_v2 = vpop.eup %6179 }
 0xc79   : > { %v7731_v9 = vadd.f32 1.0, %v6180_v2 }
 0xc7b   : > { %v3214_v34 = vpop.f32.mrf.mxu1  ;;  %vm3266_vm9 = vweird.f32 %v7731_v9 }
 0xc7c   : > { %v3215_v38 = vadd.f32 %v3214_v34, %v3141_v18  ;;  %v3166_v34 = vpop.permute.xlu2 %3165 }
 0xc7e   : > { %v3239_v20 = vadd.f32 %v3231_v30, %v3215_v38  ;;  %v3233_v30 = vld [vmem:[#allocation2 + $0x50] sm:$0xff]  ;;  %v3236_v38 = vld [vmem:[#allocation2 + $0x48] sm:$0xff] }
 0xc80   : > { %v5464_v43 = vmul.f32 -1.442695, %v3239_v20 }
 0xc82   : > { %6181 = vpow2.f32 %v5464_v43 }
 0xc83   : > { %v3216_v32 = vpop.f32.mrf.mxu1  ;;  %6183 = vpow2.f32 %v5463_v52 }
 0xc84   : > { %v3217_v28 = vadd.f32 %v3216_v32, %v3146_v46 }
 0xc86   : > { %v3240_v58 = vadd.f32 %v3232_v54, %v3217_v28 }
 0xc88   : > { %v5465_v48 = vmul.f32 -1.442695, %v3240_v58  ;;  %v6182_v3 = vpop.eup %6181 }
 0xc89   : > { %v6184_v51 = vpop.eup %6183  ;;  %v7733_v11 = vadd.f32 1.0, %v6182_v3 }
 0xc8a   : > { %6185 = vpow2.f32 %v5465_v48  ;;  %v7735_v39 = vadd.f32 1.0, %v6184_v51 }
 0xc8b   : > { %v3219_v23 = vpop.f32.mrf.mxu1  ;;  %6187 = vrcp.f32 %v7731_v9  ;;  %vm3296_vm10 = vweird.f32 %v7733_v11  ;;  %v3302_v58 = vand.u32 2147483648, %v7733_v11  ;;  %v3300_v3 = vand.u32 2147483647, %v7733_v11 }
 0xc8c   : > { %6189 = vrcp.f32 %v7733_v11  ;;  %v3220_v4 = vadd.f32 %v3219_v23, %v3151_v62  ;;  %vm3281_vm0 = vweird.f32 %v7735_v39 }
 0xc8e   : > { %v3241_v52 = vadd.f32 %v3233_v30, %v3220_v4 }
 0xc90   : > { %v6186_v25 = vpop.eup %6185 }
 0xc91   : > { %v7738_v12 = vadd.f32 1.0, %v6186_v25  ;;  %v7743_v53 = vpop.eup %6187 }
 0xc92   : > { %v7745_v55 = vpop.eup %6189  ;;  %v3262_v44 = vmul.f32 %v7743_v53, %v7731_v9  ;;  %vm3267_vm8 = vweird.f32 %v7743_v53 }
 0xc93   : > { %6191 = vrcp.f32 %v7738_v12  ;;  %v3221_v13 = vpop.f32.mrf.mxu1  ;;  %v3292_v17 = vmul.f32 %v7745_v55, %v7733_v11  ;;  %vm3297_vm12 = vweird.f32 %v7745_v55  ;;  %v3317_v48 = vand.u32 2147483648, %v7738_v12 }
 0xc94   : > { %6193 = vrcp.f32 %v7735_v39  ;;  %v3222_v47 = vadd.f32 %v3221_v13, %v3156_v36  ;;  %v3263_v26 = vsub.f32 1.0, %v3262_v44  ;;  %vm7771_vm14 = vmor %vm3296_vm10, %vm3297_vm12  ;;  %vm3311_vm2 = vweird.f32 %v7738_v12 }
 0xc95   : > { %v3293_v49 = vsub.f32 1.0, %v3292_v17  ;;  %v3315_v23 = vand.u32 2147483647, %v7738_v12  ;;  %v3287_v13 = vand.u32 2147483648, %v7735_v39  ;;  %v3318_v44 = vor.u32 1.1754944e-38, %v3317_v48 }
 0xc96   : > { %v3242_v31 = vadd.f32 %v3234_v59, %v3222_v47  ;;  %v3264_v43 = vmul.f32 %v7743_v53, %v3263_v26 }
 0xc97   : > { %v3294_v20 = vmul.f32 %v7745_v55, %v3293_v49  ;;  %vm3316_vm10 = vcmp.eq.f32.partialorder %v3315_v23, 8.507059e+37  ;;  %v3288_v49 = vor.u32 1.1754944e-38, %v3287_v13 }
 0xc99   : > { %v7747_v56 = vpop.eup %6191  ;;  %v3295_v54 = vadd.f32 %v7745_v55, %v3294_v20 }
 0xc9a   : > { %v7749_v40 = vpop.eup %6193  ;;  %v3307_v7 = vmul.f32 %v7747_v56, %v7738_v12  ;;  %vm3312_vm7 = vweird.f32 %v7747_v56 }
 0xc9b   : > { %v3224_v22 = vpop.f32.mrf.mxu1  ;;  %v3277_v5 = vmul.f32 %v7749_v40, %v7735_v39  ;;  %vm3282_vm1 = vweird.f32 %v7749_v40  ;;  %vm7779_vm4 = vmor %vm3311_vm2, %vm3312_vm7  ;;  %v3299_v11 = vsel %vm7771_vm14, %v7745_v55, %v3295_v54  ;;  %vm3301_vm7 = vcmp.eq.f32.partialorder %v3300_v3, 8.507059e+37 }
 0xc9c   : > { %v3225_v33 = vadd.f32 %v3224_v22, %v3161_v60  ;;  %v3308_v18 = vsub.f32 1.0, %v3307_v7  ;;  %v3265_v60 = vadd.f32 %v7743_v53, %v3264_v43  ;;  %v3285_v22 = vand.u32 2147483647, %v7735_v39  ;;  %vm7798_vm12 = vmor %vm3281_vm0, %vm3282_vm1 }
 0xc9d   : > { %v3278_v61 = vsub.f32 1.0, %v3277_v5  ;;  %v3303_v7 = vor.u32 1.1754944e-38, %v3302_v58  ;;  %v3272_v5 = vand.u32 2147483648, %v7731_v9  ;;  %vm3268_vm14 = vmor %vm3266_vm9, %vm3267_vm8 }
 0xc9e   : > { %v3243_v8 = vadd.f32 %v3235_v16, %v3225_v33  ;;  %v3309_v0 = vmul.f32 %v7747_v56, %v3308_v18  ;;  %v3269_v62 = vsel %vm3268_vm14, %v7743_v53, %v3265_v60  ;;  %vm3286_vm1 = vcmp.eq.f32.partialorder %v3285_v22, 8.507059e+37  ;;  %v5843_v53 = vld [vmem:[%s8529_s11 + $0x8] sm:$0xff] }
 0xc9f   : > { %v3279_v46 = vmul.f32 %v7749_v40, %v3278_v61  ;;  %v3304_v47 = vsel %vm3301_vm7, %v3303_v7, %v3299_v11  ;;  %v3273_v61 = vor.u32 1.1754944e-38, %v3272_v5  ;;  %v5500_v11 = vld [vmem:[%s8528_s10 + $0x50] sm:$0xff]  ;;  %v5499_v5 = vld [vmem:[%s8528_s10 + $0x48] sm:$0xff] }
 0xca0   : > { %6195 = vtanh.f32 %v3243_v8  ;;  %v3310_v28 = vadd.f32 %v7747_v56, %v3309_v0  ;;  %v3350_v0 = vpop.permute.xlu1 %3349 }
 0xca1   : > { %6197 = vtanh.f32 %v3242_v31  ;;  %v3280_v51 = vadd.f32 %v7749_v40, %v3279_v46  ;;  %v5842_v31 = vld [vmem:[%s8529_s11] sm:$0xff] }
 0xca2   : > { %v3314_v12 = vsel %vm7779_vm4, %v7747_v56, %v3310_v28  ;;  %v3270_v56 = vand.u32 2147483647, %v7731_v9 }
 0xca3   : > { %v3226_v24 = vpop.f32.mrf.mxu1  ;;  %v3284_v39 = vsel %vm7798_vm12, %v7749_v40, %v3280_v51  ;;  %v3319_v16 = vsel %vm3316_vm10, %v3318_v44, %v3314_v12 }
 0xca4   : > { %v3227_v41 = vadd.f32 %v3226_v24, %v3166_v34  ;;  %v3289_v4 = vsel %vm3286_vm1, %v3288_v49, %v3284_v39  ;;  %vm3271_vm2 = vcmp.eq.f32.partialorder %v3270_v56, 8.507059e+37  ;;  %v3360_v24 = vpop.permute.xlu2 %3359  ;;  %v5498_v56 = vld [vmem:[%s8528_s10 + $0x40] sm:$0xff]  ;;  %v5553_v39 = vld [vmem:[%s8530_s12 + $0x58] sm:$0xff] }
 0xca5   : > { %v3274_v34 = vsel %vm3271_vm2, %v3273_v61, %v3269_v62  ;;  %v5550_v49 = vld [vmem:[%s8530_s12 + $0x40] sm:$0xff]  ;;  %v5581_v62 = vld [vmem:[%s8522_s4 + $0x58] sm:$0xff] }
 0xca6   : > { %v3244_v32 = vadd.f32 %v3236_v38, %v3227_v41  ;;  %v6196_v17 = vpop.eup %6195  ;;  %v3365_v38 = vpop.permute.xlu0 %3364  ;;  %v5578_v61 = vld [vmem:[%s8522_s4 + $0x40] sm:$0xff] }
 0xca7   : > { %v6198_v55 = vpop.eup %6197  ;;  %v3327_v18 = vmul.f32 %v6196_v17, %v3304_v47  ;;  %v5505_v47 = vld [vmem:[%s8528_s10 + $0x78] sm:$0xff] }
 0xca8   : > { %6199 = vtanh.f32 %v3244_v32  ;;  %v3326_v8 = vmul.f32 %v6198_v55, %v3289_v4  ;;  %v3483_v7 = vpop.permute.xlu1 %3482  ;;  %v5504_v55 = vld [vmem:[%s8528_s10 + $0x70] sm:$0xff] }
 0xca9   : > { %6201 = vtanh.f32 %v3241_v52 }
 0xcac   : > { %v3355_v43 = vpop.permute.xlu2 %3354 }
 0xcae   : > { %v6200_v33 = vpop.eup %6199  ;;  %v3478_v46 = vpop.permute.xlu0 %3477 }
 0xcaf   : > { %v3328_v59 = vmul.f32 %v6200_v33, %v3319_v16  ;;  %v6202_v26 = vpop.eup %6201  ;;  %v5503_v33 = vld [vmem:[%s8528_s10 + $0x68] sm:$0xff]  ;;  %v5580_v16 = vld [vmem:[%s8522_s4 + $0x50] sm:$0xff] }
 0xcb0   : > { %v3325_v40 = vmul.f32 %v6202_v26, %v3274_v34  ;;  %v5551_v26 = vld [vmem:[%s8530_s12 + $0x48] sm:$0xff] }
 0xcb1   : > { %v3338_v9 = vpack.c.bf16 %v3328_v59, %v3327_v18  ;;  %v5552_v18 = vld [vmem:[%s8530_s12 + $0x50] sm:$0xff]  ;;  %v5579_v59 = vld [vmem:[%s8522_s4 + $0x48] sm:$0xff] }
 0xcb2   : > { %v3337_v30 = vpack.c.bf16 %v3326_v8, %v3325_v40 }
 0xcb3   : > { %3425 = vmatpush.bf16.msra.mxu2 %v3338_v9 }
 0xcb4   : > { %v3468_v2 = vpop.permute.xlu2 %3467 }
 0xcb6   : > { %v3473_v3 = vpop.permute.xlu0 %3472 }
 0xcb7   : > { %3426 = vmatpush.bf16.msra.mxu2 %v3337_v30 }
 0xcba   : > { %5482 = vmatmul.msk.bf16.vlgmr.msra.gmra.mxu2 %vm1585_vm11, %v5842_v31 }
 0xcca   : > { %5483 = vmatmul.msk.bf16.gmra.mxu2 %vm1585_vm11, %v5843_v53 }
 0xd3d   : > { %v3428_v20 = vpop.f32.mrf.mxu2 }
 0xd3e   : > { %v3429_v41 = vadd.f32 %v3428_v20, %v3350_v0 }
 0xd40   : > { %v3448_v52 = vadd.f32 %v3429_v41, %v3050_v15 }
 0xd42   : > { %v7819_v28 = vmul.f32 0.70710677, %v3448_v52 }
 0xd44   : > { %v7826_v23 = vadd.f32 %v3468_v2, %v7819_v28  ;;  %v5849_v2 = vld [vmem:[%s8527_s9 + $0x38] sm:$0xff] }
 0xd45   : > { %v3430_v32 = vpop.f32.mrf.mxu2 }
 0xd46   : > { %v3431_v54 = vadd.f32 %v3430_v32, %v3355_v43  ;;  %v5846_v32 = vld [vmem:[%s8527_s9 + $0x20] sm:$0xff] }
 0xd48   : > { %v3449_v58 = vadd.f32 %v3431_v54, %v3051_v45  ;;  %v5847_v54 = vld [vmem:[%s8527_s9 + $0x28] sm:$0xff] }
 0xd4a   : > { %v7823_v48 = vmul.f32 0.70710677, %v3449_v58  ;;  %v5848_v58 = vld [vmem:[%s8527_s9 + $0x30] sm:$0xff] }
 0xd4c   : > { %v7829_v51 = vadd.f32 %v3473_v3, %v7823_v48 }
 0xd4d   : > { %v3433_v25 = vpop.f32.mrf.mxu2 }
 0xd4e   : > { %v6124_v14 = vpack.i.bf16 %v7829_v51, %v7826_v23  ;;  %v3515_v15 = vpack.c.bf16 %v7829_v51, %v7826_v23  ;;  %v3434_v13 = vadd.f32 %v3433_v25, %v3360_v24 }
 0xd50   : > { %6125 = vrot.lane.b32.xlu2 %v6124_v14, %s8554_s27  ;;  %v3450_v35 = vadd.f32 %v3434_v13, %v3052_v63 }
 0xd52   : > { %v7841_v60 = vmul.f32 0.70710677, %v3450_v35 }
 0xd54   : > { %v3487_v44 = vadd.f32 %v3478_v46, %v7841_v60 }
 0xd55   : > { %v3435_v45 = vpop.f32.mrf.mxu2 }
 0xd56   : > { %v3436_v12 = vadd.f32 %v3435_v45, %v3365_v38 }
 0xd58   : > { %v3451_v22 = vadd.f32 %v3436_v12, %v3053_v6  ;;  %3547 = vperm.xlu2 %6098, %v5500_v11   ;;  %v5502_v6 = vld [vmem:[%s8528_s10 + $0x60] sm:$0xff]  ;;  %v3638_v11 = vld [vmem:[#allocation2 + $0xe8] sm:$0xff] }
 0xd5a   : > { %v7845_v17 = vmul.f32 0.70710677, %v3451_v22  ;;  %v3637_v22 = vld [vmem:[#allocation2 + $0x88] sm:$0xff] }
 0xd5c   : > { %v3488_v10 = vadd.f32 %v3483_v7, %v7845_v17 }
 0xd5e   : > { %v6129_v63 = vpack.i.bf16 %v3488_v10, %v3487_v44  ;;  %v3516_v36 = vpack.c.bf16 %v3488_v10, %v3487_v44 }
 0xd60   : > { %6130 = vrot.lane.b32.xlu0 %v6129_v63, %s8558_s25  ;;  %6120 = vrot.lane.b32.xlu1 %v6129_v63, %s8554_s27 }
 0xd61   : > { %3542 = vperm.xlu2 %6098, %v5499_v5  }
 0xd68   : > { %3552 = vperm.xlu0 %6096, %v5501_v1   ;;  %6135 = vrot.lane.b32.xlu1 %v6124_v14, %s8558_s25 }
 0xd69   : > { %3557 = vperm.xlu2 %6098, %v5502_v6  }
 0xd70   : > { %3567 = vperm.xlu0 %6096, %v5504_v55   ;;  %3537 = vperm.xlu1 %6097, %v5498_v56   ;;  %v3639_v55 = vld [vmem:[#allocation2 + $0xb8] sm:$0xff] }
 0xd71   : > { %3771 = vperm.xlu2 %6098, %v5553_v39  }
 0xd78   : > { %3562 = vperm.xlu0 %6096, %v5503_v33   ;;  %3572 = vperm.xlu1 %6097, %v5505_v47  }
 0xd79   : > { %3884 = vperm.xlu2 %6098, %v5580_v16  }
 0xd80   : > { %3756 = vperm.xlu0 %6096, %v5550_v49   ;;  %3766 = vperm.xlu1 %6097, %v5552_v18  }
 0xd81   : > { %3879 = vperm.xlu2 %6098, %v5579_v59  }
 0xd88   : > { %3889 = vperm.xlu0 %6096, %v5581_v62   ;;  %3761 = vperm.xlu1 %6097, %v5551_v26  }
 0xd90   : > { %3874 = vperm.xlu1 %6097, %v5578_v61  }
 0xdaa   : > { %v6126_v4 = vpop.permute.xlu2 %6125 }
 0xdab   : > { %v6128_v40 = vunpack.i.h.bf16 %v6126_v4  ;;  %v6127_v30 = vunpack.i.l.bf16 %v6126_v4 }
 0xdad   : > { %v5526_v53 = vpack.c.bf16 %v6128_v40, %v6127_v30 }
 0xdb2   : > { %v3548_v23 = vpop.permute.xlu2 %3547 }
 0xdbb   : > { %v3543_v13 = vpop.permute.xlu2 %3542 }
 0xdd2   : > { %v6121_v9 = vpop.permute.xlu1 %6120  ;;  %v6131_v24 = vpop.permute.xlu0 %6130 }
 0xdd3   : > { %v6123_v8 = vunpack.i.h.bf16 %v6121_v9  ;;  %v6122_v34 = vunpack.i.l.bf16 %v6121_v9  ;;  %v6133_v38 = vunpack.i.h.bf16 %v6131_v24  ;;  %v6132_v20 = vunpack.i.l.bf16 %v6131_v24 }
 0xdd5   : > { %v5523_v31 = vpack.c.bf16 %v6123_v8, %v6122_v34  ;;  %v5529_v46 = vpack.c.bf16 %v6133_v38, %v6132_v20 }
 0xdd7   : > { %5524 = vmatpush.bf16.msk.msra.mxu3 %vm6994_vm13, %v5523_v31 }
 0xdda   : > { %v6136_v0 = vpop.permute.xlu1 %6135 }
 0xddb   : > { %5527 = vmatpush.bf16.msk.msra.mxu3 %vm6994_vm13, %v5526_v53  ;;  %v6138_v41 = vunpack.i.h.bf16 %v6136_v0  ;;  %v6137_v43 = vunpack.i.l.bf16 %v6136_v0 }
 0xddd   : > { %v5532_v52 = vpack.c.bf16 %v6138_v41, %v6137_v43 }
 0xddf   : > { %3611 = vmatpush.bf16.msra.mxu3 %v3516_v36  ;;  %v3553_v36 = vpop.permute.xlu0 %3552 }
 0xde2   : > { %v3538_v25 = vpop.permute.xlu1 %3537 }
 0xde3   : > { %3612 = vmatpush.bf16.msra.mxu3 %v3515_v15  ;;  %v3636_v15 = vld [vmem:[#allocation2 + $0x80] sm:$0xff] }
 0xde7   : > { %5530 = vmatpush.bf16.msk.msra.mxu3 %vm7006_vm15, %v5529_v46  ;;  %v3568_v8 = vpop.permute.xlu0 %3567 }
 0xdeb   : > { %5533 = vmatpush.bf16.msk.msra.mxu3 %vm7006_vm15, %v5532_v52  ;;  %v3642_v52 = vld [vmem:[#allocation2 + $0x8] sm:$0xff] }
 0xdee   : > { %5534 = vmatmul.msk.bf16.vlgmr.msra.gmra.mxu3 %vm1365_vm6, %v5846_v32 }
 0xdef   : > { %v3563_v41 = vpop.permute.xlu0 %3562 }
 0xdfe   : > { %5535 = vmatmul.msk.bf16.gmra.mxu3 %vm1365_vm6, %v5847_v54 }
 0xe0e   : > { %5536 = vmatmul.msk.bf16.gmra.mxu3 %vm1365_vm6, %v5848_v58  ;;  %v3641_v58 = vld [vmem:[#allocation2 + $0xf0] sm:$0xff] }
 0xe1e   : > { %5537 = vmatmul.msk.bf16.gmra.mxu3 %vm1365_vm6, %v5849_v2  ;;  %v3558_v2 = vpop.permute.xlu2 %3557 }
 0xe71   : > { %v3616_v3 = vpop.f32.mrf.mxu3 }
 0xe72   : > { %v3617_v14 = vadd.f32 %v3616_v3, %v3538_v25 }
 0xe74   : > { %v3644_v12 = vadd.f32 %v3636_v15, %v3617_v14  ;;  %v3573_v14 = vpop.permute.xlu1 %3572  ;;  %v3640_v15 = vld [vmem:[#allocation2 + $0x60] sm:$0xff] }
 0xe76   : > { %v5538_v63 = vmul.f32 -1.442695, %v3644_v12 }
 0xe78   : > { %6203 = vpow2.f32 %v5538_v63 }
 0xe79   : > { %v3618_v51 = vpop.f32.mrf.mxu3 }
 0xe7a   : > { %v3619_v35 = vadd.f32 %v3618_v51, %v3543_v13 }
 0xe7c   : > { %v3645_v10 = vadd.f32 %v3637_v22, %v3619_v35 }
 0xe7e   : > { %v5539_v1 = vmul.f32 -1.442695, %v3645_v10  ;;  %v6204_v47 = vpop.eup %6203 }
 0xe7f   : > { %v7924_v59 = vadd.f32 1.0, %v6204_v47  ;;  %v5592_v47 = vld [vmem:[%s8528_s10 + $0x90] sm:$0xff] }
 0xe81   : > { %v3621_v45 = vpop.f32.mrf.mxu3  ;;  %vm3673_vm2 = vweird.f32 %v7924_v59 }
 0xe82   : > { %v3622_v7 = vadd.f32 %v3621_v45, %v3548_v23  ;;  %v3643_v45 = vld [vmem:[#allocation2 + $0x78] sm:$0xff] }
 0xe84   : > { %v3646_v44 = vadd.f32 %v3638_v11, %v3622_v7 }
 0xe86   : > { %v5540_v5 = vmul.f32 -1.442695, %v3646_v44 }
 0xe88   : > { %6205 = vpow2.f32 %v5540_v5 }
 0xe89   : > { %v3623_v6 = vpop.f32.mrf.mxu3  ;;  %6207 = vpow2.f32 %v5539_v1 }
 0xe8a   : > { %v3624_v56 = vadd.f32 %v3623_v6, %v3553_v36 }
 0xe8c   : > { %v3647_v39 = vadd.f32 %v3639_v55, %v3624_v56 }
 0xe8e   : > { %v5541_v33 = vmul.f32 -1.442695, %v3647_v39  ;;  %v6206_v16 = vpop.eup %6205 }
 0xe8f   : > { %v6208_v18 = vpop.eup %6207  ;;  %v7926_v62 = vadd.f32 1.0, %v6206_v16 }
 0xe90   : > { %6209 = vpow2.f32 %v5541_v33  ;;  %v7928_v61 = vadd.f32 1.0, %v6208_v18 }
 0xe91   : > { %v3626_v49 = vpop.f32.mrf.mxu3  ;;  %6211 = vrcp.f32 %v7924_v59  ;;  %vm3703_vm9 = vweird.f32 %v7926_v62  ;;  %v3709_v1 = vand.u32 2147483648, %v7926_v62  ;;  %v3707_v56 = vand.u32 2147483647, %v7926_v62 }
 0xe92   : > { %6213 = vrcp.f32 %v7926_v62  ;;  %v3627_v51 = vadd.f32 %v3626_v49, %v3558_v2  ;;  %vm3688_vm1 = vweird.f32 %v7928_v61  ;;  %v3694_v16 = vand.u32 2147483648, %v7928_v61 }
 0xe94   : > { %v3648_v10 = vadd.f32 %v3640_v15, %v3627_v51  ;;  %v5850_v51 = vld [vmem:[%s8529_s11 + $0x20] sm:$0xff] }
 0xe96   : > { %v6210_v26 = vpop.eup %6209 }
 0xe97   : > { %v7931_v4 = vadd.f32 1.0, %v6210_v26  ;;  %v7936_v34 = vpop.eup %6211  ;;  %v3692_v26 = vand.u32 2147483647, %v7928_v61 }
 0xe98   : > { %v7938_v40 = vpop.eup %6213  ;;  %v3669_v20 = vmul.f32 %v7936_v34, %v7924_v59  ;;  %vm3674_vm14 = vweird.f32 %v7936_v34 }
 0xe99   : > { %6215 = vrcp.f32 %v7931_v4  ;;  %v3628_v9 = vpop.f32.mrf.mxu3  ;;  %v3699_v24 = vmul.f32 %v7938_v40, %v7926_v62  ;;  %vm3704_vm8 = vweird.f32 %v7938_v40  ;;  %v3724_v6 = vand.u32 2147483648, %v7931_v4 }
 0xe9a   : > { %6217 = vrcp.f32 %v7928_v61  ;;  %v3629_v46 = vadd.f32 %v3628_v9, %v3563_v41  ;;  %v3670_v3 = vsub.f32 1.0, %v3669_v20  ;;  %vm7964_vm12 = vmor %vm3703_vm9, %vm3704_vm8  ;;  %vm3718_vm7 = vweird.f32 %v7931_v4 }
 0xe9b   : > { %v3700_v32 = vsub.f32 1.0, %v3699_v24  ;;  %v3722_v39 = vand.u32 2147483647, %v7931_v4  ;;  %v3710_v9 = vor.u32 1.1754944e-38, %v3709_v1  ;;  %v3695_v41 = vor.u32 1.1754944e-38, %v3694_v16  ;;  %v5594_v24 = vld [vmem:[%s8528_s10 + $0xa0] sm:$0xff] }
 0xe9c   : > { %v3649_v13 = vadd.f32 %v3641_v58, %v3629_v46  ;;  %v3671_v7 = vmul.f32 %v7936_v34, %v3670_v3 }
 0xe9d   : > { %v3701_v11 = vmul.f32 %v7938_v40, %v3700_v32  ;;  %vm3723_vm9 = vcmp.eq.f32.partialorder %v3722_v39, 8.507059e+37 }
 0xe9e   : > { %v3672_v62 = vadd.f32 %v7936_v34, %v3671_v7 }
 0xe9f   : > { %v7940_v30 = vpop.eup %6215  ;;  %v3702_v5 = vadd.f32 %v7938_v40, %v3701_v11 }
 0xea0   : > { %v7942_v31 = vpop.eup %6217  ;;  %v3714_v38 = vmul.f32 %v7940_v30, %v7931_v4  ;;  %vm3719_vm0 = vweird.f32 %v7940_v30 }
 0xea1   : > { %v3631_v53 = vpop.f32.mrf.mxu3  ;;  %v3684_v0 = vmul.f32 %v7942_v31, %v7928_v61  ;;  %vm3689_vm4 = vweird.f32 %v7942_v31  ;;  %vm7972_vm10 = vmor %vm3718_vm7, %vm3719_vm0  ;;  %v3706_v49 = vsel %vm7964_vm12, %v7938_v40, %v3702_v5  ;;  %vm3708_vm0 = vcmp.eq.f32.partialorder %v3707_v56, 8.507059e+37 }
 0xea2   : > { %v3632_v43 = vadd.f32 %v3631_v53, %v3568_v8  ;;  %v3715_v54 = vsub.f32 1.0, %v3714_v38  ;;  %v3725_v8 = vor.u32 1.1754944e-38, %v3724_v6  ;;  %v3679_v53 = vand.u32 2147483648, %v7924_v59  ;;  %vm7991_vm8 = vmor %vm3688_vm1, %vm3689_vm4 }
 0xea3   : > { %v3685_v23 = vsub.f32 1.0, %v3684_v0  ;;  %v3711_v20 = vsel %vm3708_vm0, %v3710_v9, %v3706_v49  ;;  %vm3675_vm12 = vmor %vm3673_vm2, %vm3674_vm14  ;;  %vm3693_vm4 = vcmp.eq.f32.partialorder %v3692_v26, 8.507059e+37 }
 0xea4   : > { %v3650_v25 = vadd.f32 %v3642_v52, %v3632_v43  ;;  %v3716_v12 = vmul.f32 %v7940_v30, %v3715_v54  ;;  %v3676_v52 = vsel %vm3675_vm12, %v7936_v34, %v3672_v62  ;;  %v3680_v54 = vor.u32 1.1754944e-38, %v3679_v53  ;;  %v5851_v34 = vld [vmem:[%s8529_s11 + $0x28] sm:$0xff] }
 0xea5   : > { %v3686_v44 = vmul.f32 %v7942_v31, %v3685_v23 }
 0xea6   : > { %6219 = vtanh.f32 %v3650_v25  ;;  %v3717_v36 = vadd.f32 %v7940_v30, %v3716_v12  ;;  %v3772_v25 = vpop.permute.xlu2 %3771 }
 0xea7   : > { %6221 = vtanh.f32 %v3649_v13  ;;  %v3687_v33 = vadd.f32 %v7942_v31, %v3686_v44  ;;  %v3757_v13 = vpop.permute.xlu0 %3756 }
 0xea8   : > { %v3721_v18 = vsel %vm7972_vm10, %v7940_v30, %v3717_v36  ;;  %v3677_v30 = vand.u32 2147483647, %v7924_v59 }
 0xea9   : > { %v3633_v35 = vpop.f32.mrf.mxu3  ;;  %v3691_v61 = vsel %vm7991_vm8, %v7942_v31, %v3687_v33  ;;  %v3726_v0 = vsel %vm3723_vm9, %v3725_v8, %v3721_v18 }
 0xeaa   : > { %v3634_v22 = vadd.f32 %v3633_v35, %v3573_v14  ;;  %v3696_v58 = vsel %vm3693_vm4, %v3695_v41, %v3691_v61  ;;  %vm3678_vm7 = vcmp.eq.f32.partialorder %v3677_v30, 8.507059e+37  ;;  %v3767_v14 = vpop.permute.xlu1 %3766  ;;  %v5590_v30 = vld [vmem:[%s8528_s10 + $0x80] sm:$0xff]  ;;  %v5645_v61 = vld [vmem:[%s8530_s12 + $0x98] sm:$0xff] }
 0xeab   : > { %v3681_v3 = vsel %vm3678_vm7, %v3680_v54, %v3676_v52  ;;  %v5642_v41 = vld [vmem:[%s8530_s12 + $0x80] sm:$0xff]  ;;  %v5673_v52 = vld [vmem:[%s8522_s4 + $0x78] sm:$0xff] }
 0xeac   : > { %v3651_v63 = vadd.f32 %v3643_v45, %v3634_v22  ;;  %v6220_v4 = vpop.eup %6219  ;;  %v5670_v54 = vld [vmem:[%s8522_s4 + $0x60] sm:$0xff] }
 0xead   : > { %v6222_v40 = vpop.eup %6221  ;;  %v3734_v43 = vmul.f32 %v6220_v4, %v3711_v20  ;;  %v5597_v20 = vld [vmem:[%s8528_s10 + $0xb8] sm:$0xff] }
 0xeae   : > { %6223 = vtanh.f32 %v3651_v63  ;;  %v3733_v2 = vmul.f32 %v6222_v40, %v3696_v58  ;;  %v3885_v45 = vpop.permute.xlu2 %3884  ;;  %v5596_v40 = vld [vmem:[%s8528_s10 + $0xb0] sm:$0xff] }
 0xeaf   : > { %6225 = vtanh.f32 %v3648_v10  ;;  %v3890_v26 = vpop.permute.xlu0 %3889  ;;  %v5844_v58 = vld [vmem:[%s8529_s11 + $0x10] sm:$0xff] }
 0xeb0   : > { %5484 = vmatmul.msk.bf16.gmra.mxu2 %vm1585_vm11, %v5844_v58 }
 0xeb2   : > { %v3762_v11 = vpop.permute.xlu1 %3761 }
 0xeb4   : > { %v6224_v38 = vpop.eup %6223 }
 0xeb5   : > { %v3735_v46 = vmul.f32 %v6224_v38, %v3726_v0  ;;  %v6226_v32 = vpop.eup %6225  ;;  %v5595_v38 = vld [vmem:[%s8528_s10 + $0xa8] sm:$0xff]  ;;  %v5672_v0 = vld [vmem:[%s8522_s4 + $0x70] sm:$0xff] }
 0xeb6   : > { %v3732_v31 = vmul.f32 %v6226_v32, %v3681_v3  ;;  %v3880_v5 = vpop.permute.xlu2 %3879  ;;  %v5643_v32 = vld [vmem:[%s8530_s12 + $0x88] sm:$0xff] }
 0xeb7   : > { %v3745_v59 = vpack.c.bf16 %v3735_v46, %v3734_v43  ;;  %v5644_v43 = vld [vmem:[%s8530_s12 + $0x90] sm:$0xff]  ;;  %v5671_v46 = vld [vmem:[%s8522_s4 + $0x68] sm:$0xff] }
 0xeb8   : > { %v3744_v23 = vpack.c.bf16 %v3733_v2, %v3732_v31 }
 0xeb9   : > { %3832 = vmatpush.bf16.msrb.mxu0 %v3745_v59  ;;  %v5845_v59 = vld [vmem:[%s8529_s11 + $0x18] sm:$0xff] }
 0xeba   : > { %v3875_v36 = vpop.permute.xlu1 %3874 }
 0xebd   : > { %3833 = vmatpush.bf16.msrb.mxu0 %v3744_v23 }
 0xec0   : > { %5574 = vmatmul.msk.bf16.vlgmr.msrb.gmra.mxu0 %vm1585_vm11, %v5850_v51  ;;  %5485 = vmatmul.msk.bf16.gmra.mxu2 %vm1585_vm11, %v5845_v59 }
 0xed0   : > { %5575 = vmatmul.msk.bf16.gmra.mxu0 %vm1585_vm11, %v5851_v34 }
 0xf33   : > { %v8121_v37 = vpop.f32.mrf.mxu2 }
 0xf3d   : > { %v3835_v15 = vpop.f32.mrf.mxu0 }
 0xf3e   : > { %v3836_v35 = vadd.f32 %v3835_v15, %v3757_v13 }
 0xf40   : > { %v3855_v12 = vadd.f32 %v3836_v35, %v7819_v28 }
 0xf42   : > { %v8011_v44 = vmul.f32 0.70710677, %v3855_v12 }
 0xf44   : > { %v8017_v1 = vadd.f32 %v3875_v36, %v8011_v44  ;;  %v5857_v36 = vld [vmem:[%s8527_s9 + $0x58] sm:$0xff] }
 0xf45   : > { %v3837_v22 = vpop.f32.mrf.mxu0 }
 0xf46   : > { %v3838_v7 = vadd.f32 %v3837_v22, %v3762_v11 }
 0xf48   : > { %v3856_v10 = vadd.f32 %v3838_v7, %v7823_v48 }
 0xf4a   : > { %v8014_v63 = vmul.f32 0.70710677, %v3856_v10  ;;  %v5855_v10 = vld [vmem:[%s8527_s9 + $0x48] sm:$0xff] }
 0xf4c   : > { %v8020_v6 = vadd.f32 %v3880_v5, %v8014_v63  ;;  %v5856_v5 = vld [vmem:[%s8527_s9 + $0x50] sm:$0xff] }
 0xf4d   : > { %v3840_v55 = vpop.f32.mrf.mxu0 }
 0xf4e   : > { %v6144_v28 = vpack.i.bf16 %v8020_v6, %v8017_v1  ;;  %v3922_v56 = vpack.c.bf16 %v8020_v6, %v8017_v1  ;;  %v3841_v39 = vadd.f32 %v3840_v55, %v3767_v14  ;;  %v8123_v1 = vpop.f32.mrf.mxu2 }
 0xf50   : > { %6145 = vrot.lane.b32.xlu1 %v6144_v28, %s8623_s19  ;;  %v3857_v48 = vadd.f32 %v3841_v39, %v7841_v60  ;;  %v5591_v60 = vld [vmem:[%s8528_s10 + $0x88] sm:$0xff] }
 0xf52   : > { %v8031_v49 = vmul.f32 0.70710677, %v3857_v48 }
 0xf54   : > { %v3894_v4 = vadd.f32 %v3885_v45, %v8031_v49 }
 0xf55   : > { %v3842_v33 = vpop.f32.mrf.mxu0 }
 0xf56   : > { %v3843_v16 = vadd.f32 %v3842_v33, %v3772_v25  ;;  %v8125_v6 = vpop.f32.mrf.mxu2 }
 0xf58   : > { %v3858_v18 = vadd.f32 %v3843_v16, %v7845_v17  ;;  %3954 = vperm.xlu1 %6097, %v5592_v47   ;;  %v5593_v17 = vld [vmem:[%s8528_s10 + $0x98] sm:$0xff] }
 0xf59   : > { %v4043_v47 = vld [vmem:[#allocation2 + $0x38] sm:$0xff] }
 0xf5a   : > { %v8034_v62 = vmul.f32 0.70710677, %v3858_v18 }
 0xf5c   : > { %v3895_v9 = vadd.f32 %v3890_v26, %v8034_v62 }
 0xf5e   : > { %v6149_v8 = vpack.i.bf16 %v3895_v9, %v3894_v4  ;;  %v3923_v53 = vpack.c.bf16 %v3895_v9, %v3894_v4  ;;  %v8127_v55 = vpop.f32.mrf.mxu2  ;;  %v4045_v4 = vld [vmem:[#allocation2 + $0x40] sm:$0xff] }
 0xf60   : > { %6150 = vrot.lane.b32.xlu2 %v6149_v8, %s8624_s1  ;;  %6140 = vrot.lane.b32.xlu0 %v6149_v8, %s8623_s19  ;;  %v4044_v8 = vld [vmem:[#allocation2 + $0x58] sm:$0xff] }
 0xf61   : > { %3949 = vperm.xlu1 %6097, %v5591_v60  }
 0xf68   : > { %3959 = vperm.xlu2 %6098, %v5593_v17   ;;  %6155 = vrot.lane.b32.xlu0 %v6144_v28, %s8624_s1 }
 0xf69   : > { %3964 = vperm.xlu1 %6097, %v5594_v24  }
 0xf70   : > { %3974 = vperm.xlu2 %6098, %v5596_v40   ;;  %3944 = vperm.xlu0 %6096, %v5590_v30  }
 0xf71   : > { %4178 = vperm.xlu1 %6097, %v5645_v61  }
 0xf78   : > { %3969 = vperm.xlu2 %6098, %v5595_v38   ;;  %3979 = vperm.xlu0 %6096, %v5597_v20   ;;  %v4046_v20 = vld [vmem:[#allocation2 + $0xc8] sm:$0xff] }
 0xf79   : > { %4291 = vperm.xlu1 %6097, %v5672_v0  }
 0xf80   : > { %4163 = vperm.xlu2 %6098, %v5642_v41   ;;  %4173 = vperm.xlu0 %6096, %v5644_v43  }
 0xf81   : > { %4286 = vperm.xlu1 %6097, %v5671_v46  }
 0xf88   : > { %4296 = vperm.xlu2 %6098, %v5673_v52   ;;  %4168 = vperm.xlu0 %6096, %v5643_v32  }
 0xf90   : > { %4281 = vperm.xlu0 %6096, %v5670_v54  }
 0xfba   : > { %v6151_v15 = vpop.permute.xlu2 %6150 }
 0xfbb   : > { %v6153_v13 = vunpack.i.h.bf16 %v6151_v15  ;;  %v6152_v35 = vunpack.i.l.bf16 %v6151_v15 }
 0xfbd   : > { %v5621_v22 = vpack.c.bf16 %v6153_v13, %v6152_v35 }
 0xfc2   : > { %v6146_v2 = vpop.permute.xlu1 %6145  ;;  %v3960_v30 = vpop.permute.xlu2 %3959 }
 0xfc3   : > { %v6148_v51 = vunpack.i.h.bf16 %v6146_v2  ;;  %v6147_v34 = vunpack.i.l.bf16 %v6146_v2 }
 0xfc5   : > { %v5618_v14 = vpack.c.bf16 %v6148_v51, %v6147_v34 }
 0xfca   : > { %v3975_v51 = vpop.permute.xlu2 %3974 }
 0xfd2   : > { %v6141_v3 = vpop.permute.xlu0 %6140 }
 0xfd3   : > { %v6143_v31 = vunpack.i.h.bf16 %v6141_v3  ;;  %v6142_v23 = vunpack.i.l.bf16 %v6141_v3 }
 0xfd5   : > { %v5615_v25 = vpack.c.bf16 %v6143_v31, %v6142_v23 }
 0xfd7   : > { %5616 = vmatpush.bf16.msk.msrb.mxu2 %vm6799_vm3, %v5615_v25 }
 0xfda   : > { %v6156_v45 = vpop.permute.xlu0 %6155 }
 0xfdb   : > { %5619 = vmatpush.bf16.msk.msrb.mxu2 %vm6799_vm3, %v5618_v14  ;;  %v6158_v11 = vunpack.i.h.bf16 %v6156_v45  ;;  %v6157_v12 = vunpack.i.l.bf16 %v6156_v45 }
 0xfdd   : > { %v5624_v7 = vpack.c.bf16 %v6158_v11, %v6157_v12 }
 0xfdf   : > { %4018 = vmatpush.bf16.msrb.mxu2 %v3923_v53 }
 0xfe2   : > { %v3945_v48 = vpop.permute.xlu0 %3944 }
 0xfe3   : > { %4019 = vmatpush.bf16.msrb.mxu2 %v3922_v56  ;;  %v3955_v56 = vpop.permute.xlu1 %3954 }
 0xfe7   : > { %5622 = vmatpush.bf16.msk.msrb.mxu2 %vm6811_vm5, %v5621_v22  ;;  %v3970_v22 = vpop.permute.xlu2 %3969 }
 0xfeb   : > { %5625 = vmatpush.bf16.msk.msrb.mxu2 %vm6811_vm5, %v5624_v7  ;;  %v3950_v16 = vpop.permute.xlu1 %3949 }
 0xfee   : > { %5626 = vmatmul.msk.bf16.vlgmr.msrb.gmra.mxu2 %vm1365_vm6, %v5854_v27 }
 0xffe   : > { %5627 = vmatmul.msk.bf16.gmra.mxu2 %vm1365_vm6, %v5855_v10  ;;  %v4049_v10 = vld [vmem:[#allocation2 + $0x70] sm:$0xff] }
0x100e   : > { %5628 = vmatmul.msk.bf16.gmra.mxu2 %vm1365_vm6, %v5856_v5 }
0x101e   : > { %5629 = vmatmul.msk.bf16.gmra.mxu2 %vm1365_vm6, %v5857_v36 }
0x1071   : > { %v4023_v28 = vpop.f32.mrf.mxu2 }
0x1072   : > { %v4024_v33 = vadd.f32 %v4023_v28, %v3945_v48  ;;  %v4048_v28 = vld [vmem:[#allocation2 + $0x90] sm:$0xff] }
0x1074   : > { %v4051_v9 = vadd.f32 %v4043_v47, %v4024_v33 }
0x1076   : > { %v5630_v24 = vmul.f32 -1.442695, %v4051_v9  ;;  %v4050_v9 = vld [vmem:[#allocation2 + $0xc0] sm:$0xff] }
0x1078   : > { %6227 = vpow2.f32 %v5630_v24 }
0x1079   : > { %v4025_v39 = vpop.f32.mrf.mxu2 }
0x107a   : > { %v4026_v18 = vadd.f32 %v4025_v39, %v3950_v16  ;;  %v3980_v16 = vpop.permute.xlu0 %3979 }
0x107c   : > { %v4052_v17 = vadd.f32 %v4044_v8, %v4026_v18  ;;  %v4047_v18 = vld [vmem:[#allocation2 + $0xe0] sm:$0xff] }
0x107e   : > { %v5631_v61 = vmul.f32 -1.442695, %v4052_v17  ;;  %v6228_v46 = vpop.eup %6227 }
0x107f   : > { %v8129_v58 = vadd.f32 1.0, %v6228_v46 }
0x1081   : > { %v4028_v26 = vpop.f32.mrf.mxu2  ;;  %vm4080_vm12 = vweird.f32 %v8129_v58 }
0x1082   : > { %v4029_v60 = vadd.f32 %v4028_v26, %v3955_v56  ;;  %v3965_v56 = vpop.permute.xlu1 %3964 }
0x1084   : > { %v4053_v53 = vadd.f32 %v4045_v4, %v4029_v60 }
0x1086   : > { %v5632_v40 = vmul.f32 -1.442695, %v4053_v53 }
0x1088   : > { %6229 = vpow2.f32 %v5632_v40 }
0x1089   : > { %v4030_v38 = vpop.f32.mrf.mxu2  ;;  %6231 = vpow2.f32 %v5631_v61 }
0x108a   : > { %v4031_v0 = vadd.f32 %v4030_v38, %v3960_v30 }
0x108c   : > { %v4054_v41 = vadd.f32 %v4046_v20, %v4031_v0 }
0x108e   : > { %v5633_v43 = vmul.f32 -1.442695, %v4054_v41  ;;  %v6230_v52 = vpop.eup %6229 }
0x108f   : > { %v6232_v54 = vpop.eup %6231  ;;  %v8131_v59 = vadd.f32 1.0, %v6230_v52 }
0x1090   : > { %6233 = vpow2.f32 %v5633_v43  ;;  %v8133_v3 = vadd.f32 1.0, %v6232_v54 }
0x1091   : > { %v4033_v32 = vpop.f32.mrf.mxu2  ;;  %6235 = vrcp.f32 %v8129_v58  ;;  %vm4110_vm14 = vweird.f32 %v8131_v59  ;;  %v4116_v20 = vand.u32 2147483648, %v8131_v59  ;;  %v4114_v43 = vand.u32 2147483647, %v8131_v59 }
0x1092   : > { %6237 = vrcp.f32 %v8131_v59  ;;  %v4034_v33 = vadd.f32 %v4033_v32, %v3965_v56  ;;  %vm4095_vm9 = vweird.f32 %v8133_v3  ;;  %v4101_v54 = vand.u32 2147483648, %v8133_v3 }
0x1093   : > { %vm4115_vm7 = vcmp.eq.f32.partialorder %v4114_v43, 8.507059e+37  ;;  %v5861_v43 = vld [vmem:[%s8529_s11 + $0x58] sm:$0xff] }
0x1094   : > { %v4055_v40 = vadd.f32 %v4047_v18, %v4034_v33  ;;  %v5852_v18 = vld [vmem:[%s8529_s11 + $0x30] sm:$0xff] }
0x1095   : > { %5576 = vmatmul.msk.bf16.gmra.mxu0 %vm1585_vm11, %v5852_v18  ;;  %v5647_v18 = vld [vmem:[%s8530_s12 + $0xa8] sm:$0xff] }
0x1096   : > { %v6234_v2 = vpop.eup %6233 }
0x1097   : > { %v8136_v31 = vadd.f32 1.0, %v6234_v2  ;;  %v8141_v34 = vpop.eup %6235 }
0x1098   : > { %v8143_v25 = vpop.eup %6237  ;;  %v4076_v11 = vmul.f32 %v8141_v34, %v8129_v58  ;;  %vm4081_vm0 = vweird.f32 %v8141_v34 }
0x1099   : > { %6239 = vrcp.f32 %v8136_v31  ;;  %v4035_v23 = vpop.f32.mrf.mxu2  ;;  %v4106_v35 = vmul.f32 %v8143_v25, %v8131_v59  ;;  %vm4111_vm5 = vweird.f32 %v8143_v25  ;;  %v4131_v0 = vand.u32 2147483648, %v8136_v31 }
0x109a   : > { %6241 = vrcp.f32 %v8133_v3  ;;  %v4036_v27 = vadd.f32 %v4035_v23, %v3970_v22  ;;  %v4077_v39 = vsub.f32 1.0, %v4076_v11  ;;  %vm8169_vm1 = vmor %vm4110_vm14, %vm4111_vm5  ;;  %vm4125_vm2 = vweird.f32 %v8136_v31 }
0x109b   : > { %v4107_v5 = vsub.f32 1.0, %v4106_v35  ;;  %v4129_v46 = vand.u32 2147483647, %v8136_v31  ;;  %v4099_v23 = vand.u32 2147483647, %v8133_v3  ;;  %v4132_v35 = vor.u32 1.1754944e-38, %v4131_v0 }
0x109c   : > { %v4056_v26 = vadd.f32 %v4048_v28, %v4036_v27  ;;  %v4078_v17 = vmul.f32 %v8141_v34, %v4077_v39  ;;  %v4102_v27 = vor.u32 1.1754944e-38, %v4101_v54 }
0x109d   : > { %v4108_v8 = vmul.f32 %v8143_v25, %v4107_v5  ;;  %vm4130_vm5 = vcmp.eq.f32.partialorder %v4129_v46, 8.507059e+37 }
0x109f   : > { %v8145_v14 = vpop.eup %6239  ;;  %v4109_v61 = vadd.f32 %v8143_v25, %v4108_v8  ;;  %v5860_v8 = vld [vmem:[%s8529_s11 + $0x50] sm:$0xff] }
0x10a0   : > { %v8147_v15 = vpop.eup %6241  ;;  %v4121_v45 = vmul.f32 %v8145_v14, %v8136_v31  ;;  %vm4126_vm10 = vweird.f32 %v8145_v14  ;;  %v4079_v31 = vadd.f32 %v8141_v34, %v4078_v17 }
0x10a1   : > { %v4038_v13 = vpop.f32.mrf.mxu2  ;;  %v4091_v12 = vmul.f32 %v8147_v15, %v8133_v3  ;;  %vm4096_vm3 = vweird.f32 %v8147_v15  ;;  %vm8177_vm8 = vmor %vm4125_vm2, %vm4126_vm10  ;;  %v4113_v59 = vsel %vm8169_vm1, %v8143_v25, %v4109_v61 }
0x10a2   : > { %v4039_v7 = vadd.f32 %v4038_v13, %v3975_v51  ;;  %v4122_v36 = vsub.f32 1.0, %v4121_v45  ;;  %v4117_v13 = vor.u32 1.1754944e-38, %v4116_v20  ;;  %v4086_v45 = vand.u32 2147483648, %v8129_v58  ;;  %vm8196_vm4 = vmor %vm4095_vm9, %vm4096_vm3 }
0x10a3   : > { %v4092_v48 = vsub.f32 1.0, %v4091_v12  ;;  %vm4082_vm10 = vmor %vm4080_vm12, %vm4081_vm0  ;;  %vm4100_vm3 = vcmp.eq.f32.partialorder %v4099_v23, 8.507059e+37 }
0x10a4   : > { %v4057_v47 = vadd.f32 %v4049_v10, %v4039_v7  ;;  %v4123_v60 = vmul.f32 %v8145_v14, %v4122_v36  ;;  %v4118_v22 = vsel %vm4115_vm7, %v4117_v13, %v4113_v59  ;;  %v4083_v36 = vsel %vm4082_vm10, %v8141_v34, %v4079_v31  ;;  %v5859_v34 = vld [vmem:[%s8529_s11 + $0x48] sm:$0xff] }
0x10a5   : > { %v4093_v24 = vmul.f32 %v8147_v15, %v4092_v48  ;;  %v4087_v56 = vor.u32 1.1754944e-38, %v4086_v45 }
0x10a6   : > { %6243 = vtanh.f32 %v4057_v47  ;;  %v4124_v38 = vadd.f32 %v8145_v14, %v4123_v60 }
0x10a7   : > { %6245 = vtanh.f32 %v4056_v26  ;;  %v4094_v52 = vadd.f32 %v8147_v15, %v4093_v24  ;;  %v4179_v26 = vpop.permute.xlu1 %4178 }
0x10a8   : > { %v4128_v2 = vsel %vm8177_vm8, %v8145_v14, %v4124_v38  ;;  %v4084_v14 = vand.u32 2147483647, %v8129_v58 }
0x10a9   : > { %v4040_v4 = vpop.f32.mrf.mxu2  ;;  %v4098_v3 = vsel %vm8196_vm4, %v8147_v15, %v4094_v52  ;;  %v4133_v7 = vsel %vm4130_vm5, %v4132_v35, %v4128_v2 }
0x10aa   : > { %v4041_v53 = vadd.f32 %v4040_v4, %v3980_v16  ;;  %v4103_v39 = vsel %vm4100_vm3, %v4102_v27, %v4098_v3  ;;  %vm4085_vm14 = vcmp.eq.f32.partialorder %v4084_v14, 8.507059e+37  ;;  %v5858_v16 = vld [vmem:[%s8529_s11 + $0x40] sm:$0xff]  ;;  %v4174_v4 = vpop.permute.xlu0 %4173  ;;  %v5688_v27 = vld [vmem:[%s8528_s10 + $0xf0] sm:$0xff] }
0x10ab   : > { %v4088_v33 = vsel %vm4085_vm14, %v4087_v56, %v4083_v36  ;;  %v5687_v36 = vld [vmem:[%s8528_s10 + $0xe8] sm:$0xff]  ;;  %v5648_v56 = vld [vmem:[%s8530_s12 + $0xb0] sm:$0xff] }
0x10ac   : > { %v4058_v30 = vadd.f32 %v4050_v9, %v4041_v53  ;;  %v6244_v51 = vpop.eup %6243  ;;  %v5853_v9 = vld [vmem:[%s8529_s11 + $0x38] sm:$0xff]  ;;  %v4164_v53 = vpop.permute.xlu2 %4163 }
0x10ad   : > { %v6246_v25 = vpop.eup %6245  ;;  %v4141_v10 = vmul.f32 %v6244_v51, %v4118_v22  ;;  %5577 = vmatmul.msk.bf16.gmra.mxu0 %vm1585_vm11, %v5853_v9  ;;  %v5684_v51 = vld [vmem:[%s8528_s10 + $0xd0] sm:$0xff] }
0x10ae   : > { %6247 = vtanh.f32 %v4058_v30  ;;  %v4140_v48 = vmul.f32 %v6246_v25, %v4103_v39  ;;  %v5556_v39 = vld [vmem:[%s8530_s12 + $0x70] sm:$0xff] }
0x10af   : > { %6249 = vtanh.f32 %v4055_v40  ;;  %v4292_v24 = vpop.permute.xlu1 %4291  ;;  %v4677_v9 = vld [vmem:[%s8532_s14 + $0x10] sm:$0xff] }
0x10b2   : > { %v4169_v40 = vpop.permute.xlu0 %4168 }
0x10b4   : > { %v6248_v12 = vpop.eup %6247  ;;  %v4297_v25 = vpop.permute.xlu2 %4296 }
0x10b5   : > { %v4142_v5 = vmul.f32 %v6248_v12, %v4133_v7  ;;  %v6250_v28 = vpop.eup %6249  ;;  %v5686_v7 = vld [vmem:[%s8528_s10 + $0xe0] sm:$0xff] }
0x10b6   : > { %v4139_v15 = vmul.f32 %v6250_v28, %v4088_v33  ;;  %v5689_v28 = vld [vmem:[%s8528_s10 + $0xf8] sm:$0xff] }
0x10b7   : > { %v4152_v58 = vpack.c.bf16 %v4142_v5, %v4141_v10  ;;  %v4287_v46 = vpop.permute.xlu1 %4286  ;;  %v5682_v10 = vld [vmem:[%s8528_s10 + $0xc0] sm:$0xff]  ;;  %v3346_v5 = vld [vmem:[%s8530_s12 + $0x38] sm:$0xff] }
0x10b8   : > { %v4151_v47 = vpack.c.bf16 %v4140_v48, %v4139_v15  ;;  %v3344_v48 = vld [vmem:[%s8530_s12 + $0x28] sm:$0xff]  ;;  %v5649_v33 = vld [vmem:[%s8530_s12 + $0xb8] sm:$0xff] }
0x10b9   : > { %4239 = vmatpush.bf16.msrb.mxu1 %v4152_v58  ;;  %v3345_v58 = vld [vmem:[%s8530_s12 + $0x30] sm:$0xff]  ;;  %v5557_v15 = vld [vmem:[%s8530_s12 + $0x78] sm:$0xff] }
0x10ba   : > { %v4282_v52 = vpop.permute.xlu0 %4281 }
0x10bd   : > { %4240 = vmatpush.bf16.msrb.mxu1 %v4151_v47  ;;  %v5740_v47 = vld [vmem:[%s8530_s12 + $0xf0] sm:$0xff] }
0x10c0   : > { %5666 = vmatmul.msk.bf16.vlgmr.msrb.gmra.mxu1 %vm1585_vm11, %v5858_v16  ;;  %v5554_v16 = vld [vmem:[%s8530_s12 + $0x60] sm:$0xff] }
0x10d0   : > { %5667 = vmatmul.msk.bf16.gmra.mxu1 %vm1585_vm11, %v5859_v34  ;;  %v3343_v34 = vld [vmem:[%s8530_s12 + $0x20] sm:$0xff] }
0x10e0   : > { %5668 = vmatmul.msk.bf16.gmra.mxu1 %vm1585_vm11, %v5860_v8  ;;  %v5738_v8 = vld [vmem:[%s8530_s12 + $0xe0] sm:$0xff] }
0x10f0   : > { %5669 = vmatmul.msk.bf16.gmra.mxu1 %vm1585_vm11, %v5861_v43 }
0x113d   : > { %v4242_v60 = vpop.f32.mrf.mxu1 }
0x113e   : > { %v4243_v17 = vadd.f32 %v4242_v60, %v4164_v53  ;;  %v5646_v60 = vld [vmem:[%s8530_s12 + $0xa0] sm:$0xff]  ;;  %v4676_v53 = vld [vmem:[%s8532_s14 + $0x8] sm:$0xff] }
0x1140   : > { %v4262_v30 = vadd.f32 %v4243_v17, %v8011_v44  ;;  %v4678_v17 = vld [vmem:[%s8532_s14 + $0x18] sm:$0xff] }
0x1142   : > { %v4266_v20 = vmul.f32 0.70710677, %v4262_v30  ;;  %v4675_v30 = vld [vmem:[%s8532_s14] sm:$0xff] }
0x1144   : > { %v8232_v32 = vadd.f32 %v4282_v52, %v4266_v20 }
0x1145   : > { %v4244_v61 = vpop.f32.mrf.mxu1 }
0x1146   : > { %v4245_v38 = vadd.f32 %v4244_v61, %v4169_v40  ;;  %v4742_v40 = vld [vmem:[%s8534_s16] sm:$0xff]  ;;  %v4743_v61 = vld [vmem:[%s8534_s16 + $0x8] sm:$0xff] }
0x1148   : > { %v4263_v0 = vadd.f32 %v4245_v38, %v8014_v63 }
0x114a   : > { %v4267_v41 = vmul.f32 0.70710677, %v4263_v0 }
0x114c   : > { %v8234_v54 = vadd.f32 %v4287_v46, %v4267_v41 }
0x114d   : > { %v4247_v59 = vpop.f32.mrf.mxu1 }
0x114e   : > { %v6164_v44 = vpack.i.bf16 %v8234_v54, %v8232_v32  ;;  %v4329_v63 = vpack.c.bf16 %v8234_v54, %v8232_v32  ;;  %v4248_v2 = vadd.f32 %v4247_v59, %v4174_v4  ;;  %v5555_v4 = vld [vmem:[%s8530_s12 + $0x68] sm:$0xff]  ;;  %v5864_v54 = vld [vmem:[%s8527_s9 + $0x70] sm:$0xff] }
0x114f   : > { %v5863_v32 = vld [vmem:[%s8527_s9 + $0x68] sm:$0xff] }
0x1150   : > { %6165 = vrot.lane.b32.xlu0 %v6164_v44, %s8631_s26  ;;  %v4264_v31 = vadd.f32 %v4248_v2, %v8031_v49  ;;  %v5683_v49 = vld [vmem:[%s8528_s10 + $0xc8] sm:$0xff] }
0x1152   : > { %v4268_v35 = vmul.f32 0.70710677, %v4264_v31 }
0x1154   : > { %v8247_v14 = vadd.f32 %v4292_v24, %v4268_v35  ;;  %v5739_v24 = vld [vmem:[%s8530_s12 + $0xe8] sm:$0xff] }
0x1155   : > { %v4249_v23 = vpop.f32.mrf.mxu1 }
0x1156   : > { %v4250_v13 = vadd.f32 %v4249_v23, %v4179_v26  ;;  %v5741_v26 = vld [vmem:[%s8530_s12 + $0xf8] sm:$0xff] }
0x1158   : > { %v4265_v45 = vadd.f32 %v4250_v13, %v8034_v62  ;;  %4361 = vperm.xlu0 %6096, %v5684_v51   ;;  %v5685_v62 = vld [vmem:[%s8528_s10 + $0xd8] sm:$0xff] }
0x115a   : > { %v4269_v11 = vmul.f32 0.70710677, %v4265_v45  ;;  %v5862_v45 = vld [vmem:[%s8527_s9 + $0x60] sm:$0xff] }
0x115c   : > { %v8249_v3 = vadd.f32 %v4297_v25, %v4269_v11 }
0x115e   : > { %v6169_v12 = vpack.i.bf16 %v8249_v3, %v8247_v14  ;;  %v4330_v22 = vpack.c.bf16 %v8249_v3, %v8247_v14 }
0x1160   : > { %6170 = vrot.lane.b32.xlu1 %v6169_v12, %s8632_s24  ;;  %6160 = vrot.lane.b32.xlu2 %v6169_v12, %s8631_s26  ;;  %v4450_v12 = vld [vmem:[#allocation2 + $0xa8] sm:$0xff] }
0x1161   : > { %4356 = vperm.xlu0 %6096, %v5683_v49  }
0x1168   : > { %4366 = vperm.xlu1 %6097, %v5685_v62   ;;  %6175 = vrot.lane.b32.xlu2 %v6164_v44, %s8632_s24 }
0x1169   : > { %4371 = vperm.xlu0 %6096, %v5686_v7   ;;  %v4452_v7 = vld [vmem:[#allocation2 + $0x10] sm:$0xff] }
0x1170   : > { %4381 = vperm.xlu1 %6097, %v5688_v27   ;;  %4351 = vperm.xlu2 %6098, %v5682_v10   ;;  %v4451_v10 = vld [vmem:[#allocation2 + $0xd0] sm:$0xff] }
0x1171   : > { %3384 = vperm.xlu0 %6096, %v3346_v5  }
0x1178   : > { %4376 = vperm.xlu1 %6097, %v5687_v36   ;;  %4386 = vperm.xlu2 %6098, %v5689_v28  }
0x1179   : > { %4193 = vperm.xlu0 %6096, %v5648_v56  }
0x1180   : > { %3786 = vperm.xlu1 %6097, %v5556_v39   ;;  %3379 = vperm.xlu2 %6098, %v3345_v58  }
0x1181   : > { %3374 = vperm.xlu0 %6096, %v3344_v48  }
0x1188   : > { %4198 = vperm.xlu1 %6097, %v5649_v33   ;;  %3791 = vperm.xlu2 %6098, %v5557_v15   ;;  %v4453_v15 = vld [vmem:[#allocation2 + $0x28] sm:$0xff] }
0x1189   : > { %4596 = vperm.xlu0 %6096, %v5740_v47  }
0x1190   : > { %3776 = vperm.xlu1 %6097, %v5554_v16   ;;  %3369 = vperm.xlu2 %6098, %v3343_v34  }
0x1191   : > { %4188 = vperm.xlu0 %6096, %v5647_v18  }
0x1198   : > { %4601 = vperm.xlu1 %6097, %v5741_v26   ;;  %3781 = vperm.xlu2 %6098, %v5555_v4  }
0x1199   : > { %4691 = vperm.xlu0 %6096, %v4677_v9  }
0x11a0   : > { %4586 = vperm.xlu1 %6097, %v5738_v8   ;;  %4183 = vperm.xlu2 %6098, %v5646_v60  }
0x11a1   : > { %4686 = vperm.xlu0 %6096, %v4676_v53  }
0x11a8   : > { %4696 = vperm.xlu1 %6097, %v4678_v17   ;;  %4591 = vperm.xlu2 %6098, %v5739_v24  }
0x11b0   : > { %4746 = vperm.xlu1 %6097, %v4742_v40   ;;  %4681 = vperm.xlu2 %6098, %v4675_v30  }
0x11b8   : > { %4751 = vperm.xlu2 %6098, %v4743_v61  }
0x11ba   : > { %v6161_v38 = vpop.permute.xlu2 %6160 }
0x11bb   : > { %v6163_v20 = vunpack.i.h.bf16 %v6161_v38  ;;  %v6162_v0 = vunpack.i.l.bf16 %v6161_v38 }
0x11bd   : > { %v5707_v41 = vpack.c.bf16 %v6163_v20, %v6162_v0 }
0x11bf   : > { %5708 = vmatpush.bf16.msk.msrb.mxu3 %vm6994_vm13, %v5707_v41 }
0x11c2   : > { %v6166_v43 = vpop.permute.xlu0 %6165  ;;  %v6176_v44 = vpop.permute.xlu2 %6175 }
0x11c3   : > { %v6168_v46 = vunpack.i.h.bf16 %v6166_v43  ;;  %v6167_v52 = vunpack.i.l.bf16 %v6166_v43  ;;  %v6178_v51 = vunpack.i.h.bf16 %v6176_v44  ;;  %v6177_v13 = vunpack.i.l.bf16 %v6176_v44 }
0x11c5   : > { %v5710_v59 = vpack.c.bf16 %v6168_v46, %v6167_v52  ;;  %v5716_v21 = vpack.c.bf16 %v6178_v51, %v6177_v13  ;;  %v4456_v13 = vld [vmem:[#allocation2 + $0x20] sm:$0xff] }
0x11c7   : > { %5711 = vmatpush.bf16.msk.msrb.mxu3 %vm6994_vm13, %v5710_v59 }
0x11ca   : > { %v4362_v11 = vpop.permute.xlu0 %4361  ;;  %v4352_v14 = vpop.permute.xlu2 %4351 }
0x11cb   : > { %4425 = vmatpush.bf16.msrb.mxu3 %v4330_v22 }
0x11cf   : > { %4426 = vmatpush.bf16.msrb.mxu3 %v4329_v63  ;;  %v5865_v63 = vld [vmem:[%s8527_s9 + $0x78] sm:$0xff] }
0x11d2   : > { %v6171_v2 = vpop.permute.xlu1 %6170 }
0x11d3   : > { %v6173_v31 = vunpack.i.h.bf16 %v6171_v2  ;;  %v6172_v23 = vunpack.i.l.bf16 %v6171_v2  ;;  %v4357_v49 = vpop.permute.xlu0 %4356 }
0x11d5   : > { %v5713_v35 = vpack.c.bf16 %v6173_v31, %v6172_v23 }
0x11d7   : > { %5714 = vmatpush.bf16.msk.msrb.mxu3 %vm7006_vm15, %v5713_v35  ;;  %v4455_v35 = vld [vmem:[#allocation2 + $0xf8] sm:$0xff] }
0x11da   : > { %v4367_v58 = vpop.permute.xlu1 %4366 }
0x11db   : > { %5717 = vmatpush.bf16.msk.msrb.mxu3 %vm7006_vm15, %v5716_v21  ;;  %v4372_v21 = vpop.permute.xlu0 %4371 }
0x11de   : > { %5718 = vmatmul.msk.bf16.vlgmr.msrb.gmra.mxu3 %vm1365_vm6, %v5862_v45 }
0x11e2   : > { %v4382_v30 = vpop.permute.xlu1 %4381 }
0x11ea   : > { %v4377_v44 = vpop.permute.xlu1 %4376 }
0x11ee   : > { %5719 = vmatmul.msk.bf16.gmra.mxu3 %vm1365_vm6, %v5863_v32 }
0x11fe   : > { %5720 = vmatmul.msk.bf16.gmra.mxu3 %vm1365_vm6, %v5864_v54 }
0x120e   : > { %5721 = vmatmul.msk.bf16.gmra.mxu3 %vm1365_vm6, %v5865_v63 }
0x1261   : > { %v4430_v57 = vpop.f32.mrf.mxu3 }
0x1262   : > { %v4431_v3 = vadd.f32 %v4430_v57, %v4352_v14  ;;  %v4387_v57 = vpop.permute.xlu2 %4386 }
0x1264   : > { %v4458_v27 = vadd.f32 %v4450_v12, %v4431_v3  ;;  %v4457_v3 = vld [vmem:[#allocation2 + $0x98] sm:$0xff] }
0x1266   : > { %v5722_v56 = vmul.f32 -1.442695, %v4458_v27 }
0x1268   : > { %6251 = vpow2.f32 %v5722_v56 }
0x1269   : > { %v4432_v25 = vpop.f32.mrf.mxu3 }
0x126a   : > { %v4433_v22 = vadd.f32 %v4432_v25, %v4357_v49 }
0x126c   : > { %v4459_v28 = vadd.f32 %v4451_v10, %v4433_v22 }
0x126e   : > { %v5723_v48 = vmul.f32 -1.442695, %v4459_v28  ;;  %v6252_v18 = vpop.eup %6251 }
0x126f   : > { %v8375_v8 = vadd.f32 1.0, %v6252_v18 }
0x1271   : > { %v4435_v62 = vpop.f32.mrf.mxu3  ;;  %vm4487_vm4 = vweird.f32 %v8375_v8 }
0x1272   : > { %v4436_v5 = vadd.f32 %v4435_v62, %v4362_v11  ;;  %v4454_v11 = vld [vmem:[#allocation2 + $0xa0] sm:$0xff] }
0x1274   : > { %v4460_v36 = vadd.f32 %v4452_v7, %v4436_v5 }
0x1276   : > { %v5724_v39 = vmul.f32 -1.442695, %v4460_v36 }
0x1278   : > { %6253 = vpow2.f32 %v5724_v39 }
0x1279   : > { %v4437_v33 = vpop.f32.mrf.mxu3  ;;  %6255 = vpow2.f32 %v5723_v48 }
0x127a   : > { %v4438_v47 = vadd.f32 %v4437_v33, %v4367_v58 }
0x127c   : > { %v4461_v16 = vadd.f32 %v4453_v15, %v4438_v47 }
0x127e   : > { %v5725_v34 = vmul.f32 -1.442695, %v4461_v16  ;;  %v6254_v26 = vpop.eup %6253 }
0x127f   : > { %v6256_v9 = vpop.eup %6255  ;;  %v8377_v60 = vadd.f32 1.0, %v6254_v26 }
0x1280   : > { %6257 = vpow2.f32 %v5725_v34  ;;  %v8379_v17 = vadd.f32 1.0, %v6256_v9 }
0x1281   : > { %v4440_v4 = vpop.f32.mrf.mxu3  ;;  %6259 = vrcp.f32 %v8375_v8  ;;  %vm4517_vm1 = vweird.f32 %v8377_v60  ;;  %v4523_v28 = vand.u32 2147483648, %v8377_v60  ;;  %v4521_v58 = vand.u32 2147483647, %v8377_v60 }
0x1282   : > { %6261 = vrcp.f32 %v8377_v60  ;;  %v4441_v54 = vadd.f32 %v4440_v4, %v4372_v21  ;;  %vm4502_vm12 = vweird.f32 %v8379_v17  ;;  %v4508_v47 = vand.u32 2147483648, %v8379_v17  ;;  %v5868_v21 = vld [vmem:[%s8529_s11 + $0x70] sm:$0xff] }
0x1283   : > { %v4506_v26 = vand.u32 2147483647, %v8379_v17  ;;  %v4524_v9 = vor.u32 1.1754944e-38, %v4523_v28  ;;  %vm4522_vm5 = vcmp.eq.f32.partialorder %v4521_v58, 8.507059e+37 }
0x1284   : > { %v4462_v27 = vadd.f32 %v4454_v11, %v4441_v54 }
0x1285   : > { %vm4507_vm14 = vcmp.eq.f32.partialorder %v4506_v26, 8.507059e+37 }
0x1286   : > { %v6258_v53 = vpop.eup %6257 }
0x1287   : > { %v8382_v24 = vadd.f32 1.0, %v6258_v53  ;;  %v8387_v61 = vpop.eup %6259  ;;  %v4493_v53 = vand.u32 2147483648, %v8375_v8 }
0x1288   : > { %v8389_v38 = vpop.eup %6261  ;;  %v4483_v52 = vmul.f32 %v8387_v61, %v8375_v8  ;;  %vm4488_vm9 = vweird.f32 %v8387_v61 }
0x1289   : > { %6263 = vrcp.f32 %v8382_v24  ;;  %v4442_v40 = vpop.f32.mrf.mxu3  ;;  %v4513_v41 = vmul.f32 %v8389_v38, %v8377_v60  ;;  %vm4518_vm13 = vweird.f32 %v8389_v38  ;;  %v4538_v56 = vand.u32 2147483648, %v8382_v24  ;;  %vm4489_vm3 = vmor %vm4487_vm4, %vm4488_vm9 }
0x128a   : > { %6265 = vrcp.f32 %v8379_v17  ;;  %v4443_v51 = vadd.f32 %v4442_v40, %v4377_v44  ;;  %v4484_v45 = vsub.f32 1.0, %v4483_v52  ;;  %vm8415_vm2 = vmor %vm4517_vm1, %vm4518_vm13  ;;  %vm4532_vm8 = vweird.f32 %v8382_v24 }
0x128b   : > { %v4514_v31 = vsub.f32 1.0, %v4513_v41  ;;  %v4536_v48 = vand.u32 2147483647, %v8382_v24  ;;  %v4539_v60 = vor.u32 1.1754944e-38, %v4538_v56 }
0x128c   : > { %v4463_v25 = vadd.f32 %v4455_v35, %v4443_v51  ;;  %v4485_v62 = vmul.f32 %v8387_v61, %v4484_v45  ;;  %v5866_v35 = vld [vmem:[%s8529_s11 + $0x60] sm:$0xff]  ;;  %v5869_v45 = vld [vmem:[%s8529_s11 + $0x78] sm:$0xff] }
0x128d   : > { %v4515_v12 = vmul.f32 %v8389_v38, %v4514_v31  ;;  %vm4537_vm10 = vcmp.eq.f32.partialorder %v4536_v48, 8.507059e+37 }
0x128e   : > { %v4486_v18 = vadd.f32 %v8387_v61, %v4485_v62 }
0x128f   : > { %v8391_v20 = vpop.eup %6263  ;;  %v4516_v5 = vadd.f32 %v8389_v38, %v4515_v12 }
0x1290   : > { %v8393_v0 = vpop.eup %6265  ;;  %v4528_v43 = vmul.f32 %v8391_v20, %v8382_v24  ;;  %vm4533_vm15 = vweird.f32 %v8391_v20 }
0x1291   : > { %v4445_v46 = vpop.f32.mrf.mxu3  ;;  %v4498_v59 = vmul.f32 %v8393_v0, %v8379_v17  ;;  %vm4503_vm6 = vweird.f32 %v8393_v0  ;;  %vm8423_vm0 = vmor %vm4532_vm8, %vm4533_vm15  ;;  %v4520_v16 = vsel %vm8415_vm2, %v8389_v38, %v4516_v5 }
0x1292   : > { %v4446_v2 = vadd.f32 %v4445_v46, %v4382_v30  ;;  %v4529_v23 = vsub.f32 1.0, %v4528_v43  ;;  %vm8442_vm7 = vmor %vm4502_vm12, %vm4503_vm6  ;;  %v4491_v30 = vand.u32 2147483647, %v8375_v8  ;;  %v4509_v43 = vor.u32 1.1754944e-38, %v4508_v47 }
0x1293   : > { %v4499_v32 = vsub.f32 1.0, %v4498_v59  ;;  %v4490_v59 = vsel %vm4489_vm3, %v8387_v61, %v4486_v18  ;;  %v5867_v61 = vld [vmem:[%s8529_s11 + $0x68] sm:$0xff] }
0x1294   : > { %v4464_v63 = vadd.f32 %v4456_v13, %v4446_v2  ;;  %v4530_v49 = vmul.f32 %v8391_v20, %v4529_v23  ;;  %v4494_v2 = vor.u32 1.1754944e-38, %v4493_v53  ;;  %vm4492_vm6 = vcmp.eq.f32.partialorder %v4491_v30, 8.507059e+37 }
0x1295   : > { %v4500_v7 = vmul.f32 %v8393_v0, %v4499_v32  ;;  %v3845_v32 = vpop.f32.mrf.mxu0 }
0x1296   : > { %6267 = vtanh.f32 %v4464_v63  ;;  %v4531_v36 = vadd.f32 %v8391_v20, %v4530_v49  ;;  %v4495_v51 = vsel %vm4492_vm6, %v4494_v2, %v4490_v59  ;;  %v3787_v49 = vpop.permute.xlu1 %3786 }
0x1297   : > { %6269 = vtanh.f32 %v4463_v25  ;;  %v4501_v33 = vadd.f32 %v8393_v0, %v4500_v7  ;;  %v3380_v25 = vpop.permute.xlu2 %3379  ;;  %v4252_v7 = vpop.f32.mrf.mxu1 }
0x1298   : > { %v4535_v34 = vsel %vm8423_vm0, %v8391_v20, %v4531_v36  ;;  %v4525_v20 = vsel %vm4522_vm5, %v4524_v9, %v4520_v16  ;;  %v3444_v26 = vadd.f32 %v8125_v6, %v3380_v25 }
0x1299   : > { %v4447_v14 = vpop.f32.mrf.mxu3  ;;  %v4505_v17 = vsel %vm8442_vm7, %v8393_v0, %v4501_v33  ;;  %v4540_v41 = vsel %vm4537_vm10, %v4539_v60, %v4535_v34 }
0x129a   : > { %v4448_v22 = vadd.f32 %v4447_v14, %v4387_v57  ;;  %v4510_v31 = vsel %vm4507_vm14, %v4509_v43, %v4505_v17 }
0x129c   : > { %v4465_v10 = vadd.f32 %v4457_v3, %v4448_v22  ;;  %v6268_v4 = vpop.eup %6267  ;;  %v3385_v3 = vpop.permute.xlu0 %3384 }
0x129d   : > { %v6270_v40 = vpop.eup %6269  ;;  %v4548_v46 = vmul.f32 %v6268_v4, %v4525_v20  ;;  %v3847_v54 = vpop.f32.mrf.mxu0  ;;  %v3446_v60 = vadd.f32 %v8127_v55, %v3385_v3  ;;  %v5871_v3 = vld [vmem:[%s8531_s13 + $0x8] sm:$0xff] }
0x129e   : > { %6271 = vtanh.f32 %v4465_v10  ;;  %v4547_v23 = vmul.f32 %v6270_v40, %v4510_v31  ;;  %v4199_v5 = vpop.permute.xlu1 %4198 }
0x129f   : > { %6273 = vtanh.f32 %v4462_v27  ;;  %v3792_v12 = vpop.permute.xlu2 %3791  ;;  %v4254_v28 = vpop.f32.mrf.mxu1 }
0x12a4   : > { %v6272_v38 = vpop.eup %6271  ;;  %v4194_v62 = vpop.permute.xlu0 %4193 }
0x12a5   : > { %v4549_v52 = vmul.f32 %v6272_v38, %v4540_v41  ;;  %v6274_v44 = vpop.eup %6273  ;;  %v3850_v63 = vpop.f32.mrf.mxu0 }
0x12a6   : > { %v4546_v0 = vmul.f32 %v6274_v44, %v4495_v51  ;;  %v3777_v58 = vpop.permute.xlu1 %3776  ;;  %v3851_v34 = vadd.f32 %v3850_v63, %v3787_v49 }
0x12a7   : > { %v4559_v8 = vpack.c.bf16 %v4549_v52, %v4548_v46  ;;  %v3370_v27 = vpop.permute.xlu2 %3369  ;;  %v4257_v15 = vpop.f32.mrf.mxu1  ;;  %v3846_v17 = vadd.f32 %v3845_v32, %v3777_v58 }
0x12a8   : > { %v4558_v13 = vpack.c.bf16 %v4547_v23, %v4546_v0  ;;  %v3865_v24 = vadd.f32 %v3851_v34, %v3444_v26  ;;  %v3439_v20 = vadd.f32 %v8121_v37, %v3370_v27  ;;  %v4258_v41 = vadd.f32 %v4257_v15, %v4194_v62  ;;  %v5872_v34 = vld [vmem:[%s8533_s15] sm:$0xff] }
0x12a9   : > { %4642 = vmatpush.bf16.msra.mxu0 %v4559_v8 }
0x12aa   : > { %v3863_v6 = vadd.f32 %v3846_v17, %v3439_v20  ;;  %v4272_v31 = vadd.f32 %v4258_v41, %v3865_v24 }
0x12ac   : > { %v3375_v36 = vpop.permute.xlu0 %3374 }
0x12ad   : > { %4643 = vmatpush.bf16.msra.mxu0 %v4558_v13  ;;  %v3852_v57 = vpop.f32.mrf.mxu0  ;;  %v3441_v30 = vadd.f32 %v8123_v1, %v3375_v36 }
0x12ae   : > { %v4602_v16 = vpop.permute.xlu1 %4601  ;;  %v3853_v9 = vadd.f32 %v3852_v57, %v3792_v12 }
0x12af   : > { %v3782_v39 = vpop.permute.xlu2 %3781  ;;  %v4259_v4 = vpop.f32.mrf.mxu1 }
0x12b0   : > { %5758 = vmatmul.msk.bf16.vlgmr.msra.gmra.mxu0 %vm1585_vm11, %v5866_v35  ;;  %v3848_v40 = vadd.f32 %v3847_v54, %v3782_v39  ;;  %v4260_v38 = vadd.f32 %v4259_v4, %v4199_v5  ;;  %v3866_v52 = vadd.f32 %v3853_v9, %v3446_v60 }
0x12b2   : > { %v3864_v44 = vadd.f32 %v3848_v40, %v3441_v30  ;;  %v4273_v8 = vadd.f32 %v4260_v38, %v3866_v52 }
0x12b4   : > { %v4597_v48 = vpop.permute.xlu0 %4596 }
0x12b6   : > { %v4587_v23 = vpop.permute.xlu1 %4586 }
0x12b7   : > { %v4184_v47 = vpop.permute.xlu2 %4183 }
0x12b8   : > { %v4253_v55 = vadd.f32 %v4252_v7, %v4184_v47 }
0x12bc   : > { %v4189_v53 = vpop.permute.xlu0 %4188 }
0x12bd   : > { %v4255_v43 = vadd.f32 %v4254_v28, %v4189_v53 }
0x12bf   : > { %v4592_v59 = vpop.permute.xlu2 %4591  ;;  %v4271_v0 = vadd.f32 %v4255_v43, %v3864_v44 }
0x12c0   : > { %5759 = vmatmul.msk.bf16.gmra.mxu0 %vm1585_vm11, %v5867_v61  ;;  %v4270_v61 = vadd.f32 %v4253_v55, %v3863_v6 }
0x12d0   : > { %5760 = vmatmul.msk.bf16.gmra.mxu0 %vm1585_vm11, %v5868_v21 }
0x12e0   : > { %5761 = vmatmul.msk.bf16.gmra.mxu0 %vm1585_vm11, %v5869_v45 }
0x132d   : > { %v4645_v11 = vpop.f32.mrf.mxu0 }
0x1335   : > { %v4646_v14 = vpop.f32.mrf.mxu0 }
0x1336   : > { %v5870_v14 = vld [vmem:[%s8531_s13] sm:$0xff] }
0x133d   : > { %v4648_v22 = vpop.f32.mrf.mxu0 }
0x133e   : > { %v4692_v22 = vpop.permute.xlu0 %4691 }
0x1345   : > { %v4649_v10 = vpop.f32.mrf.mxu0 }
0x1346   : > { %v4687_v7 = vpop.permute.xlu0 %4686  ;;  %v4697_v10 = vpop.permute.xlu1 %4696 }
0x134d   : > { %v4651_v56 = vpop.f32.mrf.mxu0 }
0x134e   : > { %v4652_v13 = vadd.f32 %v4651_v56, %v4587_v23  ;;  %v4682_v56 = vpop.permute.xlu2 %4681 }
0x1350   : > { %v4661_v45 = vadd.f32 %v4652_v13, %v4270_v61 }
0x1352   : > { %v4669_v11 = vmul.f32 0.5, %v4661_v45 }
0x1355   : > { %v4653_v33 = vpop.f32.mrf.mxu0 }
0x1356   : > { %v4654_v2 = vadd.f32 %v4653_v33, %v4592_v59  ;;  %v4752_v9 = vpop.permute.xlu2 %4751 }
0x1358   : > { %v4662_v21 = vadd.f32 %v4654_v2, %v4271_v0 }
0x135a   : > { %v4670_v63 = vmul.f32 0.5, %v4662_v21 }
0x135c   : > { %v4673_v25 = vpack.c.bf16 %v4670_v63, %v4669_v11 }
0x135d   : > { %v4656_v18 = vpop.f32.mrf.mxu0 }
0x135e   : > { %v4657_v46 = vadd.f32 %v4656_v18, %v4597_v48  ;;  %v4747_v18 = vpop.permute.xlu1 %4746 }
0x1360   : > { %v4663_v1 = vadd.f32 %v4657_v46, %v4272_v31 }
0x1362   : > { %v4671_v32 = vmul.f32 0.5, %v4663_v1 }
0x1365   : > { %v4658_v51 = vpop.f32.mrf.mxu0 }
0x1366   : > { %v4659_v35 = vadd.f32 %v4658_v51, %v4602_v16 }
0x1368   : > { %v4664_v37 = vadd.f32 %v4659_v35, %v4273_v8 }
0x136a   : > { %v4672_v54 = vmul.f32 0.5, %v4664_v37 }
0x136c   : > { %v4674_v57 = vpack.c.bf16 %v4672_v54, %v4671_v32 }
0x136e   : > { %4721 = vmatpush.bf16.msra.mxu2 %v4674_v57 }
0x1372   : > { %4722 = vmatpush.bf16.msra.mxu2 %v4673_v25 }
0x1375   : > { %5770 = vmatmul.msk.bf16.vlgmr.msra.gmra.mxu2 %vm1585_vm11, %v5870_v14 }
0x1385   : > { %5771 = vmatmul.msk.bf16.gmra.mxu2 %vm1585_vm11, %v5871_v3 }
0x13f8   : > { %v4724_v12 = vpop.f32.mrf.mxu2 }
0x13f9   : > { %v4725_v39 = vadd.f32 %v4724_v12, %v4682_v56 }
0x13fb   : > { %v4734_v47 = vmax.f32 %v4725_v39, 0.0 }
0x1400   : > { %v4726_v49 = vpop.f32.mrf.mxu2 }
0x1401   : > { %v4727_v36 = vadd.f32 %v4726_v49, %v4687_v7 }
0x1403   : > { %v4735_v33 = vmax.f32 %v4727_v36, 0.0 }
0x1405   : > { %v4740_v16 = vpack.c.bf16 %v4735_v33, %v4734_v47 }
0x1408   : > { %v4729_v62 = vpop.f32.mrf.mxu2 }
0x1409   : > { %v4730_v27 = vadd.f32 %v4729_v62, %v4692_v22 }
0x140b   : > { %v4736_v58 = vmax.f32 %v4730_v27, 0.0 }
0x1410   : > { %v4731_v5 = vpop.f32.mrf.mxu2 }
0x1411   : > { %v4732_v28 = vadd.f32 %v4731_v5, %v4697_v10 }
0x1413   : > { %v4737_v48 = vmax.f32 %v4732_v28, 0.0 }
0x1415   : > { %v4741_v15 = vpack.c.bf16 %v4737_v48, %v4736_v58 }
0x1417   : > { %4768 = vmatpush.bf16.msra.mxu1 %v4741_v15 }
0x141b   : > { %4769 = vmatpush.bf16.msra.mxu1 %v4740_v16 }
0x141e   : > { %5776 = vmatmul.msk.bf16.vlgmr.msra.gmra.mxu1 %vm1585_vm11, %v5872_v34 }
0x149b   : > { %v4771_v26 = vpop.f32.mrf.mxu1 }
0x149c   : > { %v4772_v4 = vadd.f32 %v4771_v26, %v4747_v18 }
0x149e   : > { %4776 = vst [vmem:[#allocation7 + $0x8] sm:$0xff] %v4772_v4 }
0x14a3   : > { %v4773_v60 = vpop.f32.mrf.mxu1 }
0x14a4   : > { %v4774_v53 = vadd.f32 %v4773_v60, %v4752_v9 }
0x14a6   : > { %4777 = vst [vmem:[#allocation7] sm:$0xff] %v4774_v53 }
0x14a7 PF: > { %v4795_v24 = vld [vmem:[#allocation5 + $0x8] sm:$0xff]  ;;  %v4802_v40 = vld [vmem:[#allocation6] sm:$0xff]  ;;  %v4796_v30 = vld [vmem:[#allocation5] sm:$0xff]  ;;  %v4778_v17 = vstv %s6696_s21  ;;  %v4783_v38 = vstv %s6702_s23  ;;  %v4797_v52 = vstv %s6706_s20  ;;  %v4790_v44 = vstv %s6704_s3  ;;  %s4817_s21 = sadd.f32 1.0, %s6688_s28  ;;  %p5777_p8 = scmp.ne.s32.totalorder %s6459_s30, 3 }
0x14a8   : > { %4809 = vst [vmem:[#allocation6] sm:$0xff] %v4795_v24  ;;  %v4803_v20 = vld [vmem:[#allocation6 + $0x8] sm:$0xff]  ;;  %v4811_v41 = vld [vmem:[#allocation4] sm:$0xff]  ;;  %v4779_v46 = vmul.f32 %v4778_v17, %v7583_v50  ;;  %v4781_v59 = vld [vmem:[#allocation7 + $0x8] sm:$0xff]  ;;  %v4780_v6 = vmul.f32 %v4778_v17, %v7585_v42  ;;  %v4804_v51 = vstv %s6708_s6  ;;  %v4798_v0 = vmul.f32 %v4797_v52, %v4795_v24  ;;  %s8639_s3 = sld [smem:[#allocation21_spill]] (!%p5777_p8) }
0x14a9   : > { %v4812_v43 = vld [vmem:[#allocation4 + $0x8] sm:$0xff]  ;;  %4810 = vst [vmem:[#allocation6 + $0x8] sm:$0xff] %v4796_v30  ;;  %v4784_v31 = vmul.f32 %v4783_v38, %v4781_v59  ;;  %v4791_v8 = vmul.f32 %v4811_v41, %v4790_v44  ;;  %v4799_v13 = vmul.f32 %v4797_v52, %v4796_v30  ;;  %v4805_v61 = vmul.f32 %v4804_v51, %v4802_v40 }
0x14aa   : > { %4813 = vst [vmem:[#allocation5 + $0x8] sm:$0xff] %v4811_v41  ;;  %v4792_v23 = vmul.f32 %v4812_v43, %v4790_v44  ;;  %v4806_v21 = vmul.f32 %v4804_v51, %v4803_v20  ;;  %v4818_v32 = vstv %s4817_s21  ;;  %v4821_v57 = vstv %s6692_s29 }
0x14ab   : > { %4814 = vst [vmem:[#allocation5] sm:$0xff] %v4812_v43  ;;  %v4786_v1 = vadd.f32 %v4784_v31, %v4779_v46  ;;  %v4819_v25 = vmul.f32 %v4818_v32, %v6686_v29  ;;  %v4820_v3 = vmul.f32 %v4818_v32, %v6690_v19 }
0x14ac   : > { %4815 = vst [vmem:[#allocation4] sm:$0xff] %v7583_v50 }
0x14ad   : > { %v4782_v2 = vld [vmem:[#allocation7] sm:$0xff]  ;;  %4816 = vst [vmem:[#allocation4 + $0x8] sm:$0xff] %v7585_v42  ;;  %v4793_v37 = vadd.f32 %v4791_v8, %v4786_v1 }
0x14ae   : > { %v4785_v55 = vmul.f32 %v4783_v38, %v4782_v2 }
0x14af   : > { %v4800_v54 = vadd.f32 %v4798_v0, %v4793_v37 }
0x14b0   : > { %v4787_v35 = vadd.f32 %v4785_v55, %v4780_v6 }
0x14b1   : > { %v4807_v11 = vadd.f32 %v4805_v61, %v4800_v54 }
0x14b2   : > { %v4794_v45 = vadd.f32 %v4792_v23, %v4787_v35 }
0x14b3   : > { %v4822_v12 = vmul.f32 %v4821_v57, %v4807_v11 }
0x14b4   : > { %v4801_v63 = vadd.f32 %v4799_v13, %v4794_v45 }
0x14b5   : > { %v4824_v50 = vsub.f32 %v4819_v25, %v4822_v12 }
0x14b6   : > { %v4808_v14 = vadd.f32 %v4806_v21, %v4801_v63 }
0x14b7   : > { %4826 = vst [vmem:[#allocation3] sm:$0xff] %v4824_v50 }
0x14b8   : > { %v4823_v49 = vmul.f32 %v4821_v57, %v4808_v14  ;;  %4831 = sbr.rel (%p5777_p8) target bundleno = 5439 (0x153f), region = 112 }
0x14ba   : > { %v4825_v22 = vsub.f32 %v4820_v3, %v4823_v49 }
0x14bc   : > { %4827 = vst [vmem:[#allocation3 + $0x8] sm:$0xff] %v4825_v22 }
0x14bd   : > { %v4846_v42 = vld [vmem:[%s8536_s18] sm:$0xff]  ;;  %v6349_v62 = vmov 0   ;;  %v4847_v19 = vld [vmem:[%s8536_s18 + $0x8] sm:$0xff] }
0x14be   : > { %v4832_v29 = vld [vmem:[%s8639_s3] sm:$0xff]  ;;  %6276 = vset.pattern.permute.xlu1 %v6349_v62  ;;  %6275 = vset.pattern.permute.xlu0 %v6349_v62  ;;  %v4833_v7 = vld [vmem:[%s8639_s3 + $0x8] sm:$0xff] }
0x14bf   : > { %4850 = vperm.xlu1 %6276, %v4846_v42   ;;  %4836 = vperm.xlu0 %6275, %v4832_v29  }
0x14c7   : > { %4855 = vperm.xlu1 %6276, %v4847_v19   ;;  %4841 = vperm.xlu0 %6275, %v4833_v7  }
0x1531   : > { %v4851_v27 = vpop.permute.xlu1 %4850  ;;  %v4837_v10 = vpop.permute.xlu0 %4836 }
0x1532   : > { %v4844_v5 = vmul.f32 %v4837_v10, %v4824_v50 }
0x1534   : > { %v4858_v36 = vadd.f32 %v4851_v27, %v4844_v5 }
0x1536   : > { %4860 = vst [vmem:[#allocation11] sm:$0xff] %v4858_v36 }
0x1539   : > { %v4842_v28 = vpop.permute.xlu0 %4841  ;;  %v4856_v39 = vpop.permute.xlu1 %4855 }
0x153a   : > { %v4845_v56 = vmul.f32 %v4842_v28, %v4825_v22 }
0x153c   : > { %v4859_v58 = vadd.f32 %v4856_v39, %v4845_v56 }
0x153e   : > { %4861 = vst [vmem:[#allocation11 + $0x8] sm:$0xff] %v4859_v58 }
0x153f PF: > { %p5887_p9 = scmp.eq.s32.totalorder %s6459_s30, 3  ;;  %s6350_s17 = smov [#allocation11]  }
0x1540   : > { %s4867_s19 = sshll.u32 %s6350_s17, 4  ;;  %s8640_s26 = sld [smem:[#allocation22_spill]]  ;;  %s4868_s19 = int_to_ptr.vmem [resolvable:$true] %s4867_s19 }
0x1541   : > { %s6351_s5 = smov 128   ;;  %s6352_s22 = smov 8  }
0x1546   : > { %s4869_s1 = sshll.u32 %s8640_s26, 4  ;;  %s4870_s1 = int_to_ptr.hbm [resolvable:$true] %s4869_s1 }
0x1547   : > { %5878 = dma.vmem_to_hbm [thread:$0]  (%p5887_p9), %s4868_s19, 256, %s4870_s1, [#allocation9], %s6351_s5, %s6351_s5, %s6352_s22  }
0x1548   : > { %6329 = dma.done.wait (%p5887_p9), [#allocation9], 256  }
0x1549   : > { %6331 = vsyncadd (%p5887_p9), [#allocation9], 4294967040 }
0x154a PF: > { %s8641_s21 = sld [smem:[#allocation14_spill]] }
0x1550   : > { %s31_s0 = sadd.s32 1, %s8641_s21  }
0x1551   : > { %p28_p10 = scmp.ge.s32.totalorder %s31_s0, 6  }
0x1553   :  { %30 = sbr.rel (!%p28_p10) target bundleno = 11 (0xb), region = 170 }
0x1558   :  { %4886 = vsyncpa [#allocation9], 1 }
0x1559   :  { %4888 = vsyncpa [#allocation9 + $0x1], 1 }
0x155a   :  { %4889 = vsyncpa [#allocation10], 1 }
0x155b   :  { %4891 = vsyncpa [#allocation10 + $0x1], 1 }

</bundles_post_ra>
